<compile_context>
chip_gen: v7x
topology: tpu7x:2x2x1
jax: 0.10.0
libtpu: 0.0.40
codegen_flags: <defaults>
</compile_context>

<pallas_src>
import functools

import numpy as np

import jax
import jax.numpy as jnp
from jax.experimental import pallas as pl
from jax.experimental.pallas import tpu as pltpu

SHP = 128            # lane-aligned padded hidden width of the 6 fused LSTM chains
GW = 4 * SHP         # fused gate width, groups [i | f | g | o], each 128 lanes
_GATE_SCALE = (0.5, 0.5, 1.0, 0.5)   # pre-scale i/f/o for sigmoid-via-tanh


# --------------------------------------------------------------------------- #
# Kernel
# --------------------------------------------------------------------------- #
def att_kernel(x_ref, wih_ref, whh_ref, b_ref, wctx_ref, winter_ref,
               s9_ref, s7_ref, repi_ref, foldi_ref, repd_ref, foldd_ref,
               fc1w_ref, fc1b_ref, fc2w_ref, fc2b_ref,
               preds_ref, atts_ref, *, dim_capsule, final_tanh):
    D = dim_capsule
    f32 = jnp.float32
    T, Bt, IN2 = x_ref.shape
    mdt = wih_ref.dtype

    # ---- fused input projection for all timesteps & both directions (one matmul).
    # x feature layout: [text|audio|video @ t  ||  text|audio|video @ T-1-t]; wih
    # routes the first half to forward-chain gate columns and the second half to
    # backward-chain columns, so the recurrence needs no per-step select/flip.
    x_flat = x_ref[...].reshape(T * Bt, IN2).astype(mdt)
    xp = jnp.dot(x_flat, wih_ref[...], preferred_element_type=f32) + b_ref[...]

    # ---- fused recurrence: one (Bt,128)@(128,512) matmul + one 512-wide tanh per
    # step drives all 6 chains (3 modalities x 2 directions).  Gate slices are
    # 128-lane aligned; sigmoid(z) = 0.5*tanh(z/2)+0.5 with i/f/o pre-scaled 0.5.
    whh = whh_ref[...]
    h = jnp.zeros((Bt, SHP), f32)
    c = jnp.zeros((Bt, SHP), f32)
    for t in range(T):   # T is small & static; TODO(synk): lax.fori_loop for large T
        gates = xp[t * Bt:(t + 1) * Bt, :] + jnp.dot(
            h.astype(whh.dtype), whh, preferred_element_type=f32)
        tg = jnp.tanh(gates)
        i_g = 0.5 * tg[:, 0 * SHP:1 * SHP] + 0.5
        f_g = 0.5 * tg[:, 1 * SHP:2 * SHP] + 0.5
        g_g = tg[:, 2 * SHP:3 * SHP]
        o_g = 0.5 * tg[:, 3 * SHP:4 * SHP] + 0.5
        c = f_g * c + i_g * g_g
        h = o_g * jnp.tanh(c)

    # h columns: [t_fwd|t_bwd|a_fwd|a_bwd|v_fwd|v_bwd|pad]; first 3D = the contexts
    ctx3 = h[:, 0:3 * D]                                   # [text | audio | video]

    # ---- context attention: one matmul yields the 12 projections AND the 9
    # companion vectors; scores = elementwise product followed by an MXU reduction
    # against a block-ones matrix (no cross-lane reduces, no concats).
    proj_all = jnp.dot(h.astype(wctx_ref.dtype), wctx_ref[...],
                       preferred_element_type=f32)                     # (Bt, 21D)
    prod9 = proj_all[:, 0:9 * D] * proj_all[:, 12 * D:21 * D]
    scores9 = jnp.dot(prod9, s9_ref[...], preferred_element_type=f32)  # (Bt, 16)

    # ---- inter capsules via score-broadcast matmul + fold matmul (MXU, not XLU)
    ctx_tile = jnp.concatenate([ctx3, ctx3, ctx3, ctx3], axis=-1)      # (Bt, 12D)
    bw_i = jnp.dot(scores9, repi_ref[...], preferred_element_type=f32)  # (Bt, 12D)
    inter_cat = jnp.dot(bw_i * ctx_tile, foldi_ref[...],
                        preferred_element_type=f32)                    # (Bt, 4D)

    cap_slab = jnp.concatenate([ctx3, inter_cat], axis=-1)             # (Bt, 7D)
    s_all = jnp.dot(cap_slab, foldd_ref[...], preferred_element_type=f32)  # (Bt, D)

    # ---- the 7 *_deci scores: each projected capsule dotted with (s_all - self)
    proj_i = jnp.dot(inter_cat.astype(winter_ref.dtype), winter_ref[...],
                     preferred_element_type=f32)                       # (Bt, 4D)
    p_deci = jnp.concatenate([proj_all[:, 9 * D:12 * D], proj_i], axis=-1)
    q_deci = jnp.concatenate([s_all] * 7, axis=-1) - cap_slab
    scores7 = jnp.dot(p_deci * q_deci, s7_ref[...], preferred_element_type=f32)

    scores = scores9 + scores7
    atts_ref[...] = scores          # lane-dense (Bt, 16), packed column order in header

    # ---- deci capsule = sum_k score_k * capsule_k via broadcast + fold matmuls
    bw_d = jnp.dot(scores, repd_ref[...], preferred_element_type=f32)  # (Bt, 7D)
    deci = jnp.dot(bw_d * cap_slab, foldd_ref[...], preferred_element_type=f32)

    # ---- classification head
    out1 = jnp.tanh(jnp.dot(deci.astype(fc1w_ref.dtype), fc1w_ref[...],
                            preferred_element_type=f32) + fc1b_ref[...])
    preds = jnp.dot(out1.astype(fc2w_ref.dtype), fc2w_ref[...],
                    preferred_element_type=f32) + fc2b_ref[...]
    if final_tanh:                                # dataset == 'iemocap' branch
        preds = jnp.tanh(preds)
    preds_ref[...] = preds


# --------------------------------------------------------------------------- #
# Parameters (synthetic, shapes follow ATT.__init__) and host-side fusion
# --------------------------------------------------------------------------- #
_ATT_W_NAMES = ("Wt_a", "Wt_v", "Wt_av", "Wt_deci",
                "Wa_t", "Wa_v", "Wa_tv", "Wa_deci",
                "Wv_t", "Wv_a", "Wv_ta", "Wv_deci",
                "Wta_deci", "Wtv_deci", "Wav_deci", "Wtav_deci")


def init_params(key, dim_capsule, label_dim, t_in, a_in, v_in):
    """Deterministic synthetic parameters matching the torch module's shapes.
    LSTM weights are stored right-multiply (y = x @ W), gate order [i, f, g, o],
    biases folded (b_ih + b_hh)."""
    D = dim_capsule
    H = D // 2
    keys = iter(jax.random.split(key, 64))

    def nrm(shape, scale=0.1):
        return (scale * jax.random.normal(next(keys), shape)).astype(jnp.float32)

    p = {}
    for name, in_dim in (("t", t_in), ("a", a_in), ("v", v_in)):
        p[f"wih_{name}"] = nrm((2, in_dim, 4 * H))   # dir 0 = fwd, dir 1 = bwd
        p[f"whh_{name}"] = nrm((2, H, 4 * H))
        p[f"b_{name}"] = nrm((2, 1, 4 * H))
    xav = (2.0 / (D + D)) ** 0.5                      # xavier_normal std
    for w in _ATT_W_NAMES:
        p[w] = (xav * jax.random.normal(next(keys), (D, D))).astype(jnp.float32)
    p["fc1_w"] = nrm((D, H))
    p["fc1_b"] = nrm((1, H))
    p["fc2_w"] = nrm((H, label_dim))
    p["fc2_b"] = nrm((1, label_dim))
    return p


def fuse_params(p, dim_capsule, t_in, a_in, v_in, matmul_dtype=jnp.bfloat16):
    """Pack per-module weights into the fused, lane-aligned layouts the kernel uses."""
    D = dim_capsule
    H = D // 2
    in_dims = (t_in, a_in, v_in)
    IN = sum(in_dims)
    row_off = (0, t_in, t_in + a_in)

    # --- fused LSTM weights: 6 chains packed block-diagonally; gate groups padded
    #     to 128 lanes; forward chains read the first IN input features, backward
    #     chains the second (time-reversed) IN features.
    wih = np.zeros((2 * IN, GW), np.float32)
    whh = np.zeros((SHP, GW), np.float32)
    bias = np.zeros((1, GW), np.float32)
    for m, name in enumerate(("t", "a", "v")):
        wih_m = np.asarray(p[f"wih_{name}"], np.float32)
        whh_m = np.asarray(p[f"whh_{name}"], np.float32)
        b_m = np.asarray(p[f"b_{name}"], np.float32)
        for d in range(2):                       # 0 = forward, 1 = backward
            ch = 2 * m + d
            rows = slice(d * IN + row_off[m], d * IN + row_off[m] + in_dims[m])
            for g in range(4):                   # i, f, g, o
                cols = slice(g * SHP + ch * H, g * SHP + (ch + 1) * H)
                s = _GATE_SCALE[g]
                wih[rows, cols] = s * wih_m[d][:, g * H:(g + 1) * H]
                whh[ch * H:(ch + 1) * H, cols] = s * whh_m[d][:, g * H:(g + 1) * H]
                bias[:, cols] = s * b_m[d][:, g * H:(g + 1) * H]

    eye = np.eye(D, dtype=np.float32)

    # --- context projections + companion selectors in one (128, 21D) matrix:
    #     cols 0..8  : 9 cross-modal projections, cols 9..11: W{t,a,v}_deci,
    #     cols 12..20: companion selectors aligned with cols 0..8.
    proj_defs = [  # (owner ctx, weight name, companion ctx indices)
        (0, "Wt_a", (1,)), (0, "Wt_v", (2,)), (0, "Wt_av", (1, 2)),
        (1, "Wa_t", (0,)), (1, "Wa_v", (2,)), (1, "Wa_tv", (0, 2)),
        (2, "Wv_t", (0,)), (2, "Wv_a", (1,)), (2, "Wv_ta", (0, 1)),
    ]
    wctx = np.zeros((SHP, 21 * D), np.float32)
    for k, (owner, wname, comps) in enumerate(proj_defs):
        wctx[owner * D:(owner + 1) * D, k * D:(k + 1) * D] = np.asarray(p[wname])
        for cidx in comps:
            wctx[cidx * D:(cidx + 1) * D, (12 + k) * D:(13 + k) * D] = eye
    for j, (owner, wname) in enumerate(((0, "Wt_deci"), (1, "Wa_deci"),
                                        (2, "Wv_deci"))):
        wctx[owner * D:(owner + 1) * D, (9 + j) * D:(10 + j) * D] = np.asarray(p[wname])

    winter = np.zeros((4 * D, 4 * D), np.float32)
    for j, wname in enumerate(("Wta_deci", "Wtv_deci", "Wav_deci", "Wtav_deci")):
        winter[j * D:(j + 1) * D, j * D:(j + 1) * D] = np.asarray(p[wname])

    # packed score column order (matches kernel output)
    col9 = (0, 1, 2, 4, 5, 6, 8, 9, 10)        # t_a,t_v,t_av,a_t,a_v,a_tv,v_t,v_a,v_ta
    col7 = (3, 7, 11, 12, 13, 14, 15)          # t/a/v_deci, ta/tv/av/tav_deci
    s9 = np.zeros((9 * D, 16), np.float32)
    for k, cidx in enumerate(col9):
        s9[k * D:(k + 1) * D, cidx] = 1.0
    s7 = np.zeros((7 * D, 16), np.float32)
    for k, cidx in enumerate(col7):
        s7[k * D:(k + 1) * D, cidx] = 1.0

    # inter capsules: inter_j = sum_m score_{sigma(j,m)} * ctx_m
    sigma = {(0, 0): 0, (0, 1): 4, (1, 0): 1, (1, 2): 8,
             (2, 1): 5, (2, 2): 9, (3, 0): 2, (3, 1): 6, (3, 2): 10}
    repi = np.zeros((16, 12 * D), np.float32)
    foldi = np.zeros((12 * D, 4 * D), np.float32)
    for j in range(4):
        for m in range(3):
            blk = j * 3 + m
            foldi[blk * D:(blk + 1) * D, j * D:(j + 1) * D] = eye
            if (j, m) in sigma:
                repi[sigma[(j, m)], blk * D:(blk + 1) * D] = 1.0

    # deci = sum_k score_{col7[k]} * capsule_k, capsules = [text,audio,video,inter*4]
    repd = np.zeros((16, 7 * D), np.float32)
    for k, cidx in enumerate(col7):
        repd[cidx, k * D:(k + 1) * D] = 1.0
    foldd = np.zeros((7 * D, D), np.float32)
    for k in range(7):
        foldd[k * D:(k + 1) * D, :] = eye

    mm = lambda a: jnp.asarray(a, matmul_dtype)
    f32 = lambda a: jnp.asarray(a, jnp.float32)
    return {
        "wih": mm(wih), "whh": mm(whh), "b": f32(bias),
        "wctx": mm(wctx), "winter": mm(winter),
        "s9": f32(s9), "s7": f32(s7),
        "repi": f32(repi), "foldi": f32(foldi),
        "repd": f32(repd), "foldd": f32(foldd),
        "fc1_w": mm(np.asarray(p["fc1_w"])), "fc1_b": f32(np.asarray(p["fc1_b"])),
        "fc2_w": mm(np.asarray(p["fc2_w"])), "fc2_b": f32(np.asarray(p["fc2_b"])),
    }


# --------------------------------------------------------------------------- #
# Public forward (batch-first inputs, like the torch module)
# --------------------------------------------------------------------------- #
@functools.partial(jax.jit, static_argnames=("dim_capsule", "label_dim", "final_tanh"))
def att_forward(fused, text, audio, video, *, dim_capsule, label_dim,
                final_tanh=False):
    B, T, _ = text.shape
    # TODO(synk): the fused encoder assumes equal (un-packed) sequence lengths
    # across the three modalities, like the reference forward().
    assert audio.shape[:2] == (B, T) and video.shape[:2] == (B, T)

    # time-major input with forward || time-reversed features: one small fused XLA
    # copy over the tiny inputs, so the kernel recurrence needs no per-step work.
    x = jnp.concatenate([text, audio, video], axis=-1).astype(jnp.float32)
    x = jnp.concatenate([x, x[:, ::-1, :]], axis=-1)          # (B, T, 2*IN)
    x = jnp.transpose(x, (1, 0, 2))                           # (T, B, 2*IN)
    IN2 = x.shape[-1]

    # Batch tiling: one big tile (up to 256 rows = full MXU fill), always a multiple
    # of 8 (batch zero-padded).  For larger batches use >=2 blocks so the "parallel"
    # grid axis can shard across v7x's two TensorCores.
    MAX_TILE = 256
    nb = max(1, -(-B // MAX_TILE))
    if B >= 128:
        nb = max(nb, 2)
    b_tile = ((-(-B // nb)) + 7) // 8 * 8
    B_pad = nb * b_tile
    if B_pad != B:
        x = jnp.pad(x, ((0, 0), (0, B_pad - B), (0, 0)))

    weights = (fused["wih"], fused["whh"], fused["b"], fused["wctx"], fused["winter"],
               fused["s9"], fused["s7"], fused["repi"], fused["foldi"],
               fused["repd"], fused["foldd"],
               fused["fc1_w"], fused["fc1_b"], fused["fc2_w"], fused["fc2_b"])
    weight_specs = [pl.BlockSpec(tuple(w.shape), lambda i: (0, 0)) for w in weights]

    D = dim_capsule
    H = D // 2
    flops = 2 * B_pad * (T * IN2 * GW + T * SHP * GW + SHP * 21 * D
                         + 9 * D * 16 + 16 * 12 * D + 12 * D * 4 * D
                         + 2 * 7 * D * D + (4 * D) ** 2 + 7 * D * 16
                         + 16 * 7 * D + D * H + H * label_dim)
    transcendentals = B_pad * (T * (GW + SHP) + H)
    bytes_accessed = int(x.size * x.dtype.itemsize
                         + sum(int(w.size) * w.dtype.itemsize for w in weights)
                         + B_pad * (label_dim + 16) * 4)

    kernel = functools.partial(att_kernel, dim_capsule=D, final_tanh=final_tanh)
    preds, atts = pl.pallas_call(
        kernel,
        out_shape=(jax.ShapeDtypeStruct((B_pad, label_dim), jnp.float32),
                   jax.ShapeDtypeStruct((B_pad, 16), jnp.float32)),
        grid=(nb,),
        in_specs=[pl.BlockSpec((T, b_tile, IN2), lambda i: (0, i, 0))] + weight_specs,
        out_specs=(pl.BlockSpec((b_tile, label_dim), lambda i: (i, 0)),
                   pl.BlockSpec((b_tile, 16), lambda i: (i, 0))),
        compiler_params=pltpu.CompilerParams(
            dimension_semantics=("parallel",),
            vmem_limit_bytes=32 * 1024 * 1024),
        cost_estimate=pl.CostEstimate(flops=flops,
                                      transcendentals=transcendentals,
                                      bytes_accessed=bytes_accessed),
    )(x, *weights)
    return preds[:B], atts[:B]


# --------------------------------------------------------------------------- #
if __name__ == "__main__":
    B = 2
    dim_capsule = 32
    label_dim = 4
    t_in, a_in, v_in = 16, 12, 20
    T = 8

    key = jax.random.PRNGKey(0)
    k_p, k_t, k_a, k_v = jax.random.split(key, 4)
    params = init_params(k_p, dim_capsule, label_dim, t_in, a_in, v_in)
    fused = fuse_params(params, dim_capsule, t_in, a_in, v_in)

    text = jax.random.normal(k_t, (B, T, t_in), jnp.float32)
    audio = jax.random.normal(k_a, (B, T, a_in), jnp.float32)
    video = jax.random.normal(k_v, (B, T, v_in), jnp.float32)

    preds, atts = att_forward(fused, text, audio, video,
                              dim_capsule=dim_capsule, label_dim=label_dim,
                              final_tanh=False)   # dataset='mosi' branch
    jax.block_until_ready((preds, atts))
    assert preds.shape == (B, label_dim)
    assert atts.shape == (B, 16)
    assert bool(jnp.all(jnp.isfinite(preds)))
    assert bool(jnp.all(jnp.isfinite(atts)))
    print("KERNEL_OK")
</pallas_src>

<mosaic_0001>
module attributes {stable_mosaic.version = 11 : i64} {
  func.func @att_kernel(%arg0: i32, %arg1: memref<8x8x96xf32, #tpu.memory_space<vmem>>, %arg2: memref<96x512xbf16, #tpu.memory_space<vmem>>, %arg3: memref<128x512xbf16, #tpu.memory_space<vmem>>, %arg4: memref<1x512xf32, #tpu.memory_space<vmem>>, %arg5: memref<128x672xbf16, #tpu.memory_space<vmem>>, %arg6: memref<128x128xbf16, #tpu.memory_space<vmem>>, %arg7: memref<288x16xf32, #tpu.memory_space<vmem>>, %arg8: memref<224x16xf32, #tpu.memory_space<vmem>>, %arg9: memref<16x384xf32, #tpu.memory_space<vmem>>, %arg10: memref<384x128xf32, #tpu.memory_space<vmem>>, %arg11: memref<16x224xf32, #tpu.memory_space<vmem>>, %arg12: memref<224x32xf32, #tpu.memory_space<vmem>>, %arg13: memref<32x16xbf16, #tpu.memory_space<vmem>>, %arg14: memref<1x16xf32, #tpu.memory_space<vmem>>, %arg15: memref<16x4xbf16, #tpu.memory_space<vmem>>, %arg16: memref<1x4xf32, #tpu.memory_space<vmem>>, %arg17: memref<8x4xf32, #tpu.memory_space<vmem>>, %arg18: memref<8x16xf32, #tpu.memory_space<vmem>>) attributes {dimension_semantics = [#tpu.dimension_semantics<parallel>], iteration_bounds = array<i64: 1>, scalar_prefetch = 0 : i64, scratch_operands = 0 : i64, tpu.core_type = #tpu.core_type<tc>, window_params = [{transform_indices = @transform_0, window_bounds = array<i64: 8, 8, 96>}, {pipeline_mode = #tpu.pipeline_mode<synchronous>, transform_indices = @transform_1, window_bounds = array<i64: 96, 512>}, {pipeline_mode = #tpu.pipeline_mode<synchronous>, transform_indices = @transform_2, window_bounds = array<i64: 128, 512>}, {pipeline_mode = #tpu.pipeline_mode<synchronous>, transform_indices = @transform_3, window_bounds = array<i64: 1, 512>}, {pipeline_mode = #tpu.pipeline_mode<synchronous>, transform_indices = @transform_4, window_bounds = array<i64: 128, 672>}, {pipeline_mode = #tpu.pipeline_mode<synchronous>, transform_indices = @transform_5, window_bounds = array<i64: 128, 128>}, {pipeline_mode = #tpu.pipeline_mode<synchronous>, transform_indices = @transform_6, window_bounds = array<i64: 288, 16>}, {pipeline_mode = #tpu.pipeline_mode<synchronous>, transform_indices = @transform_7, window_bounds = array<i64: 224, 16>}, {pipeline_mode = #tpu.pipeline_mode<synchronous>, transform_indices = @transform_8, window_bounds = array<i64: 16, 384>}, {pipeline_mode = #tpu.pipeline_mode<synchronous>, transform_indices = @transform_9, window_bounds = array<i64: 384, 128>}, {pipeline_mode = #tpu.pipeline_mode<synchronous>, transform_indices = @transform_10, window_bounds = array<i64: 16, 224>}, {pipeline_mode = #tpu.pipeline_mode<synchronous>, transform_indices = @transform_11, window_bounds = array<i64: 224, 32>}, {pipeline_mode = #tpu.pipeline_mode<synchronous>, transform_indices = @transform_12, window_bounds = array<i64: 32, 16>}, {pipeline_mode = #tpu.pipeline_mode<synchronous>, transform_indices = @transform_13, window_bounds = array<i64: 1, 16>}, {pipeline_mode = #tpu.pipeline_mode<synchronous>, transform_indices = @transform_14, window_bounds = array<i64: 16, 4>}, {pipeline_mode = #tpu.pipeline_mode<synchronous>, transform_indices = @transform_15, window_bounds = array<i64: 1, 4>}, {transform_indices = @transform_16, window_bounds = array<i64: 8, 4>}, {transform_indices = @transform_17, window_bounds = array<i64: 8, 16>}]} {
    %c0 = arith.constant 0 : index
    %c0_0 = arith.constant 0 : index
    %c0_1 = arith.constant 0 : index
    %0 = vector.load %arg1[%c0, %c0_0, %c0_1] : memref<8x8x96xf32, #tpu.memory_space<vmem>>, vector<8x8x96xf32>
    %1 = vector.shape_cast %0 : vector<8x8x96xf32> to vector<64x96xf32>
    %2 = arith.truncf %1 : vector<64x96xf32> to vector<64x96xbf16>
    %c0_2 = arith.constant 0 : index
    %c0_3 = arith.constant 0 : index
    %3 = vector.load %arg2[%c0_2, %c0_3] : memref<96x512xbf16, #tpu.memory_space<vmem>>, vector<96x512xbf16>
    %cst = arith.constant dense<0.000000e+00> : vector<64x512xf32>
    %4 = tpu.matmul %2, %3, %cst {dimension_numbers = #tpu.dot_dimension_numbers<[1], [0], [0], [1], [0, 0, 1, 1], [], []>} : vector<64x96xbf16>, vector<96x512xbf16>, vector<64x512xf32> -> vector<64x512xf32>
    %c0_4 = arith.constant 0 : index
    %c0_5 = arith.constant 0 : index
    %5 = vector.load %arg4[%c0_4, %c0_5] : memref<1x512xf32, #tpu.memory_space<vmem>>, vector<1x512xf32>
    %6 = vector.broadcast %5 : vector<1x512xf32> to vector<64x512xf32>
    %7 = arith.addf %4, %6 : vector<64x512xf32>
    %c0_6 = arith.constant 0 : index
    %c0_7 = arith.constant 0 : index
    %8 = vector.load %arg3[%c0_6, %c0_7] : memref<128x512xbf16, #tpu.memory_space<vmem>>, vector<128x512xbf16>
    %cst_8 = arith.constant 0.000000e+00 : f32
    %9 = vector.broadcast %cst_8 : f32 to vector<8x128xf32>
    %cst_9 = arith.constant 0.000000e+00 : f32
    %10 = vector.broadcast %cst_9 : f32 to vector<8x128xf32>
    %11 = vector.extract_strided_slice %7 {offsets = [0, 0], sizes = [8, 512], strides = [1, 1]} : vector<64x512xf32> to vector<8x512xf32>
    %12 = arith.truncf %9 : vector<8x128xf32> to vector<8x128xbf16>
    %cst_10 = arith.constant dense<0.000000e+00> : vector<8x512xf32>
    %13 = tpu.matmul %12, %8, %cst_10 {dimension_numbers = #tpu.dot_dimension_numbers<[1], [0], [0], [1], [0, 0, 1, 1], [], []>} : vector<8x128xbf16>, vector<128x512xbf16>, vector<8x512xf32> -> vector<8x512xf32>
    %14 = arith.addf %11, %13 : vector<8x512xf32>
    %15 = math.tanh %14 : vector<8x512xf32>
    %16 = vector.extract_strided_slice %15 {offsets = [0, 0], sizes = [8, 128], strides = [1, 1]} : vector<8x512xf32> to vector<8x128xf32>
    %cst_11 = arith.constant 5.000000e-01 : f32
    %17 = vector.broadcast %cst_11 : f32 to vector<8x128xf32>
    %18 = arith.mulf %17, %16 : vector<8x128xf32>
    %cst_12 = arith.constant 5.000000e-01 : f32
    %19 = vector.broadcast %cst_12 : f32 to vector<8x128xf32>
    %20 = arith.addf %18, %19 : vector<8x128xf32>
    %21 = vector.extract_strided_slice %15 {offsets = [0, 128], sizes = [8, 128], strides = [1, 1]} : vector<8x512xf32> to vector<8x128xf32>
    %cst_13 = arith.constant 5.000000e-01 : f32
    %22 = vector.broadcast %cst_13 : f32 to vector<8x128xf32>
    %23 = arith.mulf %22, %21 : vector<8x128xf32>
    %cst_14 = arith.constant 5.000000e-01 : f32
    %24 = vector.broadcast %cst_14 : f32 to vector<8x128xf32>
    %25 = arith.addf %23, %24 : vector<8x128xf32>
    %26 = vector.extract_strided_slice %15 {offsets = [0, 256], sizes = [8, 128], strides = [1, 1]} : vector<8x512xf32> to vector<8x128xf32>
    %27 = vector.extract_strided_slice %15 {offsets = [0, 384], sizes = [8, 128], strides = [1, 1]} : vector<8x512xf32> to vector<8x128xf32>
    %cst_15 = arith.constant 5.000000e-01 : f32
    %28 = vector.broadcast %cst_15 : f32 to vector<8x128xf32>
    %29 = arith.mulf %28, %27 : vector<8x128xf32>
    %cst_16 = arith.constant 5.000000e-01 : f32
    %30 = vector.broadcast %cst_16 : f32 to vector<8x128xf32>
    %31 = arith.addf %29, %30 : vector<8x128xf32>
    %32 = arith.mulf %25, %10 : vector<8x128xf32>
    %33 = arith.mulf %20, %26 : vector<8x128xf32>
    %34 = arith.addf %32, %33 : vector<8x128xf32>
    %35 = math.tanh %34 : vector<8x128xf32>
    %36 = arith.mulf %31, %35 : vector<8x128xf32>
    %37 = vector.extract_strided_slice %7 {offsets = [8, 0], sizes = [8, 512], strides = [1, 1]} : vector<64x512xf32> to vector<8x512xf32>
    %38 = arith.truncf %36 : vector<8x128xf32> to vector<8x128xbf16>
    %cst_17 = arith.constant dense<0.000000e+00> : vector<8x512xf32>
    %39 = tpu.matmul %38, %8, %cst_17 {dimension_numbers = #tpu.dot_dimension_numbers<[1], [0], [0], [1], [0, 0, 1, 1], [], []>} : vector<8x128xbf16>, vector<128x512xbf16>, vector<8x512xf32> -> vector<8x512xf32>
    %40 = arith.addf %37, %39 : vector<8x512xf32>
    %41 = math.tanh %40 : vector<8x512xf32>
    %42 = vector.extract_strided_slice %41 {offsets = [0, 0], sizes = [8, 128], strides = [1, 1]} : vector<8x512xf32> to vector<8x128xf32>
    %cst_18 = arith.constant 5.000000e-01 : f32
    %43 = vector.broadcast %cst_18 : f32 to vector<8x128xf32>
    %44 = arith.mulf %43, %42 : vector<8x128xf32>
    %cst_19 = arith.constant 5.000000e-01 : f32
    %45 = vector.broadcast %cst_19 : f32 to vector<8x128xf32>
    %46 = arith.addf %44, %45 : vector<8x128xf32>
    %47 = vector.extract_strided_slice %41 {offsets = [0, 128], sizes = [8, 128], strides = [1, 1]} : vector<8x512xf32> to vector<8x128xf32>
    %cst_20 = arith.constant 5.000000e-01 : f32
    %48 = vector.broadcast %cst_20 : f32 to vector<8x128xf32>
    %49 = arith.mulf %48, %47 : vector<8x128xf32>
    %cst_21 = arith.constant 5.000000e-01 : f32
    %50 = vector.broadcast %cst_21 : f32 to vector<8x128xf32>
    %51 = arith.addf %49, %50 : vector<8x128xf32>
    %52 = vector.extract_strided_slice %41 {offsets = [0, 256], sizes = [8, 128], strides = [1, 1]} : vector<8x512xf32> to vector<8x128xf32>
    %53 = vector.extract_strided_slice %41 {offsets = [0, 384], sizes = [8, 128], strides = [1, 1]} : vector<8x512xf32> to vector<8x128xf32>
    %cst_22 = arith.constant 5.000000e-01 : f32
    %54 = vector.broadcast %cst_22 : f32 to vector<8x128xf32>
    %55 = arith.mulf %54, %53 : vector<8x128xf32>
    %cst_23 = arith.constant 5.000000e-01 : f32
    %56 = vector.broadcast %cst_23 : f32 to vector<8x128xf32>
    %57 = arith.addf %55, %56 : vector<8x128xf32>
    %58 = arith.mulf %51, %34 : vector<8x128xf32>
    %59 = arith.mulf %46, %52 : vector<8x128xf32>
    %60 = arith.addf %58, %59 : vector<8x128xf32>
    %61 = math.tanh %60 : vector<8x128xf32>
    %62 = arith.mulf %57, %61 : vector<8x128xf32>
    %63 = vector.extract_strided_slice %7 {offsets = [16, 0], sizes = [8, 512], strides = [1, 1]} : vector<64x512xf32> to vector<8x512xf32>
    %64 = arith.truncf %62 : vector<8x128xf32> to vector<8x128xbf16>
    %cst_24 = arith.constant dense<0.000000e+00> : vector<8x512xf32>
    %65 = tpu.matmul %64, %8, %cst_24 {dimension_numbers = #tpu.dot_dimension_numbers<[1], [0], [0], [1], [0, 0, 1, 1], [], []>} : vector<8x128xbf16>, vector<128x512xbf16>, vector<8x512xf32> -> vector<8x512xf32>
    %66 = arith.addf %63, %65 : vector<8x512xf32>
    %67 = math.tanh %66 : vector<8x512xf32>
    %68 = vector.extract_strided_slice %67 {offsets = [0, 0], sizes = [8, 128], strides = [1, 1]} : vector<8x512xf32> to vector<8x128xf32>
    %cst_25 = arith.constant 5.000000e-01 : f32
    %69 = vector.broadcast %cst_25 : f32 to vector<8x128xf32>
    %70 = arith.mulf %69, %68 : vector<8x128xf32>
    %cst_26 = arith.constant 5.000000e-01 : f32
    %71 = vector.broadcast %cst_26 : f32 to vector<8x128xf32>
    %72 = arith.addf %70, %71 : vector<8x128xf32>
    %73 = vector.extract_strided_slice %67 {offsets = [0, 128], sizes = [8, 128], strides = [1, 1]} : vector<8x512xf32> to vector<8x128xf32>
    %cst_27 = arith.constant 5.000000e-01 : f32
    %74 = vector.broadcast %cst_27 : f32 to vector<8x128xf32>
    %75 = arith.mulf %74, %73 : vector<8x128xf32>
    %cst_28 = arith.constant 5.000000e-01 : f32
    %76 = vector.broadcast %cst_28 : f32 to vector<8x128xf32>
    %77 = arith.addf %75, %76 : vector<8x128xf32>
    %78 = vector.extract_strided_slice %67 {offsets = [0, 256], sizes = [8, 128], strides = [1, 1]} : vector<8x512xf32> to vector<8x128xf32>
    %79 = vector.extract_strided_slice %67 {offsets = [0, 384], sizes = [8, 128], strides = [1, 1]} : vector<8x512xf32> to vector<8x128xf32>
    %cst_29 = arith.constant 5.000000e-01 : f32
    %80 = vector.broadcast %cst_29 : f32 to vector<8x128xf32>
    %81 = arith.mulf %80, %79 : vector<8x128xf32>
    %cst_30 = arith.constant 5.000000e-01 : f32
    %82 = vector.broadcast %cst_30 : f32 to vector<8x128xf32>
    %83 = arith.addf %81, %82 : vector<8x128xf32>
    %84 = arith.mulf %77, %60 : vector<8x128xf32>
    %85 = arith.mulf %72, %78 : vector<8x128xf32>
    %86 = arith.addf %84, %85 : vector<8x128xf32>
    %87 = math.tanh %86 : vector<8x128xf32>
    %88 = arith.mulf %83, %87 : vector<8x128xf32>
    %89 = vector.extract_strided_slice %7 {offsets = [24, 0], sizes = [8, 512], strides = [1, 1]} : vector<64x512xf32> to vector<8x512xf32>
    %90 = arith.truncf %88 : vector<8x128xf32> to vector<8x128xbf16>
    %cst_31 = arith.constant dense<0.000000e+00> : vector<8x512xf32>
    %91 = tpu.matmul %90, %8, %cst_31 {dimension_numbers = #tpu.dot_dimension_numbers<[1], [0], [0], [1], [0, 0, 1, 1], [], []>} : vector<8x128xbf16>, vector<128x512xbf16>, vector<8x512xf32> -> vector<8x512xf32>
    %92 = arith.addf %89, %91 : vector<8x512xf32>
    %93 = math.tanh %92 : vector<8x512xf32>
    %94 = vector.extract_strided_slice %93 {offsets = [0, 0], sizes = [8, 128], strides = [1, 1]} : vector<8x512xf32> to vector<8x128xf32>
    %cst_32 = arith.constant 5.000000e-01 : f32
    %95 = vector.broadcast %cst_32 : f32 to vector<8x128xf32>
    %96 = arith.mulf %95, %94 : vector<8x128xf32>
    %cst_33 = arith.constant 5.000000e-01 : f32
    %97 = vector.broadcast %cst_33 : f32 to vector<8x128xf32>
    %98 = arith.addf %96, %97 : vector<8x128xf32>
    %99 = vector.extract_strided_slice %93 {offsets = [0, 128], sizes = [8, 128], strides = [1, 1]} : vector<8x512xf32> to vector<8x128xf32>
    %cst_34 = arith.constant 5.000000e-01 : f32
    %100 = vector.broadcast %cst_34 : f32 to vector<8x128xf32>
    %101 = arith.mulf %100, %99 : vector<8x128xf32>
    %cst_35 = arith.constant 5.000000e-01 : f32
    %102 = vector.broadcast %cst_35 : f32 to vector<8x128xf32>
    %103 = arith.addf %101, %102 : vector<8x128xf32>
    %104 = vector.extract_strided_slice %93 {offsets = [0, 256], sizes = [8, 128], strides = [1, 1]} : vector<8x512xf32> to vector<8x128xf32>
    %105 = vector.extract_strided_slice %93 {offsets = [0, 384], sizes = [8, 128], strides = [1, 1]} : vector<8x512xf32> to vector<8x128xf32>
    %cst_36 = arith.constant 5.000000e-01 : f32
    %106 = vector.broadcast %cst_36 : f32 to vector<8x128xf32>
    %107 = arith.mulf %106, %105 : vector<8x128xf32>
    %cst_37 = arith.constant 5.000000e-01 : f32
    %108 = vector.broadcast %cst_37 : f32 to vector<8x128xf32>
    %109 = arith.addf %107, %108 : vector<8x128xf32>
    %110 = arith.mulf %103, %86 : vector<8x128xf32>
    %111 = arith.mulf %98, %104 : vector<8x128xf32>
    %112 = arith.addf %110, %111 : vector<8x128xf32>
    %113 = math.tanh %112 : vector<8x128xf32>
    %114 = arith.mulf %109, %113 : vector<8x128xf32>
    %115 = vector.extract_strided_slice %7 {offsets = [32, 0], sizes = [8, 512], strides = [1, 1]} : vector<64x512xf32> to vector<8x512xf32>
    %116 = arith.truncf %114 : vector<8x128xf32> to vector<8x128xbf16>
    %cst_38 = arith.constant dense<0.000000e+00> : vector<8x512xf32>
    %117 = tpu.matmul %116, %8, %cst_38 {dimension_numbers = #tpu.dot_dimension_numbers<[1], [0], [0], [1], [0, 0, 1, 1], [], []>} : vector<8x128xbf16>, vector<128x512xbf16>, vector<8x512xf32> -> vector<8x512xf32>
    %118 = arith.addf %115, %117 : vector<8x512xf32>
    %119 = math.tanh %118 : vector<8x512xf32>
    %120 = vector.extract_strided_slice %119 {offsets = [0, 0], sizes = [8, 128], strides = [1, 1]} : vector<8x512xf32> to vector<8x128xf32>
    %cst_39 = arith.constant 5.000000e-01 : f32
    %121 = vector.broadcast %cst_39 : f32 to vector<8x128xf32>
    %122 = arith.mulf %121, %120 : vector<8x128xf32>
    %cst_40 = arith.constant 5.000000e-01 : f32
    %123 = vector.broadcast %cst_40 : f32 to vector<8x128xf32>
    %124 = arith.addf %122, %123 : vector<8x128xf32>
    %125 = vector.extract_strided_slice %119 {offsets = [0, 128], sizes = [8, 128], strides = [1, 1]} : vector<8x512xf32> to vector<8x128xf32>
    %cst_41 = arith.constant 5.000000e-01 : f32
    %126 = vector.broadcast %cst_41 : f32 to vector<8x128xf32>
    %127 = arith.mulf %126, %125 : vector<8x128xf32>
    %cst_42 = arith.constant 5.000000e-01 : f32
    %128 = vector.broadcast %cst_42 : f32 to vector<8x128xf32>
    %129 = arith.addf %127, %128 : vector<8x128xf32>
    %130 = vector.extract_strided_slice %119 {offsets = [0, 256], sizes = [8, 128], strides = [1, 1]} : vector<8x512xf32> to vector<8x128xf32>
    %131 = vector.extract_strided_slice %119 {offsets = [0, 384], sizes = [8, 128], strides = [1, 1]} : vector<8x512xf32> to vector<8x128xf32>
    %cst_43 = arith.constant 5.000000e-01 : f32
    %132 = vector.broadcast %cst_43 : f32 to vector<8x128xf32>
    %133 = arith.mulf %132, %131 : vector<8x128xf32>
    %cst_44 = arith.constant 5.000000e-01 : f32
    %134 = vector.broadcast %cst_44 : f32 to vector<8x128xf32>
    %135 = arith.addf %133, %134 : vector<8x128xf32>
    %136 = arith.mulf %129, %112 : vector<8x128xf32>
    %137 = arith.mulf %124, %130 : vector<8x128xf32>
    %138 = arith.addf %136, %137 : vector<8x128xf32>
    %139 = math.tanh %138 : vector<8x128xf32>
    %140 = arith.mulf %135, %139 : vector<8x128xf32>
    %141 = vector.extract_strided_slice %7 {offsets = [40, 0], sizes = [8, 512], strides = [1, 1]} : vector<64x512xf32> to vector<8x512xf32>
    %142 = arith.truncf %140 : vector<8x128xf32> to vector<8x128xbf16>
    %cst_45 = arith.constant dense<0.000000e+00> : vector<8x512xf32>
    %143 = tpu.matmul %142, %8, %cst_45 {dimension_numbers = #tpu.dot_dimension_numbers<[1], [0], [0], [1], [0, 0, 1, 1], [], []>} : vector<8x128xbf16>, vector<128x512xbf16>, vector<8x512xf32> -> vector<8x512xf32>
    %144 = arith.addf %141, %143 : vector<8x512xf32>
    %145 = math.tanh %144 : vector<8x512xf32>
    %146 = vector.extract_strided_slice %145 {offsets = [0, 0], sizes = [8, 128], strides = [1, 1]} : vector<8x512xf32> to vector<8x128xf32>
    %cst_46 = arith.constant 5.000000e-01 : f32
    %147 = vector.broadcast %cst_46 : f32 to vector<8x128xf32>
    %148 = arith.mulf %147, %146 : vector<8x128xf32>
    %cst_47 = arith.constant 5.000000e-01 : f32
    %149 = vector.broadcast %cst_47 : f32 to vector<8x128xf32>
    %150 = arith.addf %148, %149 : vector<8x128xf32>
    %151 = vector.extract_strided_slice %145 {offsets = [0, 128], sizes = [8, 128], strides = [1, 1]} : vector<8x512xf32> to vector<8x128xf32>
    %cst_48 = arith.constant 5.000000e-01 : f32
    %152 = vector.broadcast %cst_48 : f32 to vector<8x128xf32>
    %153 = arith.mulf %152, %151 : vector<8x128xf32>
    %cst_49 = arith.constant 5.000000e-01 : f32
    %154 = vector.broadcast %cst_49 : f32 to vector<8x128xf32>
    %155 = arith.addf %153, %154 : vector<8x128xf32>
    %156 = vector.extract_strided_slice %145 {offsets = [0, 256], sizes = [8, 128], strides = [1, 1]} : vector<8x512xf32> to vector<8x128xf32>
    %157 = vector.extract_strided_slice %145 {offsets = [0, 384], sizes = [8, 128], strides = [1, 1]} : vector<8x512xf32> to vector<8x128xf32>
    %cst_50 = arith.constant 5.000000e-01 : f32
    %158 = vector.broadcast %cst_50 : f32 to vector<8x128xf32>
    %159 = arith.mulf %158, %157 : vector<8x128xf32>
    %cst_51 = arith.constant 5.000000e-01 : f32
    %160 = vector.broadcast %cst_51 : f32 to vector<8x128xf32>
    %161 = arith.addf %159, %160 : vector<8x128xf32>
    %162 = arith.mulf %155, %138 : vector<8x128xf32>
    %163 = arith.mulf %150, %156 : vector<8x128xf32>
    %164 = arith.addf %162, %163 : vector<8x128xf32>
    %165 = math.tanh %164 : vector<8x128xf32>
    %166 = arith.mulf %161, %165 : vector<8x128xf32>
    %167 = vector.extract_strided_slice %7 {offsets = [48, 0], sizes = [8, 512], strides = [1, 1]} : vector<64x512xf32> to vector<8x512xf32>
    %168 = arith.truncf %166 : vector<8x128xf32> to vector<8x128xbf16>
    %cst_52 = arith.constant dense<0.000000e+00> : vector<8x512xf32>
    %169 = tpu.matmul %168, %8, %cst_52 {dimension_numbers = #tpu.dot_dimension_numbers<[1], [0], [0], [1], [0, 0, 1, 1], [], []>} : vector<8x128xbf16>, vector<128x512xbf16>, vector<8x512xf32> -> vector<8x512xf32>
    %170 = arith.addf %167, %169 : vector<8x512xf32>
    %171 = math.tanh %170 : vector<8x512xf32>
    %172 = vector.extract_strided_slice %171 {offsets = [0, 0], sizes = [8, 128], strides = [1, 1]} : vector<8x512xf32> to vector<8x128xf32>
    %cst_53 = arith.constant 5.000000e-01 : f32
    %173 = vector.broadcast %cst_53 : f32 to vector<8x128xf32>
    %174 = arith.mulf %173, %172 : vector<8x128xf32>
    %cst_54 = arith.constant 5.000000e-01 : f32
    %175 = vector.broadcast %cst_54 : f32 to vector<8x128xf32>
    %176 = arith.addf %174, %175 : vector<8x128xf32>
    %177 = vector.extract_strided_slice %171 {offsets = [0, 128], sizes = [8, 128], strides = [1, 1]} : vector<8x512xf32> to vector<8x128xf32>
    %cst_55 = arith.constant 5.000000e-01 : f32
    %178 = vector.broadcast %cst_55 : f32 to vector<8x128xf32>
    %179 = arith.mulf %178, %177 : vector<8x128xf32>
    %cst_56 = arith.constant 5.000000e-01 : f32
    %180 = vector.broadcast %cst_56 : f32 to vector<8x128xf32>
    %181 = arith.addf %179, %180 : vector<8x128xf32>
    %182 = vector.extract_strided_slice %171 {offsets = [0, 256], sizes = [8, 128], strides = [1, 1]} : vector<8x512xf32> to vector<8x128xf32>
    %183 = vector.extract_strided_slice %171 {offsets = [0, 384], sizes = [8, 128], strides = [1, 1]} : vector<8x512xf32> to vector<8x128xf32>
    %cst_57 = arith.constant 5.000000e-01 : f32
    %184 = vector.broadcast %cst_57 : f32 to vector<8x128xf32>
    %185 = arith.mulf %184, %183 : vector<8x128xf32>
    %cst_58 = arith.constant 5.000000e-01 : f32
    %186 = vector.broadcast %cst_58 : f32 to vector<8x128xf32>
    %187 = arith.addf %185, %186 : vector<8x128xf32>
    %188 = arith.mulf %181, %164 : vector<8x128xf32>
    %189 = arith.mulf %176, %182 : vector<8x128xf32>
    %190 = arith.addf %188, %189 : vector<8x128xf32>
    %191 = math.tanh %190 : vector<8x128xf32>
    %192 = arith.mulf %187, %191 : vector<8x128xf32>
    %193 = vector.extract_strided_slice %7 {offsets = [56, 0], sizes = [8, 512], strides = [1, 1]} : vector<64x512xf32> to vector<8x512xf32>
    %194 = arith.truncf %192 : vector<8x128xf32> to vector<8x128xbf16>
    %cst_59 = arith.constant dense<0.000000e+00> : vector<8x512xf32>
    %195 = tpu.matmul %194, %8, %cst_59 {dimension_numbers = #tpu.dot_dimension_numbers<[1], [0], [0], [1], [0, 0, 1, 1], [], []>} : vector<8x128xbf16>, vector<128x512xbf16>, vector<8x512xf32> -> vector<8x512xf32>
    %196 = arith.addf %193, %195 : vector<8x512xf32>
    %197 = math.tanh %196 : vector<8x512xf32>
    %198 = vector.extract_strided_slice %197 {offsets = [0, 0], sizes = [8, 128], strides = [1, 1]} : vector<8x512xf32> to vector<8x128xf32>
    %cst_60 = arith.constant 5.000000e-01 : f32
    %199 = vector.broadcast %cst_60 : f32 to vector<8x128xf32>
    %200 = arith.mulf %199, %198 : vector<8x128xf32>
    %cst_61 = arith.constant 5.000000e-01 : f32
    %201 = vector.broadcast %cst_61 : f32 to vector<8x128xf32>
    %202 = arith.addf %200, %201 : vector<8x128xf32>
    %203 = vector.extract_strided_slice %197 {offsets = [0, 128], sizes = [8, 128], strides = [1, 1]} : vector<8x512xf32> to vector<8x128xf32>
    %cst_62 = arith.constant 5.000000e-01 : f32
    %204 = vector.broadcast %cst_62 : f32 to vector<8x128xf32>
    %205 = arith.mulf %204, %203 : vector<8x128xf32>
    %cst_63 = arith.constant 5.000000e-01 : f32
    %206 = vector.broadcast %cst_63 : f32 to vector<8x128xf32>
    %207 = arith.addf %205, %206 : vector<8x128xf32>
    %208 = vector.extract_strided_slice %197 {offsets = [0, 256], sizes = [8, 128], strides = [1, 1]} : vector<8x512xf32> to vector<8x128xf32>
    %209 = vector.extract_strided_slice %197 {offsets = [0, 384], sizes = [8, 128], strides = [1, 1]} : vector<8x512xf32> to vector<8x128xf32>
    %cst_64 = arith.constant 5.000000e-01 : f32
    %210 = vector.broadcast %cst_64 : f32 to vector<8x128xf32>
    %211 = arith.mulf %210, %209 : vector<8x128xf32>
    %cst_65 = arith.constant 5.000000e-01 : f32
    %212 = vector.broadcast %cst_65 : f32 to vector<8x128xf32>
    %213 = arith.addf %211, %212 : vector<8x128xf32>
    %214 = arith.mulf %207, %190 : vector<8x128xf32>
    %215 = arith.mulf %202, %208 : vector<8x128xf32>
    %216 = arith.addf %214, %215 : vector<8x128xf32>
    %217 = math.tanh %216 : vector<8x128xf32>
    %218 = arith.mulf %213, %217 : vector<8x128xf32>
    %219 = vector.extract_strided_slice %218 {offsets = [0, 0], sizes = [8, 96], strides = [1, 1]} : vector<8x128xf32> to vector<8x96xf32>
    %220 = arith.truncf %218 : vector<8x128xf32> to vector<8x128xbf16>
    %c0_66 = arith.constant 0 : index
    %c0_67 = arith.constant 0 : index
    %221 = vector.load %arg5[%c0_66, %c0_67] : memref<128x672xbf16, #tpu.memory_space<vmem>>, vector<128x672xbf16>
    %cst_68 = arith.constant dense<0.000000e+00> : vector<8x672xf32>
    %222 = tpu.matmul %220, %221, %cst_68 {dimension_numbers = #tpu.dot_dimension_numbers<[1], [0], [0], [1], [0, 0, 1, 1], [], []>} : vector<8x128xbf16>, vector<128x672xbf16>, vector<8x672xf32> -> vector<8x672xf32>
    %223 = vector.extract_strided_slice %222 {offsets = [0, 0], sizes = [8, 288], strides = [1, 1]} : vector<8x672xf32> to vector<8x288xf32>
    %224 = vector.extract_strided_slice %222 {offsets = [0, 384], sizes = [8, 288], strides = [1, 1]} : vector<8x672xf32> to vector<8x288xf32>
    %225 = arith.mulf %223, %224 : vector<8x288xf32>
    %c0_69 = arith.constant 0 : index
    %c0_70 = arith.constant 0 : index
    %226 = vector.load %arg7[%c0_69, %c0_70] : memref<288x16xf32, #tpu.memory_space<vmem>>, vector<288x16xf32>
    %cst_71 = arith.constant dense<0.000000e+00> : vector<8x16xf32>
    %227 = tpu.matmul %225, %226, %cst_71 {dimension_numbers = #tpu.dot_dimension_numbers<[1], [0], [0], [1], [0, 0, 1, 1], [], []>} : vector<8x288xf32>, vector<288x16xf32>, vector<8x16xf32> -> vector<8x16xf32>
    %228 = tpu.concatenate %219, %219, %219, %219 in 1 : vector<8x96xf32>, vector<8x96xf32>, vector<8x96xf32>, vector<8x96xf32> -> vector<8x384xf32>
    %c0_72 = arith.constant 0 : index
    %c0_73 = arith.constant 0 : index
    %229 = vector.load %arg9[%c0_72, %c0_73] : memref<16x384xf32, #tpu.memory_space<vmem>>, vector<16x384xf32>
    %cst_74 = arith.constant dense<0.000000e+00> : vector<8x384xf32>
    %230 = tpu.matmul %227, %229, %cst_74 {dimension_numbers = #tpu.dot_dimension_numbers<[1], [0], [0], [1], [0, 0, 1, 1], [], []>} : vector<8x16xf32>, vector<16x384xf32>, vector<8x384xf32> -> vector<8x384xf32>
    %231 = arith.mulf %230, %228 : vector<8x384xf32>
    %c0_75 = arith.constant 0 : index
    %c0_76 = arith.constant 0 : index
    %232 = vector.load %arg10[%c0_75, %c0_76] : memref<384x128xf32, #tpu.memory_space<vmem>>, vector<384x128xf32>
    %cst_77 = arith.constant dense<0.000000e+00> : vector<8x128xf32>
    %233 = tpu.matmul %231, %232, %cst_77 {dimension_numbers = #tpu.dot_dimension_numbers<[1], [0], [0], [1], [0, 0, 1, 1], [], []>} : vector<8x384xf32>, vector<384x128xf32>, vector<8x128xf32> -> vector<8x128xf32>
    %234 = tpu.concatenate %219, %233 in 1 : vector<8x96xf32>, vector<8x128xf32> -> vector<8x224xf32>
    %c0_78 = arith.constant 0 : index
    %c0_79 = arith.constant 0 : index
    %235 = vector.load %arg12[%c0_78, %c0_79] : memref<224x32xf32, #tpu.memory_space<vmem>>, vector<224x32xf32>
    %cst_80 = arith.constant dense<0.000000e+00> : vector<8x32xf32>
    %236 = tpu.matmul %234, %235, %cst_80 {dimension_numbers = #tpu.dot_dimension_numbers<[1], [0], [0], [1], [0, 0, 1, 1], [], []>} : vector<8x224xf32>, vector<224x32xf32>, vector<8x32xf32> -> vector<8x32xf32>
    %237 = arith.truncf %233 : vector<8x128xf32> to vector<8x128xbf16>
    %c0_81 = arith.constant 0 : index
    %c0_82 = arith.constant 0 : index
    %238 = vector.load %arg6[%c0_81, %c0_82] : memref<128x128xbf16, #tpu.memory_space<vmem>>, vector<128x128xbf16>
    %cst_83 = arith.constant dense<0.000000e+00> : vector<8x128xf32>
    %239 = tpu.matmul %237, %238, %cst_83 {dimension_numbers = #tpu.dot_dimension_numbers<[1], [0], [0], [1], [0, 0, 1, 1], [], []>} : vector<8x128xbf16>, vector<128x128xbf16>, vector<8x128xf32> -> vector<8x128xf32>
    %240 = vector.extract_strided_slice %222 {offsets = [0, 288], sizes = [8, 96], strides = [1, 1]} : vector<8x672xf32> to vector<8x96xf32>
    %241 = tpu.concatenate %240, %239 in 1 : vector<8x96xf32>, vector<8x128xf32> -> vector<8x224xf32>
    %242 = tpu.concatenate %236, %236, %236, %236, %236, %236, %236 in 1 : vector<8x32xf32>, vector<8x32xf32>, vector<8x32xf32>, vector<8x32xf32>, vector<8x32xf32>, vector<8x32xf32>, vector<8x32xf32> -> vector<8x224xf32>
    %243 = arith.subf %242, %234 : vector<8x224xf32>
    %244 = arith.mulf %241, %243 : vector<8x224xf32>
    %c0_84 = arith.constant 0 : index
    %c0_85 = arith.constant 0 : index
    %245 = vector.load %arg8[%c0_84, %c0_85] : memref<224x16xf32, #tpu.memory_space<vmem>>, vector<224x16xf32>
    %cst_86 = arith.constant dense<0.000000e+00> : vector<8x16xf32>
    %246 = tpu.matmul %244, %245, %cst_86 {dimension_numbers = #tpu.dot_dimension_numbers<[1], [0], [0], [1], [0, 0, 1, 1], [], []>} : vector<8x224xf32>, vector<224x16xf32>, vector<8x16xf32> -> vector<8x16xf32>
    %247 = arith.addf %227, %246 : vector<8x16xf32>
    %c0_87 = arith.constant 0 : index
    %c0_88 = arith.constant 0 : index
    %248 = vector.load %arg18[%c0_87, %c0_88] : memref<8x16xf32, #tpu.memory_space<vmem>>, vector<8x16xf32>
    tpu.vector_store %arg18[%c0_87, %c0_88], %247 {strides = array<i32>} : memref<8x16xf32, #tpu.memory_space<vmem>>, vector<8x16xf32>,
    %c0_89 = arith.constant 0 : index
    %c0_90 = arith.constant 0 : index
    %249 = vector.load %arg11[%c0_89, %c0_90] : memref<16x224xf32, #tpu.memory_space<vmem>>, vector<16x224xf32>
    %cst_91 = arith.constant dense<0.000000e+00> : vector<8x224xf32>
    %250 = tpu.matmul %247, %249, %cst_91 {dimension_numbers = #tpu.dot_dimension_numbers<[1], [0], [0], [1], [0, 0, 1, 1], [], []>} : vector<8x16xf32>, vector<16x224xf32>, vector<8x224xf32> -> vector<8x224xf32>
    %251 = arith.mulf %250, %234 : vector<8x224xf32>
    %c0_92 = arith.constant 0 : index
    %c0_93 = arith.constant 0 : index
    %252 = vector.load %arg12[%c0_92, %c0_93] : memref<224x32xf32, #tpu.memory_space<vmem>>, vector<224x32xf32>
    %cst_94 = arith.constant dense<0.000000e+00> : vector<8x32xf32>
    %253 = tpu.matmul %251, %252, %cst_94 {dimension_numbers = #tpu.dot_dimension_numbers<[1], [0], [0], [1], [0, 0, 1, 1], [], []>} : vector<8x224xf32>, vector<224x32xf32>, vector<8x32xf32> -> vector<8x32xf32>
    %254 = arith.truncf %253 : vector<8x32xf32> to vector<8x32xbf16>
    %c0_95 = arith.constant 0 : index
    %c0_96 = arith.constant 0 : index
    %255 = vector.load %arg13[%c0_95, %c0_96] : memref<32x16xbf16, #tpu.memory_space<vmem>>, vector<32x16xbf16>
    %cst_97 = arith.constant dense<0.000000e+00> : vector<8x16xf32>
    %256 = tpu.matmul %254, %255, %cst_97 {dimension_numbers = #tpu.dot_dimension_numbers<[1], [0], [0], [1], [0, 0, 1, 1], [], []>} : vector<8x32xbf16>, vector<32x16xbf16>, vector<8x16xf32> -> vector<8x16xf32>
    %c0_98 = arith.constant 0 : index
    %c0_99 = arith.constant 0 : index
    %257 = vector.load %arg14[%c0_98, %c0_99] : memref<1x16xf32, #tpu.memory_space<vmem>>, vector<1x16xf32>
    %258 = vector.broadcast %257 : vector<1x16xf32> to vector<8x16xf32>
    %259 = arith.addf %256, %258 : vector<8x16xf32>
    %260 = math.tanh %259 : vector<8x16xf32>
    %261 = arith.truncf %260 : vector<8x16xf32> to vector<8x16xbf16>
    %c0_100 = arith.constant 0 : index
    %c0_101 = arith.constant 0 : index
    %262 = vector.load %arg15[%c0_100, %c0_101] : memref<16x4xbf16, #tpu.memory_space<vmem>>, vector<16x4xbf16>
    %cst_102 = arith.constant dense<0.000000e+00> : vector<8x4xf32>
    %263 = tpu.matmul %261, %262, %cst_102 {dimension_numbers = #tpu.dot_dimension_numbers<[1], [0], [0], [1], [0, 0, 1, 1], [], []>} : vector<8x16xbf16>, vector<16x4xbf16>, vector<8x4xf32> -> vector<8x4xf32>
    %c0_103 = arith.constant 0 : index
    %c0_104 = arith.constant 0 : index
    %264 = vector.load %arg16[%c0_103, %c0_104] : memref<1x4xf32, #tpu.memory_space<vmem>>, vector<1x4xf32>
    %265 = vector.broadcast %264 : vector<1x4xf32> to vector<8x4xf32>
    %266 = arith.addf %263, %265 : vector<8x4xf32>
    %c0_105 = arith.constant 0 : index
    %c0_106 = arith.constant 0 : index
    %267 = vector.load %arg17[%c0_105, %c0_106] : memref<8x4xf32, #tpu.memory_space<vmem>>, vector<8x4xf32>
    tpu.vector_store %arg17[%c0_105, %c0_106], %266 {strides = array<i32>} : memref<8x4xf32, #tpu.memory_space<vmem>>, vector<8x4xf32>,
    return
  }
  func.func @transform_0(%arg0: i32) -> (i32, i32, i32) {
    %c0_i32 = arith.constant 0 : i32
    %c0_i32_0 = arith.constant 0 : i32
    %c0_i32_1 = arith.constant 0 : i32
    return %c0_i32, %arg0, %c0_i32_0 : i32, i32, i32
  }
  func.func @transform_1(%arg0: i32) -> (i32, i32) {
    %c0_i32 = arith.constant 0 : i32
    %c0_i32_0 = arith.constant 0 : i32
    %c0_i32_1 = arith.constant 0 : i32
    return %c0_i32, %c0_i32_0 : i32, i32
  }
  func.func @transform_2(%arg0: i32) -> (i32, i32) {
    %c0_i32 = arith.constant 0 : i32
    %c0_i32_0 = arith.constant 0 : i32
    %c0_i32_1 = arith.constant 0 : i32
    return %c0_i32, %c0_i32_0 : i32, i32
  }
  func.func @transform_3(%arg0: i32) -> (i32, i32) {
    %c0_i32 = arith.constant 0 : i32
    %c0_i32_0 = arith.constant 0 : i32
    %c0_i32_1 = arith.constant 0 : i32
    return %c0_i32, %c0_i32_0 : i32, i32
  }
  func.func @transform_4(%arg0: i32) -> (i32, i32) {
    %c0_i32 = arith.constant 0 : i32
    %c0_i32_0 = arith.constant 0 : i32
    %c0_i32_1 = arith.constant 0 : i32
    return %c0_i32, %c0_i32_0 : i32, i32
  }
  func.func @transform_5(%arg0: i32) -> (i32, i32) {
    %c0_i32 = arith.constant 0 : i32
    %c0_i32_0 = arith.constant 0 : i32
    %c0_i32_1 = arith.constant 0 : i32
    return %c0_i32, %c0_i32_0 : i32, i32
  }
  func.func @transform_6(%arg0: i32) -> (i32, i32) {
    %c0_i32 = arith.constant 0 : i32
    %c0_i32_0 = arith.constant 0 : i32
    %c0_i32_1 = arith.constant 0 : i32
    return %c0_i32, %c0_i32_0 : i32, i32
  }
  func.func @transform_7(%arg0: i32) -> (i32, i32) {
    %c0_i32 = arith.constant 0 : i32
    %c0_i32_0 = arith.constant 0 : i32
    %c0_i32_1 = arith.constant 0 : i32
    return %c0_i32, %c0_i32_0 : i32, i32
  }
  func.func @transform_8(%arg0: i32) -> (i32, i32) {
    %c0_i32 = arith.constant 0 : i32
    %c0_i32_0 = arith.constant 0 : i32
    %c0_i32_1 = arith.constant 0 : i32
    return %c0_i32, %c0_i32_0 : i32, i32
  }
  func.func @transform_9(%arg0: i32) -> (i32, i32) {
    %c0_i32 = arith.constant 0 : i32
    %c0_i32_0 = arith.constant 0 : i32
    %c0_i32_1 = arith.constant 0 : i32
    return %c0_i32, %c0_i32_0 : i32, i32
  }
  func.func @transform_10(%arg0: i32) -> (i32, i32) {
    %c0_i32 = arith.constant 0 : i32
    %c0_i32_0 = arith.constant 0 : i32
    %c0_i32_1 = arith.constant 0 : i32
    return %c0_i32, %c0_i32_0 : i32, i32
  }
  func.func @transform_11(%arg0: i32) -> (i32, i32) {
    %c0_i32 = arith.constant 0 : i32
    %c0_i32_0 = arith.constant 0 : i32
    %c0_i32_1 = arith.constant 0 : i32
    return %c0_i32, %c0_i32_0 : i32, i32
  }
  func.func @transform_12(%arg0: i32) -> (i32, i32) {
    %c0_i32 = arith.constant 0 : i32
    %c0_i32_0 = arith.constant 0 : i32
    %c0_i32_1 = arith.constant 0 : i32
    return %c0_i32, %c0_i32_0 : i32, i32
  }
  func.func @transform_13(%arg0: i32) -> (i32, i32) {
    %c0_i32 = arith.constant 0 : i32
    %c0_i32_0 = arith.constant 0 : i32
    %c0_i32_1 = arith.constant 0 : i32
    return %c0_i32, %c0_i32_0 : i32, i32
  }
  func.func @transform_14(%arg0: i32) -> (i32, i32) {
    %c0_i32 = arith.constant 0 : i32
    %c0_i32_0 = arith.constant 0 : i32
    %c0_i32_1 = arith.constant 0 : i32
    return %c0_i32, %c0_i32_0 : i32, i32
  }
  func.func @transform_15(%arg0: i32) -> (i32, i32) {
    %c0_i32 = arith.constant 0 : i32
    %c0_i32_0 = arith.constant 0 : i32
    %c0_i32_1 = arith.constant 0 : i32
    return %c0_i32, %c0_i32_0 : i32, i32
  }
  func.func @transform_16(%arg0: i32) -> (i32, i32) {
    %c0_i32 = arith.constant 0 : i32
    %c0_i32_0 = arith.constant 0 : i32
    return %arg0, %c0_i32 : i32, i32
  }
  func.func @transform_17(%arg0: i32) -> (i32, i32) {
    %c0_i32 = arith.constant 0 : i32
    %c0_i32_0 = arith.constant 0 : i32
    return %arg0, %c0_i32 : i32, i32
  }
}

</mosaic_0001>

<bundles_post_ra>
// kernel: att_forward.1
= control target key start
LH: loop header
LB: loop body
LE: loop exit
PB: predicated region body
PF: predicated region fallthrough
CT: control target
= control target key end

     0   :  { %v5559_v1 = vmov 0   ;;  %vm234_vm0 = vcmask 785408   ;;  %s3860_s30 = smov 64   ;;  %vm3862_vm1 = vmmov 0   ;;  %vm1851_vm2 = vcmask 261120   ;;  %s5539_s1 = inlined_call_operand.vmem [shape: bf16[96,512], index: 1, kind: input, shape index: {}]   ;;  %s5540_s2 = inlined_call_operand.vmem [shape: bf16[128,512], index: 2, kind: input, shape index: {}]   ;;  %s5541_s0 = inlined_call_operand.vmem [shape: f32[8,8,96], index: 0, kind: input, shape index: {}]   ;;  %s5542_s3 = inlined_call_operand.vmem [shape: f32[1,512], index: 3, kind: input, shape index: {}]   ;;  %s5543_s4 = inlined_call_operand.vmem [shape: bf16[128,672], index: 4, kind: input, shape index: {}]   ;;  %s5544_s6 = inlined_call_operand.vmem [shape: f32[288,16], index: 6, kind: input, shape index: {}]   ;;  %s5545_s8 = inlined_call_operand.vmem [shape: f32[16,384], index: 8, kind: input, shape index: {}]   ;;  %s5546_s9 = inlined_call_operand.vmem [shape: f32[384,128], index: 9, kind: input, shape index: {}]   ;;  %s5547_s5 = inlined_call_operand.vmem [shape: bf16[128,128], index: 5, kind: input, shape index: {}]   ;;  %s5548_s11 = inlined_call_operand.vmem [shape: f32[224,32], index: 11, kind: input, shape index: {}]   ;;  %s5549_s7 = inlined_call_operand.vmem [shape: f32[224,16], index: 7, kind: input, shape index: {}]   ;;  %s5550_s10 = inlined_call_operand.vmem [shape: f32[16,224], index: 10, kind: input, shape index: {}]   ;;  %s5551_s17 = inlined_call_operand.vmem [shape: f32[8,16], index: 17, kind: output, shape index: {1}]   ;;  %s5552_s12 = inlined_call_operand.vmem [shape: bf16[32,16], index: 12, kind: input, shape index: {}]   ;;  %s5553_s14 = inlined_call_operand.vmem [shape: bf16[16,4], index: 14, kind: input, shape index: {}]   ;;  %s5554_s13 = inlined_call_operand.vmem [shape: f32[1,16], index: 13, kind: input, shape index: {}]   ;;  %s5555_s15 = inlined_call_operand.vmem [shape: f32[1,4], index: 15, kind: input, shape index: {}]   ;;  %s5556_s16 = inlined_call_operand.vmem [shape: f32[8,4], index: 16, kind: output, shape index: {0}]  }
   0x1   :  { %5561 = sst [smem:[#allocation22_spill]] %s5539_s1  ;;  %279 = vmatprep.mubr.bf16.mxu0 %v5559_v1  ;;  %352 = vmatprep.mubr.bf16.mxu1 %v5559_v1  ;;  %v56_v25 = vld [vmem:[%s5541_s0] sm:$0xff]  ;;  %v57_v26 = vld [vmem:[%s5541_s0 + $0x8] sm:$0xff]  ;;  %v58_v36 = vld [vmem:[%s5541_s0 + $0x10] sm:$0xff]  ;;  %vm2015_vm3 = vcmask 130048   ;;  %vm2006_vm4 = vcmask 523264  }
   0x2   :  { %5562 = sst [smem:[#allocation23_spill]] %s5540_s2  ;;  %s5563_s26 = sld [smem:[#allocation22_spill]]  ;;  %v64_v29 = vpack.c.bf16 %v57_v26, %v56_v25  ;;  %v59_v37 = vld [vmem:[%s5541_s0 + $0x18] sm:$0xff]  ;;  %v60_v47 = vld [vmem:[%s5541_s0 + $0x20] sm:$0xff]  ;;  %v61_v48 = vld [vmem:[%s5541_s0 + $0x28] sm:$0xff]  ;;  %vm2998_vm5 = vcmask 31744  }
   0x3   :  { %s5564_s22 = sld [smem:[#allocation23_spill]]  ;;  %v65_v40 = vpack.c.bf16 %v59_v37, %v58_v36  ;;  %v66_v51 = vpack.c.bf16 %v61_v48, %v60_v47  ;;  %v62_v58 = vld [vmem:[%s5541_s0 + $0x30] sm:$0xff]  ;;  %v63_v59 = vld [vmem:[%s5541_s0 + $0x38] sm:$0xff] }
   0x4   :  { %v67_v62 = vpack.c.bf16 %v63_v59, %v62_v58 }
   0x8   :  { %v3576_v0 = vld [vmem:[%s5563_s26 + $0x4] ss:$16 sps:$4 sm:$0xff]   ;;  %v3578_v2 = vld [vmem:[%s5563_s26 + $0xc] ss:$16 sps:$4 sm:$0xff]   ;;  %v3580_v3 = vld [vmem:[%s5563_s26] ss:$16 sps:$4 sm:$0xff]  }
   0x9   :  { %247 = vmatprep.subr.bf16.mxu0 %v3576_v0  ;;  %v3581_v4 = vld [vmem:[%s5563_s26 + $0x8] ss:$16 sps:$4 sm:$0xff]   ;;  %320 = vmatprep.subr.bf16.mxu1 %v3578_v2  ;;  %v3582_v5 = vld [vmem:[%s5563_s26 + $0x24] ss:$16 sps:$4 sm:$0xff]   ;;  %v3584_v6 = vld [vmem:[%s5563_s26 + $0x2c] ss:$16 sps:$4 sm:$0xff]  }
   0xa   :  { %248 = vmatpush1.bf16.msra.mxu0 %v3580_v3  ;;  %321 = vmatpush1.bf16.msra.mxu1 %v3581_v4  ;;  %v3586_v7 = vld [vmem:[%s5563_s26 + $0x20] ss:$16 sps:$4 sm:$0xff]   ;;  %v3587_v8 = vld [vmem:[%s5563_s26 + $0x28] ss:$16 sps:$4 sm:$0xff]   ;;  %v3588_v9 = vld [vmem:[%s5563_s26 + $0x44] ss:$16 sps:$4 sm:$0xff]  }
   0xb   :  { %249 = vmatprep.subr.bf16.mxu0 %v3582_v5  ;;  %322 = vmatprep.subr.bf16.mxu1 %v3584_v6  ;;  %v3590_v10 = vld [vmem:[%s5563_s26 + $0x4c] ss:$16 sps:$4 sm:$0xff]   ;;  %v3592_v11 = vld [vmem:[%s5563_s26 + $0x40] ss:$16 sps:$4 sm:$0xff]   ;;  %v3593_v12 = vld [vmem:[%s5563_s26 + $0x48] ss:$16 sps:$4 sm:$0xff]   ;;  %v94_v6 = vlaneseq }
   0xc   :  { %v3594_v13 = vld [vmem:[%s5563_s26 + $0x64] ss:$16 sps:$4 sm:$0xff]   ;;  %v3596_v14 = vld [vmem:[%s5563_s26 + $0x6c] ss:$16 sps:$4 sm:$0xff]   ;;  %v3598_v15 = vld [vmem:[%s5563_s26 + $0x60] ss:$16 sps:$4 sm:$0xff]  }
   0xd   :  { %v3599_v16 = vld [vmem:[%s5563_s26 + $0x68] ss:$16 sps:$4 sm:$0xff]   ;;  %v3600_v17 = vld [vmem:[%s5563_s26 + $0x84] ss:$16 sps:$4 sm:$0xff]   ;;  %v3602_v18 = vld [vmem:[%s5563_s26 + $0x8c] ss:$16 sps:$4 sm:$0xff]  }
   0xe   :  { %250 = vmatpush1.bf16.msra.mxu0 %v3586_v7  ;;  %323 = vmatpush1.bf16.msra.mxu1 %v3587_v8  ;;  %v3604_v19 = vld [vmem:[%s5563_s26 + $0x80] ss:$16 sps:$4 sm:$0xff]   ;;  %v3605_v20 = vld [vmem:[%s5563_s26 + $0x88] ss:$16 sps:$4 sm:$0xff]   ;;  %v3606_v21 = vld [vmem:[%s5563_s26 + $0xa4] ss:$16 sps:$4 sm:$0xff]  }
   0xf   :  { %251 = vmatprep.subr.bf16.mxu0 %v3588_v9  ;;  %324 = vmatprep.subr.bf16.mxu1 %v3590_v10  ;;  %v3608_v22 = vld [vmem:[%s5563_s26 + $0xac] ss:$16 sps:$4 sm:$0xff]   ;;  %v3610_v23 = vld [vmem:[%s5563_s26 + $0xa0] ss:$16 sps:$4 sm:$0xff]   ;;  %v3611_v24 = vld [vmem:[%s5563_s26 + $0xa8] ss:$16 sps:$4 sm:$0xff]  }
  0x10   :  { %v4037_v27 = vld [vmem:[%s5564_s22 + $0x4] ss:$16 sps:$4 sm:$0xff]   ;;  %v4042_v28 = vld [vmem:[%s5564_s22 + $0xc] ss:$16 sps:$4 sm:$0xff]   ;;  %v4047_v30 = vld [vmem:[%s5564_s22] ss:$16 sps:$4 sm:$0xff]  }
  0x11   :  { %v4052_v31 = vld [vmem:[%s5564_s22 + $0x8] ss:$16 sps:$4 sm:$0xff]   ;;  %v4057_v32 = vld [vmem:[%s5564_s22 + $0x24] ss:$16 sps:$4 sm:$0xff]   ;;  %v4064_v33 = vld [vmem:[%s5564_s22 + $0x2c] ss:$16 sps:$4 sm:$0xff]  }
  0x12   :  { %252 = vmatpush1.bf16.msra.mxu0 %v3592_v11  ;;  %325 = vmatpush1.bf16.msra.mxu1 %v3593_v12  ;;  %v4071_v34 = vld [vmem:[%s5564_s22 + $0x20] ss:$16 sps:$4 sm:$0xff]   ;;  %v4076_v35 = vld [vmem:[%s5564_s22 + $0x28] ss:$16 sps:$4 sm:$0xff]   ;;  %v4089_v38 = vld [vmem:[%s5564_s22 + $0x44] ss:$16 sps:$4 sm:$0xff]  }
  0x13   :  { %253 = vmatprep.subr.bf16.mxu0 %v3594_v13  ;;  %326 = vmatprep.subr.bf16.mxu1 %v3596_v14  ;;  %v4096_v39 = vld [vmem:[%s5564_s22 + $0x4c] ss:$16 sps:$4 sm:$0xff]   ;;  %v4103_v41 = vld [vmem:[%s5564_s22 + $0x40] ss:$16 sps:$4 sm:$0xff]   ;;  %v4110_v42 = vld [vmem:[%s5564_s22 + $0x48] ss:$16 sps:$4 sm:$0xff]  }
  0x14   :  { %v4117_v43 = vld [vmem:[%s5564_s22 + $0x64] ss:$16 sps:$4 sm:$0xff]   ;;  %v4122_v44 = vld [vmem:[%s5564_s22 + $0x6c] ss:$16 sps:$4 sm:$0xff]   ;;  %v4127_v45 = vld [vmem:[%s5564_s22 + $0x60] ss:$16 sps:$4 sm:$0xff]  }
  0x15   :  { %v4132_v46 = vld [vmem:[%s5564_s22 + $0x68] ss:$16 sps:$4 sm:$0xff]   ;;  %v4147_v49 = vld [vmem:[%s5564_s22 + $0x84] ss:$16 sps:$4 sm:$0xff]   ;;  %v4154_v50 = vld [vmem:[%s5564_s22 + $0x8c] ss:$16 sps:$4 sm:$0xff]  }
  0x16   :  { %254 = vmatpush1.bf16.msra.mxu0 %v3598_v15  ;;  %327 = vmatpush1.bf16.msra.mxu1 %v3599_v16  ;;  %v4163_v52 = vld [vmem:[%s5564_s22 + $0x80] ss:$16 sps:$4 sm:$0xff]   ;;  %v4168_v53 = vld [vmem:[%s5564_s22 + $0x88] ss:$16 sps:$4 sm:$0xff]   ;;  %v4175_v54 = vld [vmem:[%s5564_s22 + $0xa4] ss:$16 sps:$4 sm:$0xff]  }
  0x17   :  { %255 = vmatprep.subr.bf16.mxu0 %v3600_v17  ;;  %328 = vmatprep.subr.bf16.mxu1 %v3602_v18  ;;  %v4180_v55 = vld [vmem:[%s5564_s22 + $0xac] ss:$16 sps:$4 sm:$0xff]   ;;  %v4187_v56 = vld [vmem:[%s5564_s22 + $0xa0] ss:$16 sps:$4 sm:$0xff]   ;;  %v4194_v57 = vld [vmem:[%s5564_s22 + $0xa8] ss:$16 sps:$4 sm:$0xff]  }
  0x18   :  { %v4207_v60 = vld [vmem:[%s5564_s22 + $0xc4] ss:$16 sps:$4 sm:$0xff]   ;;  %v4212_v61 = vld [vmem:[%s5564_s22 + $0xcc] ss:$16 sps:$4 sm:$0xff]   ;;  %v4221_v63 = vld [vmem:[%s5564_s22 + $0xc0] ss:$16 sps:$4 sm:$0xff]  }
  0x19   :  { %v4226_v0 = vld [vmem:[%s5564_s22 + $0xc8] ss:$16 sps:$4 sm:$0xff]   ;;  %v4233_v2 = vld [vmem:[%s5564_s22 + $0xe4] ss:$16 sps:$4 sm:$0xff]   ;;  %v4238_v3 = vld [vmem:[%s5564_s22 + $0xec] ss:$16 sps:$4 sm:$0xff]  }
  0x1a   :  { %256 = vmatpush1.bf16.msra.mxu0 %v3604_v19  ;;  %329 = vmatpush1.bf16.msra.mxu1 %v3605_v20  ;;  %v4247_v4 = vld [vmem:[%s5564_s22 + $0xe0] ss:$16 sps:$4 sm:$0xff]   ;;  %v4252_v5 = vld [vmem:[%s5564_s22 + $0xe8] ss:$16 sps:$4 sm:$0xff]   ;;  %v95_v7 = vshrl.u32 %v94_v6, 7 }
  0x1b   :  { %257 = vmatprep.subr.bf16.mxu0 %v3606_v21  ;;  %330 = vmatprep.subr.bf16.mxu1 %v3608_v22  ;;  %v92_v11 = vld [vmem:[%s5542_s3] sm:$0xf]  ;;  %s3859_s3 = smov 96  }
  0x1c   :  { %v104_v8 = vsub.s32 2, %v95_v7  ;;  %v108_v9 = vsub.s32 3, %v95_v7  ;;  %v96_v10 = vsub.s32 0, %v95_v7  ;;  %v100_v12 = vsub.s32 1, %v95_v7 }
  0x1e   :  { %258 = vmatpush1.bf16.msra.mxu0 %v3610_v23  ;;  %331 = vmatpush1.bf16.msra.mxu1 %v3611_v24  ;;  %v4301_v13 = vrot.slane %v92_v11, %v104_v8  ;;  %v4307_v16 = vrot.slane %v92_v11, %v108_v9  ;;  %v97_v17 = vrot.slane %v92_v11, %v96_v10 }
  0x1f   :  { %585 = vmatprep.subr.bf16.mxu0 %v4037_v27  ;;  %626 = vmatprep.subr.bf16.mxu1 %v4042_v28  ;;  %v101_v20 = vrot.slane %v92_v11, %v100_v12 }
  0x21   :  { %3032 = vmatmul.mubr.msk.bf16.vlgmr.msra.gmra.mrb[0].mxu0 %vm234_vm0, %v64_v29  ;;  %3036 = vmatmul.mubr.msk.bf16.vlgmr.msra.gmra.mrb[0].mxu1 %vm234_vm0, %v64_v29 }
  0x22   :  { %586 = vmatpush1.bf16.msra.mxu0 %v4047_v30  ;;  %627 = vmatpush1.bf16.msra.mxu1 %v4052_v31 }
  0x23   :  { %587 = vmatprep.subr.bf16.mxu0 %v4057_v32  ;;  %628 = vmatprep.subr.bf16.mxu1 %v4064_v33 }
  0x24   :  { %289 = vmatprep.mubr.bf16.mxu0 %v5559_v1  ;;  %362 = vmatprep.mubr.bf16.mxu1 %v5559_v1 }
  0x26   :  { %588 = vmatpush1.bf16.msra.mxu0 %v4071_v34  ;;  %629 = vmatpush1.bf16.msra.mxu1 %v4076_v35 }
  0x27   :  { %589 = vmatprep.subr.bf16.mxu0 %v4089_v38  ;;  %630 = vmatprep.subr.bf16.mxu1 %v4096_v39 }
  0x29   :  { %3033 = vmatmul.mubr.msk.bf16.gmra.mrb[4].mxu0 %vm234_vm0, %v65_v40  ;;  %3037 = vmatmul.mubr.msk.bf16.gmra.mrb[4].mxu1 %vm234_vm0, %v65_v40 }
  0x2a   :  { %590 = vmatpush1.bf16.msra.mxu0 %v4103_v41  ;;  %631 = vmatpush1.bf16.msra.mxu1 %v4110_v42 }
  0x2b   :  { %591 = vmatprep.subr.bf16.mxu0 %v4117_v43  ;;  %632 = vmatprep.subr.bf16.mxu1 %v4122_v44 }
  0x2c   :  { %299 = vmatprep.mubr.bf16.mxu0 %v5559_v1  ;;  %372 = vmatprep.mubr.bf16.mxu1 %v5559_v1 }
  0x2e   :  { %592 = vmatpush1.bf16.msra.mxu0 %v4127_v45  ;;  %633 = vmatpush1.bf16.msra.mxu1 %v4132_v46 }
  0x2f   :  { %593 = vmatprep.subr.bf16.mxu0 %v4147_v49  ;;  %634 = vmatprep.subr.bf16.mxu1 %v4154_v50 }
  0x31   :  { %3034 = vmatmul.mubr.msk.bf16.gmra.mrb[8].mxu0 %vm234_vm0, %v66_v51  ;;  %3038 = vmatmul.mubr.msk.bf16.gmra.mrb[8].mxu1 %vm234_vm0, %v66_v51 }
  0x32   :  { %594 = vmatpush1.bf16.msra.mxu0 %v4163_v52  ;;  %635 = vmatpush1.bf16.msra.mxu1 %v4168_v53 }
  0x33   :  { %595 = vmatprep.subr.bf16.mxu0 %v4175_v54  ;;  %636 = vmatprep.subr.bf16.mxu1 %v4180_v55 }
  0x34   :  { %309 = vmatprep.mubr.bf16.mxu0 %v5559_v1  ;;  %382 = vmatprep.mubr.bf16.mxu1 %v5559_v1 }
  0x36   :  { %596 = vmatpush1.bf16.msra.mxu0 %v4187_v56  ;;  %637 = vmatpush1.bf16.msra.mxu1 %v4194_v57 }
  0x37   :  { %597 = vmatprep.subr.bf16.mxu0 %v4207_v60  ;;  %638 = vmatprep.subr.bf16.mxu1 %v4212_v61 }
  0x39   :  { %3035 = vmatmul.mubr.msk.bf16.gmra.mrb[12].mxu0 %vm234_vm0, %v67_v62  ;;  %3039 = vmatmul.mubr.msk.bf16.gmra.mrb[12].mxu1 %vm234_vm0, %v67_v62 }
  0x3a   :  { %598 = vmatpush1.bf16.msra.mxu0 %v4221_v63  ;;  %639 = vmatpush1.bf16.msra.mxu1 %v4226_v0 }
  0x3b   :  { %599 = vmatprep.subr.bf16.mxu0 %v4233_v2  ;;  %640 = vmatprep.subr.bf16.mxu1 %v4238_v3 }
  0x3c   :  { %617 = vmatprep.mubr.bf16.mxu0 %v5559_v1  ;;  %658 = vmatprep.mubr.bf16.mxu1 %v5559_v1 }
  0x3e   :  { %600 = vmatpush1.bf16.msra.mxu0 %v4247_v4  ;;  %641 = vmatpush1.bf16.msra.mxu1 %v4252_v5 }
  0x3f   :  { %687 = vmatprep.subr.bf16.mxu0 %v4037_v27  ;;  %728 = vmatprep.subr.bf16.mxu1 %v4042_v28 }
  0x41   :  { %618 = vmatmul.mubr.bf16.vlgmr.msra.gmra.mrb[16].mxu0 %v5559_v1  ;;  %659 = vmatmul.mubr.bf16.vlgmr.msra.gmra.mrb[16].mxu1 %v5559_v1 }
  0x42   :  { %688 = vmatpush1.bf16.msra.mxu0 %v4047_v30  ;;  %729 = vmatpush1.bf16.msra.mxu1 %v4052_v31 }
  0x43   :  { %689 = vmatprep.subr.bf16.mxu0 %v4057_v32  ;;  %730 = vmatprep.subr.bf16.mxu1 %v4064_v33 }
  0x44   :  { %719 = vmatprep.mubr.bf16.mxu0 %v5559_v1  ;;  %760 = vmatprep.mubr.bf16.mxu1 %v5559_v1 }
  0x46   :  { %690 = vmatpush1.bf16.msra.mxu0 %v4071_v34  ;;  %731 = vmatpush1.bf16.msra.mxu1 %v4076_v35 }
  0x47   :  { %691 = vmatprep.subr.bf16.mxu0 %v4089_v38  ;;  %732 = vmatprep.subr.bf16.mxu1 %v4096_v39 }
  0x4a   :  { %692 = vmatpush1.bf16.msra.mxu0 %v4103_v41  ;;  %733 = vmatpush1.bf16.msra.mxu1 %v4110_v42 }
  0x4b   :  { %693 = vmatprep.subr.bf16.mxu0 %v4117_v43  ;;  %734 = vmatprep.subr.bf16.mxu1 %v4122_v44 }
  0x4e   :  { %694 = vmatpush1.bf16.msra.mxu0 %v4127_v45  ;;  %735 = vmatpush1.bf16.msra.mxu1 %v4132_v46 }
  0x4f   :  { %695 = vmatprep.subr.bf16.mxu0 %v4147_v49  ;;  %736 = vmatprep.subr.bf16.mxu1 %v4154_v50 }
  0x52   :  { %696 = vmatpush1.bf16.msra.mxu0 %v4163_v52  ;;  %737 = vmatpush1.bf16.msra.mxu1 %v4168_v53 }
  0x53   :  { %697 = vmatprep.subr.bf16.mxu0 %v4175_v54  ;;  %738 = vmatprep.subr.bf16.mxu1 %v4180_v55 }
  0x56   :  { %698 = vmatpush1.bf16.msra.mxu0 %v4187_v56  ;;  %739 = vmatpush1.bf16.msra.mxu1 %v4194_v57 }
  0x57   :  { %699 = vmatprep.subr.bf16.mxu0 %v4207_v60  ;;  %740 = vmatprep.subr.bf16.mxu1 %v4212_v61 }
  0x5a   :  { %700 = vmatpush1.bf16.msra.mxu0 %v4221_v63  ;;  %741 = vmatpush1.bf16.msra.mxu1 %v4226_v0 }
  0x5b   :  { %701 = vmatprep.subr.bf16.mxu0 %v4233_v2  ;;  %742 = vmatprep.subr.bf16.mxu1 %v4238_v3 }
  0x5e   :  { %702 = vmatpush1.bf16.msra.mxu0 %v4247_v4  ;;  %743 = vmatpush1.bf16.msra.mxu1 %v4252_v5 }
  0x5f   :  { %789 = vmatprep.subr.bf16.mxu0 %v4037_v27  ;;  %830 = vmatprep.subr.bf16.mxu1 %v4042_v28 }
  0xf4   :  { %v4303_v14 = vpop.f32.mrb[0].mxu0  ;;  %v4305_v15 = vpop.f32.mrb[0].mxu1 }
  0xf5   :  { %v283_v18 = vpop.f32.mrb[1].mxu0  ;;  %v356_v19 = vpop.f32.mrb[1].mxu1 }
  0xf6   :  { %v285_v21 = vpop.f32.mrb[2].mxu0  ;;  %v358_v22 = vpop.f32.mrb[2].mxu1 }
  0xf7   :  { %v4309_v23 = vadd.f32 %v285_v21, %v97_v17  ;;  %v287_v24 = vpop.f32.mrb[3].mxu0  ;;  %v4312_v25 = vadd.f32 %v358_v22, %v4301_v13  ;;  %v360_v26 = vpop.f32.mrb[3].mxu1 }
  0xf8   :  { %v4314_v29 = vadd.f32 %v287_v24, %v101_v20  ;;  %v4317_v36 = vadd.f32 %v360_v26, %v4307_v16 }
  0xfc   :  { %v291_v37 = vpop.f32.mrb[4].mxu0  ;;  %v364_v40 = vpop.f32.mrb[4].mxu1 }
  0xfd   :  { %v4319_v47 = vadd.f32 %v291_v37, %v97_v17  ;;  %v293_v48 = vpop.f32.mrb[5].mxu0  ;;  %v4322_v51 = vadd.f32 %v364_v40, %v4301_v13  ;;  %v366_v58 = vpop.f32.mrb[5].mxu1 }
  0xfe   :  { %v4324_v59 = vadd.f32 %v293_v48, %v101_v20  ;;  %v295_v62 = vpop.f32.mrb[6].mxu0  ;;  %v4327_v6 = vadd.f32 %v366_v58, %v4307_v16  ;;  %v368_v7 = vpop.f32.mrb[6].mxu1 }
  0xff   :  { %v4329_v8 = vadd.f32 %v295_v62, %v97_v17  ;;  %v297_v9 = vpop.f32.mrb[7].mxu0  ;;  %v4332_v10 = vadd.f32 %v368_v7, %v4301_v13  ;;  %v370_v11 = vpop.f32.mrb[7].mxu1 }
 0x100   :  { %v4334_v12 = vadd.f32 %v297_v9, %v101_v20  ;;  %v4337_v21 = vadd.f32 %v370_v11, %v4307_v16 }
 0x101   :  { %5565 = vst [vmem:[#allocation2_spill] sm:$0xff] %v4329_v8  ;;  %5566 = vst [vmem:[#allocation3_spill] sm:$0xff] %v4332_v10 }
 0x102   :  { %5567 = vst [vmem:[#allocation4_spill] sm:$0xff] %v4334_v12  ;;  %5568 = vst [vmem:[#allocation5_spill] sm:$0xff] %v4337_v21 }
 0x104   :  { %v301_v22 = vpop.f32.mrb[8].mxu0  ;;  %v374_v24 = vpop.f32.mrb[8].mxu1 }
 0x105   :  { %v4339_v26 = vadd.f32 %v301_v22, %v97_v17  ;;  %v303_v37 = vpop.f32.mrb[9].mxu0  ;;  %v4342_v40 = vadd.f32 %v374_v24, %v4301_v13  ;;  %v376_v48 = vpop.f32.mrb[9].mxu1 }
 0x106   :  { %v4344_v58 = vadd.f32 %v303_v37, %v101_v20  ;;  %v305_v62 = vpop.f32.mrb[10].mxu0  ;;  %v4347_v7 = vadd.f32 %v376_v48, %v4307_v16  ;;  %v378_v9 = vpop.f32.mrb[10].mxu1 }
 0x107   :  { %5569 = vst [vmem:[#allocation6_spill] sm:$0xff] %v4339_v26  ;;  %5570 = vst [vmem:[#allocation7_spill] sm:$0xff] %v4342_v40  ;;  %v4349_v1 = vadd.f32 %v305_v62, %v97_v17  ;;  %v307_v11 = vpop.f32.mrb[11].mxu0  ;;  %v4352_v21 = vadd.f32 %v378_v9, %v4301_v13  ;;  %v380_v22 = vpop.f32.mrb[11].mxu1 }
 0x108   :  { %5571 = vst [vmem:[#allocation8_spill] sm:$0xff] %v4344_v58  ;;  %5572 = vst [vmem:[#allocation9_spill] sm:$0xff] %v4347_v7  ;;  %v4354_v26 = vadd.f32 %v307_v11, %v101_v20  ;;  %v4357_v24 = vadd.f32 %v380_v22, %v4307_v16 }
 0x109   :  { %5573 = vst [vmem:[#allocation10_spill] sm:$0xff] %v4349_v1  ;;  %5574 = vst [vmem:[#allocation11_spill] sm:$0xff] %v4352_v21 }
 0x10a   :  { %5575 = vst [vmem:[#allocation12_spill] sm:$0xff] %v4354_v26  ;;  %5576 = vst [vmem:[#allocation13_spill] sm:$0xff] %v4357_v24 }
 0x10c   :  { %v311_v40 = vpop.f32.mrb[12].mxu0  ;;  %v384_v37 = vpop.f32.mrb[12].mxu1 }
 0x10d   :  { %v4359_v58 = vadd.f32 %v311_v40, %v97_v17  ;;  %v313_v12 = vpop.f32.mrb[13].mxu0  ;;  %v4362_v48 = vadd.f32 %v384_v37, %v4301_v13  ;;  %v386_v62 = vpop.f32.mrb[13].mxu1 }
 0x10e   :  { %v4364_v1 = vadd.f32 %v313_v12, %v101_v20  ;;  %v315_v7 = vpop.f32.mrb[14].mxu0  ;;  %v4367_v9 = vadd.f32 %v386_v62, %v4307_v16  ;;  %v388_v11 = vpop.f32.mrb[14].mxu1  ;;  %v282_v12 = vadd.f32 %v4303_v14, %v97_v17  ;;  %v284_v62 = vadd.f32 %v283_v18, %v101_v20 }
 0x10f   :  { %5577 = vst [vmem:[#allocation14_spill] sm:$0xff] %v4359_v58  ;;  %5578 = vst [vmem:[#allocation15_spill] sm:$0xff] %v4362_v48  ;;  %v4369_v26 = vadd.f32 %v315_v7, %v97_v17  ;;  %v317_v22 = vpop.f32.mrb[15].mxu0  ;;  %v4372_v24 = vadd.f32 %v388_v11, %v4301_v13  ;;  %v390_v40 = vpop.f32.mrb[15].mxu1 }
 0x110   :  { %5579 = vst [vmem:[#allocation16_spill] sm:$0xff] %v4364_v1  ;;  %5580 = vst [vmem:[#allocation17_spill] sm:$0xff] %v4367_v9  ;;  %v4374_v58 = vadd.f32 %v317_v22, %v101_v20  ;;  %v4377_v37 = vadd.f32 %v390_v40, %v4307_v16  ;;  %v355_v1 = vadd.f32 %v4305_v15, %v4301_v13 }
 0x111   :  { %5581 = vst [vmem:[#allocation18_spill] sm:$0xff] %v4369_v26  ;;  %5582 = vst [vmem:[#allocation19_spill] sm:$0xff] %v4372_v24  ;;  %v357_v9 = vadd.f32 %v356_v19, %v4307_v16 }
 0x112   :  { %5583 = vst [vmem:[#allocation20_spill] sm:$0xff] %v4374_v58  ;;  %5584 = vst [vmem:[#allocation21_spill] sm:$0xff] %v4377_v37 }
 0x114   :  { %v619_v7 = vpop.f32.mrb[16].mxu0  ;;  %v660_v26 = vpop.f32.mrb[16].mxu1 }
 0x115   :  { %v667_v48 = vadd.f32 %v619_v7, %v282_v12  ;;  %v669_v21 = vadd.f32 %v660_v26, %v355_v1  ;;  %v621_v11 = vpop.f32.mrb[17].mxu0  ;;  %v662_v24 = vpop.f32.mrb[17].mxu1 }
 0x116   :  { %v668_v10 = vadd.f32 %v621_v11, %v284_v62  ;;  %v670_v22 = vadd.f32 %v662_v24, %v357_v9  ;;  %v623_v58 = vpop.f32.mrb[18].mxu0  ;;  %v664_v8 = vpop.f32.mrb[18].mxu1  ;;  %v5585_v9 = vmov 0  }
 0x117   :  { %3743 = vtanh.f32 %v667_v48  ;;  %v624_v40 = vpop.f32.mrb[19].mxu0  ;;  %v665_v37 = vpop.f32.mrb[19].mxu1 }
 0x118   :  { %3745 = vtanh.f32 %v668_v10 }
 0x119   :  { %3747 = vtanh.f32 %v669_v21 }
 0x11a   :  { %3749 = vtanh.f32 %v670_v22 }
 0x121   :  { %v3744_v14 = vpop.eup %3743 }
 0x122   :  { %v675_v13 = vmul.f32 0.5, %v3744_v14  ;;  %v3746_v15 = vpop.eup %3745 }
 0x123   :  { %v677_v16 = vmul.f32 0.5, %v3746_v15  ;;  %v3748_v18 = vpop.eup %3747 }
 0x124   :  { %v676_v17 = vadd.f32 0.5, %v675_v13  ;;  %v3750_v8 = vpop.eup %3749 }
 0x125   :  { %v678_v19 = vadd.f32 0.5, %v677_v16  ;;  %v679_v58 = vmul.f32 0.5, %v3750_v8 }
 0x126   :  { %v682_v1 = vmul.f32 %v3748_v18, %v676_v17 }
 0x127   :  { %v681_v20 = vmul.f32 0.0, %v678_v19  ;;  %v680_v24 = vadd.f32 0.5, %v679_v58 }
 0x129   :  { %v4383_v26 = vadd.f32 %v682_v1, %v681_v20 }
 0x12b   :  { %3751 = vtanh.f32 %v4383_v26 }
 0x135   :  { %v3752_v48 = vpop.eup %3751 }
 0x136   :  { %v685_v10 = vmul.f32 %v3752_v48, %v680_v24 }
 0x138   :  { %v686_v21 = vpack.c.bf16 %v685_v10, %v685_v10 }
 0x13a   :  { %720 = vmatmul.mubr.bf16.vlgmr.msra.gmra.mrb[20].mxu0 %v686_v21  ;;  %761 = vmatmul.mubr.bf16.vlgmr.msra.gmra.mrb[20].mxu1 %v686_v21 }
 0x13b   :  { %790 = vmatpush1.bf16.msra.mxu0 %v4047_v30  ;;  %831 = vmatpush1.bf16.msra.mxu1 %v4052_v31 }
 0x13c   :  { %791 = vmatprep.subr.bf16.mxu0 %v4057_v32  ;;  %832 = vmatprep.subr.bf16.mxu1 %v4064_v33 }
 0x13d   :  { %821 = vmatprep.mubr.bf16.mxu0 %v5585_v9  ;;  %862 = vmatprep.mubr.bf16.mxu1 %v5585_v9 }
 0x13f   :  { %792 = vmatpush1.bf16.msra.mxu0 %v4071_v34  ;;  %833 = vmatpush1.bf16.msra.mxu1 %v4076_v35 }
 0x140   :  { %793 = vmatprep.subr.bf16.mxu0 %v4089_v38  ;;  %834 = vmatprep.subr.bf16.mxu1 %v4096_v39 }
 0x143   :  { %794 = vmatpush1.bf16.msra.mxu0 %v4103_v41  ;;  %835 = vmatpush1.bf16.msra.mxu1 %v4110_v42 }
 0x144   :  { %795 = vmatprep.subr.bf16.mxu0 %v4117_v43  ;;  %836 = vmatprep.subr.bf16.mxu1 %v4122_v44 }
 0x147   :  { %796 = vmatpush1.bf16.msra.mxu0 %v4127_v45  ;;  %837 = vmatpush1.bf16.msra.mxu1 %v4132_v46 }
 0x148   :  { %797 = vmatprep.subr.bf16.mxu0 %v4147_v49  ;;  %838 = vmatprep.subr.bf16.mxu1 %v4154_v50 }
 0x14b   :  { %798 = vmatpush1.bf16.msra.mxu0 %v4163_v52  ;;  %839 = vmatpush1.bf16.msra.mxu1 %v4168_v53 }
 0x14c   :  { %799 = vmatprep.subr.bf16.mxu0 %v4175_v54  ;;  %840 = vmatprep.subr.bf16.mxu1 %v4180_v55 }
 0x14f   :  { %800 = vmatpush1.bf16.msra.mxu0 %v4187_v56  ;;  %841 = vmatpush1.bf16.msra.mxu1 %v4194_v57 }
 0x150   :  { %801 = vmatprep.subr.bf16.mxu0 %v4207_v60  ;;  %842 = vmatprep.subr.bf16.mxu1 %v4212_v61 }
 0x153   :  { %802 = vmatpush1.bf16.msra.mxu0 %v4221_v63  ;;  %843 = vmatpush1.bf16.msra.mxu1 %v4226_v0 }
 0x154   :  { %803 = vmatprep.subr.bf16.mxu0 %v4233_v2  ;;  %844 = vmatprep.subr.bf16.mxu1 %v4238_v3 }
 0x157   :  { %804 = vmatpush1.bf16.msra.mxu0 %v4247_v4  ;;  %845 = vmatpush1.bf16.msra.mxu1 %v4252_v5 }
 0x158   :  { %891 = vmatprep.subr.bf16.mxu0 %v4037_v27  ;;  %932 = vmatprep.subr.bf16.mxu1 %v4042_v28 }
 0x20d   :  { %v721_v37 = vpop.f32.mrb[20].mxu0  ;;  %v762_v12 = vpop.f32.mrb[20].mxu1 }
 0x20e   :  { %v769_v62 = vadd.f32 %v721_v37, %v4309_v23  ;;  %v771_v7 = vadd.f32 %v762_v12, %v4312_v25  ;;  %v723_v11 = vpop.f32.mrb[21].mxu0  ;;  %v764_v22 = vpop.f32.mrb[21].mxu1 }
 0x20f   :  { %v770_v40 = vadd.f32 %v723_v11, %v4314_v29  ;;  %v772_v14 = vadd.f32 %v764_v22, %v4317_v36  ;;  %v725_v13 = vpop.f32.mrb[22].mxu0  ;;  %v766_v15 = vpop.f32.mrb[22].mxu1 }
 0x210   :  { %3753 = vtanh.f32 %v769_v62  ;;  %v726_v17 = vpop.f32.mrb[23].mxu0  ;;  %v767_v16 = vpop.f32.mrb[23].mxu1 }
 0x211   :  { %3755 = vtanh.f32 %v770_v40 }
 0x212   :  { %3757 = vtanh.f32 %v771_v7 }
 0x213   :  { %3759 = vtanh.f32 %v772_v14 }
 0x21a   :  { %v3754_v18 = vpop.eup %3753 }
 0x21b   :  { %v777_v19 = vmul.f32 0.5, %v3754_v18  ;;  %v3756_v1 = vpop.eup %3755 }
 0x21c   :  { %v779_v23 = vmul.f32 0.5, %v3756_v1  ;;  %v3758_v25 = vpop.eup %3757 }
 0x21d   :  { %v778_v20 = vadd.f32 0.5, %v777_v19  ;;  %v3760_v36 = vpop.eup %3759 }
 0x21e   :  { %v780_v8 = vadd.f32 0.5, %v779_v23  ;;  %v781_v48 = vmul.f32 0.5, %v3760_v36 }
 0x21f   :  { %v784_v58 = vmul.f32 %v3758_v25, %v778_v20 }
 0x220   :  { %v783_v29 = vmul.f32 %v780_v8, %v4383_v26  ;;  %v782_v10 = vadd.f32 0.5, %v781_v48 }
 0x222   :  { %v4425_v24 = vadd.f32 %v784_v58, %v783_v29 }
 0x224   :  { %3761 = vtanh.f32 %v4425_v24 }
 0x22e   :  { %v3762_v21 = vpop.eup %3761 }
 0x22f   :  { %v787_v37 = vmul.f32 %v3762_v21, %v782_v10 }
 0x231   :  { %v788_v12 = vpack.c.bf16 %v787_v37, %v787_v37 }
 0x233   :  { %822 = vmatmul.mubr.bf16.vlgmr.msra.gmra.mrb[24].mxu0 %v788_v12  ;;  %863 = vmatmul.mubr.bf16.vlgmr.msra.gmra.mrb[24].mxu1 %v788_v12  ;;  %v5586_v12 = vld [vmem:[#allocation2_spill] sm:$0xff] }
 0x234   :  { %892 = vmatpush1.bf16.msra.mxu0 %v4047_v30  ;;  %933 = vmatpush1.bf16.msra.mxu1 %v4052_v31 }
 0x235   :  { %893 = vmatprep.subr.bf16.mxu0 %v4057_v32  ;;  %934 = vmatprep.subr.bf16.mxu1 %v4064_v33 }
 0x236   :  { %923 = vmatprep.mubr.bf16.mxu0 %v5585_v9  ;;  %964 = vmatprep.mubr.bf16.mxu1 %v5585_v9 }
 0x238   :  { %894 = vmatpush1.bf16.msra.mxu0 %v4071_v34  ;;  %935 = vmatpush1.bf16.msra.mxu1 %v4076_v35 }
 0x239   :  { %895 = vmatprep.subr.bf16.mxu0 %v4089_v38  ;;  %936 = vmatprep.subr.bf16.mxu1 %v4096_v39 }
 0x23c   :  { %896 = vmatpush1.bf16.msra.mxu0 %v4103_v41  ;;  %937 = vmatpush1.bf16.msra.mxu1 %v4110_v42 }
 0x23d   :  { %897 = vmatprep.subr.bf16.mxu0 %v4117_v43  ;;  %938 = vmatprep.subr.bf16.mxu1 %v4122_v44 }
 0x240   :  { %898 = vmatpush1.bf16.msra.mxu0 %v4127_v45  ;;  %939 = vmatpush1.bf16.msra.mxu1 %v4132_v46 }
 0x241   :  { %899 = vmatprep.subr.bf16.mxu0 %v4147_v49  ;;  %940 = vmatprep.subr.bf16.mxu1 %v4154_v50 }
 0x244   :  { %900 = vmatpush1.bf16.msra.mxu0 %v4163_v52  ;;  %941 = vmatpush1.bf16.msra.mxu1 %v4168_v53 }
 0x245   :  { %901 = vmatprep.subr.bf16.mxu0 %v4175_v54  ;;  %942 = vmatprep.subr.bf16.mxu1 %v4180_v55 }
 0x248   :  { %902 = vmatpush1.bf16.msra.mxu0 %v4187_v56  ;;  %943 = vmatpush1.bf16.msra.mxu1 %v4194_v57 }
 0x249   :  { %903 = vmatprep.subr.bf16.mxu0 %v4207_v60  ;;  %944 = vmatprep.subr.bf16.mxu1 %v4212_v61 }
 0x24c   :  { %904 = vmatpush1.bf16.msra.mxu0 %v4221_v63  ;;  %945 = vmatpush1.bf16.msra.mxu1 %v4226_v0 }
 0x24d   :  { %905 = vmatprep.subr.bf16.mxu0 %v4233_v2  ;;  %946 = vmatprep.subr.bf16.mxu1 %v4238_v3 }
 0x250   :  { %906 = vmatpush1.bf16.msra.mxu0 %v4247_v4  ;;  %947 = vmatpush1.bf16.msra.mxu1 %v4252_v5 }
 0x251   :  { %993 = vmatprep.subr.bf16.mxu0 %v4037_v27  ;;  %1034 = vmatprep.subr.bf16.mxu1 %v4042_v28 }
 0x306   :  { %v823_v26 = vpop.f32.mrb[24].mxu0  ;;  %v864_v62 = vpop.f32.mrb[24].mxu1 }
 0x307   :  { %v871_v7 = vadd.f32 %v823_v26, %v4319_v47  ;;  %v873_v11 = vadd.f32 %v864_v62, %v4322_v51  ;;  %v825_v22 = vpop.f32.mrb[25].mxu0  ;;  %v866_v40 = vpop.f32.mrb[25].mxu1  ;;  %v5587_v62 = vld [vmem:[#allocation3_spill] sm:$0xff] }
 0x308   :  { %v872_v14 = vadd.f32 %v825_v22, %v4324_v59  ;;  %v874_v13 = vadd.f32 %v866_v40, %v4327_v6  ;;  %v827_v15 = vpop.f32.mrb[26].mxu0  ;;  %v868_v17 = vpop.f32.mrb[26].mxu1  ;;  %v5588_v40 = vld [vmem:[#allocation4_spill] sm:$0xff] }
 0x309   :  { %3763 = vtanh.f32 %v871_v7  ;;  %v828_v16 = vpop.f32.mrb[27].mxu0  ;;  %v869_v18 = vpop.f32.mrb[27].mxu1 }
 0x30a   :  { %3765 = vtanh.f32 %v872_v14 }
 0x30b   :  { %3767 = vtanh.f32 %v873_v11 }
 0x30c   :  { %3769 = vtanh.f32 %v874_v13  ;;  %v5589_v13 = vld [vmem:[#allocation5_spill] sm:$0xff] }
 0x313   :  { %v3764_v19 = vpop.eup %3763 }
 0x314   :  { %v879_v1 = vmul.f32 0.5, %v3764_v19  ;;  %v3766_v20 = vpop.eup %3765 }
 0x315   :  { %v881_v47 = vmul.f32 0.5, %v3766_v20  ;;  %v3768_v51 = vpop.eup %3767 }
 0x316   :  { %v880_v23 = vadd.f32 0.5, %v879_v1  ;;  %v3770_v6 = vpop.eup %3769 }
 0x317   :  { %v882_v25 = vadd.f32 0.5, %v881_v47  ;;  %v883_v29 = vmul.f32 0.5, %v3770_v6 }
 0x318   :  { %v886_v8 = vmul.f32 %v3768_v51, %v880_v23 }
 0x319   :  { %v885_v59 = vmul.f32 %v882_v25, %v4425_v24  ;;  %v884_v36 = vadd.f32 0.5, %v883_v29 }
 0x31b   :  { %v4467_v58 = vadd.f32 %v886_v8, %v885_v59 }
 0x31d   :  { %3771 = vtanh.f32 %v4467_v58 }
 0x327   :  { %v3772_v48 = vpop.eup %3771 }
 0x328   :  { %v889_v10 = vmul.f32 %v3772_v48, %v884_v36 }
 0x32a   :  { %v890_v21 = vpack.c.bf16 %v889_v10, %v889_v10 }
 0x32c   :  { %924 = vmatmul.mubr.bf16.vlgmr.msra.gmra.mrb[28].mxu0 %v890_v21  ;;  %965 = vmatmul.mubr.bf16.vlgmr.msra.gmra.mrb[28].mxu1 %v890_v21 }
 0x32d   :  { %994 = vmatpush1.bf16.msra.mxu0 %v4047_v30  ;;  %1035 = vmatpush1.bf16.msra.mxu1 %v4052_v31 }
 0x32e   :  { %995 = vmatprep.subr.bf16.mxu0 %v4057_v32  ;;  %1036 = vmatprep.subr.bf16.mxu1 %v4064_v33 }
 0x32f   :  { %1025 = vmatprep.mubr.bf16.mxu0 %v5585_v9  ;;  %1066 = vmatprep.mubr.bf16.mxu1 %v5585_v9 }
 0x331   :  { %996 = vmatpush1.bf16.msra.mxu0 %v4071_v34  ;;  %1037 = vmatpush1.bf16.msra.mxu1 %v4076_v35 }
 0x332   :  { %997 = vmatprep.subr.bf16.mxu0 %v4089_v38  ;;  %1038 = vmatprep.subr.bf16.mxu1 %v4096_v39 }
 0x335   :  { %998 = vmatpush1.bf16.msra.mxu0 %v4103_v41  ;;  %1039 = vmatpush1.bf16.msra.mxu1 %v4110_v42 }
 0x336   :  { %999 = vmatprep.subr.bf16.mxu0 %v4117_v43  ;;  %1040 = vmatprep.subr.bf16.mxu1 %v4122_v44 }
 0x339   :  { %1000 = vmatpush1.bf16.msra.mxu0 %v4127_v45  ;;  %1041 = vmatpush1.bf16.msra.mxu1 %v4132_v46 }
 0x33a   :  { %1001 = vmatprep.subr.bf16.mxu0 %v4147_v49  ;;  %1042 = vmatprep.subr.bf16.mxu1 %v4154_v50 }
 0x33d   :  { %1002 = vmatpush1.bf16.msra.mxu0 %v4163_v52  ;;  %1043 = vmatpush1.bf16.msra.mxu1 %v4168_v53 }
 0x33e   :  { %1003 = vmatprep.subr.bf16.mxu0 %v4175_v54  ;;  %1044 = vmatprep.subr.bf16.mxu1 %v4180_v55 }
 0x341   :  { %1004 = vmatpush1.bf16.msra.mxu0 %v4187_v56  ;;  %1045 = vmatpush1.bf16.msra.mxu1 %v4194_v57 }
 0x342   :  { %1005 = vmatprep.subr.bf16.mxu0 %v4207_v60  ;;  %1046 = vmatprep.subr.bf16.mxu1 %v4212_v61 }
 0x345   :  { %1006 = vmatpush1.bf16.msra.mxu0 %v4221_v63  ;;  %1047 = vmatpush1.bf16.msra.mxu1 %v4226_v0 }
 0x346   :  { %1007 = vmatprep.subr.bf16.mxu0 %v4233_v2  ;;  %1048 = vmatprep.subr.bf16.mxu1 %v4238_v3 }
 0x349   :  { %1008 = vmatpush1.bf16.msra.mxu0 %v4247_v4  ;;  %1049 = vmatpush1.bf16.msra.mxu1 %v4252_v5 }
 0x34a   :  { %1095 = vmatprep.subr.bf16.mxu0 %v4037_v27  ;;  %1136 = vmatprep.subr.bf16.mxu1 %v4042_v28 }
 0x3ff   :  { %v925_v24 = vpop.f32.mrb[28].mxu0  ;;  %v966_v37 = vpop.f32.mrb[28].mxu1 }
 0x400   :  { %v973_v26 = vadd.f32 %v925_v24, %v5586_v12  ;;  %v975_v7 = vadd.f32 %v966_v37, %v5587_v62  ;;  %v927_v11 = vpop.f32.mrb[29].mxu0  ;;  %v968_v22 = vpop.f32.mrb[29].mxu1  ;;  %v5593_v12 = vld [vmem:[#allocation9_spill] sm:$0xff] }
 0x401   :  { %v974_v14 = vadd.f32 %v927_v11, %v5588_v40  ;;  %v976_v15 = vadd.f32 %v968_v22, %v5589_v13  ;;  %v929_v17 = vpop.f32.mrb[30].mxu0  ;;  %v970_v16 = vpop.f32.mrb[30].mxu1 }
 0x402   :  { %3773 = vtanh.f32 %v973_v26  ;;  %v930_v18 = vpop.f32.mrb[31].mxu0  ;;  %v971_v19 = vpop.f32.mrb[31].mxu1 }
 0x403   :  { %3775 = vtanh.f32 %v974_v14 }
 0x404   :  { %3777 = vtanh.f32 %v975_v7 }
 0x405   :  { %3779 = vtanh.f32 %v976_v15 }
 0x40c   :  { %v3774_v1 = vpop.eup %3773 }
 0x40d   :  { %v981_v20 = vmul.f32 0.5, %v3774_v1  ;;  %v3776_v23 = vpop.eup %3775 }
 0x40e   :  { %v983_v51 = vmul.f32 0.5, %v3776_v23  ;;  %v3778_v25 = vpop.eup %3777 }
 0x40f   :  { %v982_v47 = vadd.f32 0.5, %v981_v20  ;;  %v3780_v36 = vpop.eup %3779 }
 0x410   :  { %v984_v8 = vadd.f32 0.5, %v983_v51  ;;  %v985_v48 = vmul.f32 0.5, %v3780_v36  ;;  %v4583_v36 = vld [vmem:[%s5564_s22 + $0x20] ss:$16 sps:$4 sm:$0xff]  }
 0x411   :  { %v988_v59 = vmul.f32 %v3778_v25, %v982_v47 }
 0x412   :  { %v987_v6 = vmul.f32 %v984_v8, %v4467_v58  ;;  %v986_v10 = vadd.f32 0.5, %v985_v48  ;;  %v4557_v8 = vld [vmem:[%s5564_s22] ss:$16 sps:$4 sm:$0xff]   ;;  %v4589_v48 = vld [vmem:[%s5564_s22 + $0x28] ss:$16 sps:$4 sm:$0xff]  }
 0x414   :  { %v4509_v29 = vadd.f32 %v988_v59, %v987_v6  ;;  %v4563_v59 = vld [vmem:[%s5564_s22 + $0x8] ss:$16 sps:$4 sm:$0xff]   ;;  %v4569_v6 = vld [vmem:[%s5564_s22 + $0x24] ss:$16 sps:$4 sm:$0xff]  }
 0x416   :  { %3781 = vtanh.f32 %v4509_v29 }
 0x420   :  { %v3782_v21 = vpop.eup %3781 }
 0x421   :  { %v991_v24 = vmul.f32 %v3782_v21, %v986_v10  ;;  %v4595_v10 = vld [vmem:[%s5564_s22 + $0x44] ss:$16 sps:$4 sm:$0xff]   ;;  %v4601_v21 = vld [vmem:[%s5564_s22 + $0x4c] ss:$16 sps:$4 sm:$0xff]  }
 0x423   :  { %v992_v37 = vpack.c.bf16 %v991_v24, %v991_v24  ;;  %v4607_v24 = vld [vmem:[%s5564_s22 + $0x40] ss:$16 sps:$4 sm:$0xff]  }
 0x425   :  { %1026 = vmatmul.mubr.bf16.vlgmr.msra.gmra.mrb[32].mxu0 %v992_v37  ;;  %1067 = vmatmul.mubr.bf16.vlgmr.msra.gmra.mrb[32].mxu1 %v992_v37 }
 0x426   :  { %1096 = vmatpush1.bf16.msra.mxu0 %v4047_v30  ;;  %1137 = vmatpush1.bf16.msra.mxu1 %v4052_v31 }
 0x427   :  { %1097 = vmatprep.subr.bf16.mxu0 %v4057_v32  ;;  %1138 = vmatprep.subr.bf16.mxu1 %v4064_v33  ;;  %v5590_v32 = vld [vmem:[#allocation6_spill] sm:$0xff] }
 0x428   :  { %1127 = vmatprep.mubr.bf16.mxu0 %v5585_v9  ;;  %1168 = vmatprep.mubr.bf16.mxu1 %v5585_v9 }
 0x42a   :  { %1098 = vmatpush1.bf16.msra.mxu0 %v4071_v34  ;;  %1139 = vmatpush1.bf16.msra.mxu1 %v4076_v35  ;;  %v5591_v34 = vld [vmem:[#allocation7_spill] sm:$0xff] }
 0x42b   :  { %1099 = vmatprep.subr.bf16.mxu0 %v4089_v38  ;;  %1140 = vmatprep.subr.bf16.mxu1 %v4096_v39 }
 0x42e   :  { %1100 = vmatpush1.bf16.msra.mxu0 %v4103_v41  ;;  %1141 = vmatpush1.bf16.msra.mxu1 %v4110_v42  ;;  %v5592_v41 = vld [vmem:[#allocation8_spill] sm:$0xff] }
 0x42f   :  { %1101 = vmatprep.subr.bf16.mxu0 %v4117_v43  ;;  %1142 = vmatprep.subr.bf16.mxu1 %v4122_v44 }
 0x432   :  { %1102 = vmatpush1.bf16.msra.mxu0 %v4127_v45  ;;  %1143 = vmatpush1.bf16.msra.mxu1 %v4132_v46 }
 0x433   :  { %1103 = vmatprep.subr.bf16.mxu0 %v4147_v49  ;;  %1144 = vmatprep.subr.bf16.mxu1 %v4154_v50 }
 0x436   :  { %1104 = vmatpush1.bf16.msra.mxu0 %v4163_v52  ;;  %1145 = vmatpush1.bf16.msra.mxu1 %v4168_v53 }
 0x437   :  { %1105 = vmatprep.subr.bf16.mxu0 %v4175_v54  ;;  %1146 = vmatprep.subr.bf16.mxu1 %v4180_v55 }
 0x43a   :  { %1106 = vmatpush1.bf16.msra.mxu0 %v4187_v56  ;;  %1147 = vmatpush1.bf16.msra.mxu1 %v4194_v57 }
 0x43b   :  { %1107 = vmatprep.subr.bf16.mxu0 %v4207_v60  ;;  %1148 = vmatprep.subr.bf16.mxu1 %v4212_v61 }
 0x43e   :  { %1108 = vmatpush1.bf16.msra.mxu0 %v4221_v63  ;;  %1149 = vmatpush1.bf16.msra.mxu1 %v4226_v0 }
 0x43f   :  { %1109 = vmatprep.subr.bf16.mxu0 %v4233_v2  ;;  %1150 = vmatprep.subr.bf16.mxu1 %v4238_v3 }
 0x442   :  { %1110 = vmatpush1.bf16.msra.mxu0 %v4247_v4  ;;  %1151 = vmatpush1.bf16.msra.mxu1 %v4252_v5 }
 0x443   :  { %1197 = vmatprep.subr.bf16.mxu0 %v4037_v27  ;;  %1238 = vmatprep.subr.bf16.mxu1 %v4042_v28 }
 0x4f8   :  { %v1027_v30 = vpop.f32.mrb[32].mxu0  ;;  %v1068_v31 = vpop.f32.mrb[32].mxu1 }
 0x4f9   :  { %v1075_v33 = vadd.f32 %v1027_v30, %v5590_v32  ;;  %v1077_v35 = vadd.f32 %v1068_v31, %v5591_v34  ;;  %v1029_v38 = vpop.f32.mrb[33].mxu0  ;;  %v1070_v39 = vpop.f32.mrb[33].mxu1 }
 0x4fa   :  { %v1076_v58 = vadd.f32 %v1029_v38, %v5592_v41  ;;  %v1078_v26 = vadd.f32 %v1070_v39, %v5593_v12  ;;  %v1031_v62 = vpop.f32.mrb[34].mxu0  ;;  %v1072_v7 = vpop.f32.mrb[34].mxu1 }
 0x4fb   :  { %3783 = vtanh.f32 %v1075_v33  ;;  %v1032_v11 = vpop.f32.mrb[35].mxu0  ;;  %v1073_v22 = vpop.f32.mrb[35].mxu1  ;;  %v3836_v62 = vld [vmem:[%s5564_s22 + $0x48] ss:$16 sps:$4 sm:$0xff]   ;;  %v3837_v7 = vld [vmem:[%s5564_s22 + $0x64] ss:$16 sps:$4 sm:$0xff]  }
 0x4fc   :  { %3785 = vtanh.f32 %v1076_v58  ;;  %v3838_v11 = vld [vmem:[%s5564_s22 + $0x6c] ss:$16 sps:$4 sm:$0xff]   ;;  %v3839_v22 = vld [vmem:[%s5564_s22 + $0x60] ss:$16 sps:$4 sm:$0xff]  }
 0x4fd   :  { %3787 = vtanh.f32 %v1077_v35 }
 0x4fe   :  { %3789 = vtanh.f32 %v1078_v26 }
 0x505   :  { %v3784_v27 = vpop.eup %3783 }
 0x506   :  { %v1083_v28 = vmul.f32 0.5, %v3784_v27  ;;  %v3786_v40 = vpop.eup %3785  ;;  %v3840_v27 = vld [vmem:[%s5564_s22 + $0x68] ss:$16 sps:$4 sm:$0xff]  }
 0x507   :  { %v1085_v13 = vmul.f32 0.5, %v3786_v40  ;;  %v3788_v15 = vpop.eup %3787  ;;  %v3842_v40 = vld [vmem:[%s5564_s22 + $0x8c] ss:$16 sps:$4 sm:$0xff]  }
 0x508   :  { %v1084_v14 = vadd.f32 0.5, %v1083_v28  ;;  %v3790_v1 = vpop.eup %3789  ;;  %v3841_v28 = vld [vmem:[%s5564_s22 + $0x84] ss:$16 sps:$4 sm:$0xff]  }
 0x509   :  { %v1086_v17 = vadd.f32 0.5, %v1085_v13  ;;  %v1087_v20 = vmul.f32 0.5, %v3790_v1  ;;  %v3844_v13 = vld [vmem:[%s5564_s22 + $0x88] ss:$16 sps:$4 sm:$0xff]   ;;  %v3850_v1 = vld [vmem:[%s5564_s22 + $0xcc] ss:$16 sps:$4 sm:$0xff]  }
 0x50a   :  { %v1090_v16 = vmul.f32 %v3788_v15, %v1084_v14  ;;  %v3843_v14 = vld [vmem:[%s5564_s22 + $0x80] ss:$16 sps:$4 sm:$0xff]   ;;  %v3845_v15 = vld [vmem:[%s5564_s22 + $0xa4] ss:$16 sps:$4 sm:$0xff]  }
 0x50b   :  { %v1089_v18 = vmul.f32 %v1086_v17, %v4509_v29  ;;  %v1088_v23 = vadd.f32 0.5, %v1087_v20  ;;  %v4575_v29 = vld [vmem:[%s5564_s22 + $0x2c] ss:$16 sps:$4 sm:$0xff]   ;;  %v3851_v20 = vld [vmem:[%s5564_s22 + $0xc0] ss:$16 sps:$4 sm:$0xff]  }
 0x50c   :  { %v3846_v17 = vld [vmem:[%s5564_s22 + $0xac] ss:$16 sps:$4 sm:$0xff]  }
 0x50d   :  { %v4551_v19 = vadd.f32 %v1090_v16, %v1089_v18  ;;  %v3847_v16 = vld [vmem:[%s5564_s22 + $0xa0] ss:$16 sps:$4 sm:$0xff]   ;;  %v3848_v18 = vld [vmem:[%s5564_s22 + $0xa8] ss:$16 sps:$4 sm:$0xff]  }
 0x50f   :  { %3791 = vtanh.f32 %v4551_v19 }
 0x519   :  { %v3792_v47 = vpop.eup %3791 }
 0x51a   :  { %v1093_v51 = vmul.f32 %v3792_v47, %v1088_v23  ;;  %v3852_v23 = vld [vmem:[%s5564_s22 + $0xc8] ss:$16 sps:$4 sm:$0xff]   ;;  %v3853_v47 = vld [vmem:[%s5564_s22 + $0xe4] ss:$16 sps:$4 sm:$0xff]  }
 0x51c   :  { %v1094_v25 = vpack.c.bf16 %v1093_v51, %v1093_v51  ;;  %v3854_v51 = vld [vmem:[%s5564_s22 + $0xec] ss:$16 sps:$4 sm:$0xff]  }
 0x51e   :  { %1128 = vmatmul.mubr.bf16.vlgmr.msra.gmra.mrb[36].mxu0 %v1094_v25  ;;  %1169 = vmatmul.mubr.bf16.vlgmr.msra.gmra.mrb[36].mxu1 %v1094_v25  ;;  %v3855_v25 = vld [vmem:[%s5564_s22 + $0xe0] ss:$16 sps:$4 sm:$0xff]  }
 0x51f   :  { %1198 = vmatpush1.bf16.msra.mxu0 %v4557_v8  ;;  %1239 = vmatpush1.bf16.msra.mxu1 %v4563_v59 }
 0x520   :  { %1199 = vmatprep.subr.bf16.mxu0 %v4569_v6  ;;  %1240 = vmatprep.subr.bf16.mxu1 %v4575_v29 }
 0x521   :  { %1229 = vmatprep.mubr.bf16.mxu0 %v5585_v9  ;;  %1270 = vmatprep.mubr.bf16.mxu1 %v5585_v9 }
 0x523   :  { %1200 = vmatpush1.bf16.msra.mxu0 %v4583_v36  ;;  %1241 = vmatpush1.bf16.msra.mxu1 %v4589_v48 }
 0x524   :  { %1201 = vmatprep.subr.bf16.mxu0 %v4595_v10  ;;  %1242 = vmatprep.subr.bf16.mxu1 %v4601_v21 }
 0x527   :  { %1202 = vmatpush1.bf16.msra.mxu0 %v4607_v24  ;;  %1243 = vmatpush1.bf16.msra.mxu1 %v4110_v42  ;;  %v3834_v42 = vld [vmem:[%s5564_s22 + $0x4] ss:$16 sps:$4 sm:$0xff]  }
 0x528   :  { %1203 = vmatprep.subr.bf16.mxu0 %v4117_v43  ;;  %1244 = vmatprep.subr.bf16.mxu1 %v4122_v44  ;;  %v3835_v43 = vld [vmem:[%s5564_s22 + $0xc] ss:$16 sps:$4 sm:$0xff]  }
 0x52b   :  { %1204 = vmatpush1.bf16.msra.mxu0 %v4127_v45  ;;  %1245 = vmatpush1.bf16.msra.mxu1 %v4132_v46  ;;  %v5594_v46 = vld [vmem:[#allocation10_spill] sm:$0xff] }
 0x52c   :  { %1205 = vmatprep.subr.bf16.mxu0 %v4147_v49  ;;  %1246 = vmatprep.subr.bf16.mxu1 %v4154_v50  ;;  %v5595_v50 = vld [vmem:[#allocation11_spill] sm:$0xff] }
 0x52f   :  { %1206 = vmatpush1.bf16.msra.mxu0 %v4163_v52  ;;  %1247 = vmatpush1.bf16.msra.mxu1 %v4168_v53 }
 0x530   :  { %1207 = vmatprep.subr.bf16.mxu0 %v4175_v54  ;;  %1248 = vmatprep.subr.bf16.mxu1 %v4180_v55  ;;  %v5596_v55 = vld [vmem:[#allocation12_spill] sm:$0xff] }
 0x533   :  { %1208 = vmatpush1.bf16.msra.mxu0 %v4187_v56  ;;  %1249 = vmatpush1.bf16.msra.mxu1 %v4194_v57  ;;  %v5597_v57 = vld [vmem:[#allocation13_spill] sm:$0xff] }
 0x534   :  { %1209 = vmatprep.subr.bf16.mxu0 %v4207_v60  ;;  %1250 = vmatprep.subr.bf16.mxu1 %v4212_v61 }
 0x537   :  { %1210 = vmatpush1.bf16.msra.mxu0 %v4221_v63  ;;  %1251 = vmatpush1.bf16.msra.mxu1 %v4226_v0 }
 0x538   :  { %1211 = vmatprep.subr.bf16.mxu0 %v4233_v2  ;;  %1252 = vmatprep.subr.bf16.mxu1 %v4238_v3 }
 0x53b   :  { %1212 = vmatpush1.bf16.msra.mxu0 %v4247_v4  ;;  %1253 = vmatpush1.bf16.msra.mxu1 %v4252_v5 }
 0x53c   :  { %1299 = vmatprep.subr.bf16.mxu0 %v3834_v42  ;;  %1340 = vmatprep.subr.bf16.mxu1 %v3835_v43  ;;  %v5600_v42 = vld [vmem:[#allocation16_spill] sm:$0xff] }
 0x5f1   :  { %v1129_v44 = vpop.f32.mrb[36].mxu0  ;;  %v1170_v45 = vpop.f32.mrb[36].mxu1 }
 0x5f2   :  { %v1177_v49 = vadd.f32 %v1129_v44, %v5594_v46  ;;  %v1179_v52 = vadd.f32 %v1170_v45, %v5595_v50  ;;  %v1131_v53 = vpop.f32.mrb[37].mxu0  ;;  %v1172_v54 = vpop.f32.mrb[37].mxu1  ;;  %v5601_v44 = vld [vmem:[#allocation17_spill] sm:$0xff] }
 0x5f3   :  { %v1178_v56 = vadd.f32 %v1131_v53, %v5596_v55  ;;  %v1180_v60 = vadd.f32 %v1172_v54, %v5597_v57  ;;  %v1133_v61 = vpop.f32.mrb[38].mxu0  ;;  %v1174_v63 = vpop.f32.mrb[38].mxu1 }
 0x5f4   :  { %3793 = vtanh.f32 %v1177_v49  ;;  %v1134_v0 = vpop.f32.mrb[39].mxu0  ;;  %v1175_v2 = vpop.f32.mrb[39].mxu1 }
 0x5f5   :  { %3795 = vtanh.f32 %v1178_v56 }
 0x5f6   :  { %3797 = vtanh.f32 %v1179_v52 }
 0x5f7   :  { %3799 = vtanh.f32 %v1180_v60 }
 0x5fe   :  { %v3794_v3 = vpop.eup %3793 }
 0x5ff   :  { %v1185_v4 = vmul.f32 0.5, %v3794_v3  ;;  %v3796_v5 = vpop.eup %3795 }
 0x600   :  { %v1187_v30 = vmul.f32 0.5, %v3796_v5  ;;  %v3798_v31 = vpop.eup %3797 }
 0x601   :  { %v1186_v37 = vadd.f32 0.5, %v1185_v4  ;;  %v3800_v38 = vpop.eup %3799 }
 0x602   :  { %v1188_v32 = vadd.f32 0.5, %v1187_v30  ;;  %v1189_v39 = vmul.f32 0.5, %v3800_v38  ;;  %v3668_v38 = vld [vmem:[%s5543_s4 + $0x34] ss:$24 sps:$4 sm:$0xff]  }
 0x603   :  { %v1192_v33 = vmul.f32 %v3798_v31, %v1186_v37 }
 0x604   :  { %v1191_v34 = vmul.f32 %v1188_v32, %v4551_v19  ;;  %v1190_v41 = vadd.f32 0.5, %v1189_v39  ;;  %v3849_v19 = vld [vmem:[%s5564_s22 + $0xc4] ss:$16 sps:$4 sm:$0xff]   ;;  %v3666_v39 = vld [vmem:[%s5543_s4 + $0x30] ss:$24 sps:$4 sm:$0xff]  }
 0x605   :  { %v3662_v32 = vld [vmem:[%s5543_s4 + $0x4] ss:$24 sps:$4 sm:$0xff]  }
 0x606   :  { %v4642_v35 = vadd.f32 %v1192_v33, %v1191_v34  ;;  %v3660_v33 = vld [vmem:[%s5543_s4] ss:$24 sps:$4 sm:$0xff]  }
 0x607   :  { %v3663_v34 = vld [vmem:[%s5543_s4 + $0x8] ss:$24 sps:$4 sm:$0xff]  }
 0x608   :  { %3801 = vtanh.f32 %v4642_v35 }
 0x612   :  { %v3802_v58 = vpop.eup %3801 }
 0x613   :  { %v1195_v12 = vmul.f32 %v3802_v58, %v1190_v41  ;;  %v3671_v41 = vld [vmem:[%s5543_s4 + $0x3c] ss:$24 sps:$4 sm:$0xff]   ;;  %v3669_v58 = vld [vmem:[%s5543_s4 + $0x38] ss:$24 sps:$4 sm:$0xff]  }
 0x615   :  { %v1196_v26 = vpack.c.bf16 %v1195_v12, %v1195_v12  ;;  %v3674_v12 = vld [vmem:[%s5543_s4 + $0x64] ss:$24 sps:$4 sm:$0xff]  }
 0x617   :  { %1230 = vmatmul.mubr.bf16.vlgmr.msra.gmra.mrb[40].mxu0 %v1196_v26  ;;  %1271 = vmatmul.mubr.bf16.vlgmr.msra.gmra.mrb[40].mxu1 %v1196_v26  ;;  %v3672_v26 = vld [vmem:[%s5543_s4 + $0x60] ss:$24 sps:$4 sm:$0xff]  }
 0x618   :  { %1300 = vmatpush1.bf16.msra.mxu0 %v4557_v8  ;;  %1341 = vmatpush1.bf16.msra.mxu1 %v4563_v59  ;;  %v3856_v8 = vld [vmem:[%s5564_s22 + $0xe8] ss:$16 sps:$4 sm:$0xff]   ;;  %s3858_s22 = smov 32  }
 0x619   :  { %1301 = vmatprep.subr.bf16.mxu0 %v4569_v6  ;;  %1342 = vmatprep.subr.bf16.mxu1 %v4575_v29  ;;  %v5598_v29 = vld [vmem:[#allocation14_spill] sm:$0xff] }
 0x61a   :  { %1331 = vmatprep.mubr.bf16.mxu0 %v5585_v9  ;;  %1372 = vmatprep.mubr.bf16.mxu1 %v5585_v9 }
 0x61c   :  { %1302 = vmatpush1.bf16.msra.mxu0 %v4583_v36  ;;  %1343 = vmatpush1.bf16.msra.mxu1 %v4589_v48  ;;  %v5599_v48 = vld [vmem:[#allocation15_spill] sm:$0xff] }
 0x61d   :  { %1303 = vmatprep.subr.bf16.mxu0 %v4595_v10  ;;  %1344 = vmatprep.subr.bf16.mxu1 %v4601_v21 }
 0x620   :  { %1304 = vmatpush1.bf16.msra.mxu0 %v4607_v24  ;;  %1345 = vmatpush1.bf16.msra.mxu1 %v3836_v62  ;;  %v3677_v62 = vld [vmem:[%s5543_s4 + $0x6c] ss:$24 sps:$4 sm:$0xff]  }
 0x621   :  { %1305 = vmatprep.subr.bf16.mxu0 %v3837_v7  ;;  %1346 = vmatprep.subr.bf16.mxu1 %v3838_v11  ;;  %v3675_v7 = vld [vmem:[%s5543_s4 + $0x68] ss:$24 sps:$4 sm:$0xff]   ;;  %v3680_v11 = vld [vmem:[%s5543_s4 + $0x94] ss:$24 sps:$4 sm:$0xff]  }
 0x624   :  { %1306 = vmatpush1.bf16.msra.mxu0 %v3839_v22  ;;  %1347 = vmatpush1.bf16.msra.mxu1 %v3840_v27  ;;  %v3678_v22 = vld [vmem:[%s5543_s4 + $0x90] ss:$24 sps:$4 sm:$0xff]   ;;  %v3683_v27 = vld [vmem:[%s5543_s4 + $0x9c] ss:$24 sps:$4 sm:$0xff]  }
 0x625   :  { %1307 = vmatprep.subr.bf16.mxu0 %v3841_v28  ;;  %1348 = vmatprep.subr.bf16.mxu1 %v3842_v40  ;;  %v3681_v28 = vld [vmem:[%s5543_s4 + $0x98] ss:$24 sps:$4 sm:$0xff]   ;;  %v3686_v40 = vld [vmem:[%s5543_s4 + $0xc4] ss:$24 sps:$4 sm:$0xff]  }
 0x628   :  { %1308 = vmatpush1.bf16.msra.mxu0 %v3843_v14  ;;  %1349 = vmatpush1.bf16.msra.mxu1 %v3844_v13  ;;  %v3684_v14 = vld [vmem:[%s5543_s4 + $0xc0] ss:$24 sps:$4 sm:$0xff]   ;;  %v3689_v13 = vld [vmem:[%s5543_s4 + $0xcc] ss:$24 sps:$4 sm:$0xff]  }
 0x629   :  { %1309 = vmatprep.subr.bf16.mxu0 %v3845_v15  ;;  %1350 = vmatprep.subr.bf16.mxu1 %v3846_v17  ;;  %v3687_v15 = vld [vmem:[%s5543_s4 + $0xc8] ss:$24 sps:$4 sm:$0xff]   ;;  %v3692_v17 = vld [vmem:[%s5543_s4 + $0xf4] ss:$24 sps:$4 sm:$0xff]  }
 0x62c   :  { %1310 = vmatpush1.bf16.msra.mxu0 %v3847_v16  ;;  %1351 = vmatpush1.bf16.msra.mxu1 %v3848_v18  ;;  %v3690_v16 = vld [vmem:[%s5543_s4 + $0xf0] ss:$24 sps:$4 sm:$0xff]   ;;  %v3695_v18 = vld [vmem:[%s5543_s4 + $0xfc] ss:$24 sps:$4 sm:$0xff]  }
 0x62d   :  { %1311 = vmatprep.subr.bf16.mxu0 %v3849_v19  ;;  %1352 = vmatprep.subr.bf16.mxu1 %v3850_v1  ;;  %v3693_v19 = vld [vmem:[%s5543_s4 + $0xf8] ss:$24 sps:$4 sm:$0xff]   ;;  %v3698_v1 = vld [vmem:[%s5543_s4 + $0x124] ss:$24 sps:$4 sm:$0xff]  }
 0x630   :  { %1312 = vmatpush1.bf16.msra.mxu0 %v3851_v20  ;;  %1353 = vmatpush1.bf16.msra.mxu1 %v3852_v23  ;;  %v3696_v20 = vld [vmem:[%s5543_s4 + $0x120] ss:$24 sps:$4 sm:$0xff]   ;;  %v3701_v23 = vld [vmem:[%s5543_s4 + $0x12c] ss:$24 sps:$4 sm:$0xff]  }
 0x631   :  { %1313 = vmatprep.subr.bf16.mxu0 %v3853_v47  ;;  %1354 = vmatprep.subr.bf16.mxu1 %v3854_v51  ;;  %v3699_v47 = vld [vmem:[%s5543_s4 + $0x128] ss:$24 sps:$4 sm:$0xff]   ;;  %v3704_v51 = vld [vmem:[%s5543_s4 + $0x154] ss:$24 sps:$4 sm:$0xff]  }
 0x634   :  { %1314 = vmatpush1.bf16.msra.mxu0 %v3855_v25  ;;  %1355 = vmatpush1.bf16.msra.mxu1 %v3856_v8  ;;  %v3702_v25 = vld [vmem:[%s5543_s4 + $0x150] ss:$24 sps:$4 sm:$0xff]   ;;  %v3707_v8 = vld [vmem:[%s5543_s4 + $0x15c] ss:$24 sps:$4 sm:$0xff]  }
 0x635   :  { %1689 = vmatprep.subr.bf16.mxu0 %v3662_v32 }
 0x6ea   :  { %v1231_v59 = vpop.f32.mrb[40].mxu0  ;;  %v1272_v6 = vpop.f32.mrb[40].mxu1 }
 0x6eb   :  { %v1279_v36 = vadd.f32 %v1231_v59, %v5598_v29  ;;  %v1281_v10 = vadd.f32 %v1272_v6, %v5599_v48  ;;  %v1233_v21 = vpop.f32.mrb[41].mxu0  ;;  %v1274_v24 = vpop.f32.mrb[41].mxu1  ;;  %v3705_v59 = vld [vmem:[%s5543_s4 + $0x158] ss:$24 sps:$4 sm:$0xff]   ;;  %v3710_v6 = vld [vmem:[%s5543_s4 + $0x14] ss:$24 sps:$4 sm:$0xff]  }
 0x6ec   :  { %v1280_v43 = vadd.f32 %v1233_v21, %v5600_v42  ;;  %v1282_v45 = vadd.f32 %v1274_v24, %v5601_v44  ;;  %v1235_v46 = vpop.f32.mrb[42].mxu0  ;;  %v1276_v49 = vpop.f32.mrb[42].mxu1  ;;  %v5602_v48 = vld [vmem:[#allocation18_spill] sm:$0xff]  ;;  %v5603_v21 = vld [vmem:[#allocation19_spill] sm:$0xff]  ;;  %v5604_v44 = vld [vmem:[#allocation20_spill] sm:$0xff] }
 0x6ed   :  { %3803 = vtanh.f32 %v1279_v36  ;;  %v1236_v50 = vpop.f32.mrb[43].mxu0  ;;  %v1277_v52 = vpop.f32.mrb[43].mxu1  ;;  %v5605_v46 = vld [vmem:[#allocation21_spill] sm:$0xff] }
 0x6ee   :  { %3805 = vtanh.f32 %v1280_v43 }
 0x6ef   :  { %3807 = vtanh.f32 %v1281_v10 }
 0x6f0   :  { %3809 = vtanh.f32 %v1282_v45 }
 0x6f7   :  { %v3804_v53 = vpop.eup %3803 }
 0x6f8   :  { %v1287_v54 = vmul.f32 0.5, %v3804_v53  ;;  %v3806_v55 = vpop.eup %3805 }
 0x6f9   :  { %v1289_v57 = vmul.f32 0.5, %v3806_v55  ;;  %v3808_v60 = vpop.eup %3807 }
 0x6fa   :  { %v1288_v56 = vadd.f32 0.5, %v1287_v54  ;;  %v3810_v3 = vpop.eup %3809 }
 0x6fb   :  { %v1290_v61 = vadd.f32 0.5, %v1289_v57  ;;  %v1291_v4 = vmul.f32 0.5, %v3810_v3 }
 0x6fc   :  { %v1294_v63 = vmul.f32 %v3808_v60, %v1288_v56 }
 0x6fd   :  { %v1293_v0 = vmul.f32 %v1290_v61, %v4642_v35  ;;  %v1292_v5 = vadd.f32 0.5, %v1291_v4  ;;  %v3665_v35 = vld [vmem:[%s5543_s4 + $0xc] ss:$24 sps:$4 sm:$0xff]  }
 0x6fe   :  { %1730 = vmatprep.subr.bf16.mxu1 %v3665_v35  ;;  %v3713_v35 = vld [vmem:[%s5543_s4 + $0x44] ss:$24 sps:$4 sm:$0xff]  }
 0x6ff   :  { %v4724_v2 = vadd.f32 %v1294_v63, %v1293_v0 }
 0x701   :  { %3811 = vtanh.f32 %v4724_v2 }
 0x70b   :  { %v3812_v37 = vpop.eup %3811 }
 0x70c   :  { %v1297_v30 = vmul.f32 %v3812_v37, %v1292_v5 }
 0x70e   :  { %v1298_v31 = vpack.c.bf16 %v1297_v30, %v1297_v30 }
 0x710   :  { %1332 = vmatmul.mubr.bf16.vlgmr.msra.gmra.mrb[44].mxu0 %v1298_v31  ;;  %1373 = vmatmul.mubr.bf16.vlgmr.msra.gmra.mrb[44].mxu1 %v1298_v31 }
 0x711   :  { %1721 = vmatprep.mubr.bf16.mxu0 %v5585_v9  ;;  %1762 = vmatprep.mubr.bf16.mxu1 %v5585_v9 }
 0x712   :  { %1690 = vmatpush1.bf16.msra.mxu0 %v3660_v33  ;;  %1731 = vmatpush1.bf16.msra.mxu1 %v3663_v34  ;;  %v3708_v34 = vld [vmem:[%s5543_s4 + $0x10] ss:$24 sps:$4 sm:$0xff]  }
 0x713   :  { %1691 = vmatprep.subr.bf16.mxu0 %v3668_v38  ;;  %1732 = vmatprep.subr.bf16.mxu1 %v3671_v41  ;;  %v3711_v38 = vld [vmem:[%s5543_s4 + $0x40] ss:$24 sps:$4 sm:$0xff]   ;;  %v3714_v41 = vld [vmem:[%s5543_s4 + $0x70] ss:$24 sps:$4 sm:$0xff]  }
 0x716   :  { %1692 = vmatpush1.bf16.msra.mxu0 %v3666_v39  ;;  %1733 = vmatpush1.bf16.msra.mxu1 %v3669_v58  ;;  %v3716_v39 = vld [vmem:[%s5543_s4 + $0x74] ss:$24 sps:$4 sm:$0xff]   ;;  %v3719_v58 = vld [vmem:[%s5543_s4 + $0xa4] ss:$24 sps:$4 sm:$0xff]  }
 0x717   :  { %1693 = vmatprep.subr.bf16.mxu0 %v3674_v12  ;;  %1734 = vmatprep.subr.bf16.mxu1 %v3677_v62  ;;  %v3722_v12 = vld [vmem:[%s5543_s4 + $0xd4] ss:$24 sps:$4 sm:$0xff]   ;;  %v3725_v62 = vld [vmem:[%s5543_s4 + $0x104] ss:$24 sps:$4 sm:$0xff]  }
 0x71a   :  { %1694 = vmatpush1.bf16.msra.mxu0 %v3672_v26  ;;  %1735 = vmatpush1.bf16.msra.mxu1 %v3675_v7  ;;  %v3720_v26 = vld [vmem:[%s5543_s4 + $0xd0] ss:$24 sps:$4 sm:$0xff]   ;;  %v3723_v7 = vld [vmem:[%s5543_s4 + $0x100] ss:$24 sps:$4 sm:$0xff]  }
 0x71b   :  { %1695 = vmatprep.subr.bf16.mxu0 %v3680_v11  ;;  %1736 = vmatprep.subr.bf16.mxu1 %v3683_v27  ;;  %v3728_v11 = vld [vmem:[%s5543_s4 + $0x134] ss:$24 sps:$4 sm:$0xff]   ;;  %v3731_v27 = vld [vmem:[%s5543_s4 + $0x164] ss:$24 sps:$4 sm:$0xff]  }
 0x71e   :  { %1696 = vmatpush1.bf16.msra.mxu0 %v3678_v22  ;;  %1737 = vmatpush1.bf16.msra.mxu1 %v3681_v28  ;;  %v3726_v22 = vld [vmem:[%s5543_s4 + $0x130] ss:$24 sps:$4 sm:$0xff]   ;;  %v3729_v28 = vld [vmem:[%s5543_s4 + $0x160] ss:$24 sps:$4 sm:$0xff]  }
 0x71f   :  { %1697 = vmatprep.subr.bf16.mxu0 %v3686_v40  ;;  %1738 = vmatprep.subr.bf16.mxu1 %v3689_v13  ;;  %v1831_v40 = vld [vmem:[%s5544_s6 + $0x80] sm:$0xff] }
 0x722   :  { %1698 = vmatpush1.bf16.msra.mxu0 %v3684_v14  ;;  %1739 = vmatpush1.bf16.msra.mxu1 %v3687_v15  ;;  %v1832_v14 = vld [vmem:[%s5544_s6 + $0x88] sm:$0xff]  ;;  %v1815_v15 = vld [vmem:[%s5544_s6] sm:$0xff] }
 0x723   :  { %1699 = vmatprep.subr.bf16.mxu0 %v3692_v17  ;;  %1740 = vmatprep.subr.bf16.mxu1 %v3695_v18  ;;  %v3338_v13 = vpack.c.bf16 %v1832_v14, %v1831_v40  ;;  %v1816_v17 = vld [vmem:[%s5544_s6 + $0x8] sm:$0xff]  ;;  %v1833_v18 = vld [vmem:[%s5544_s6 + $0x90] sm:$0xff] }
 0x726   :  { %1700 = vmatpush1.bf16.msra.mxu0 %v3690_v16  ;;  %1741 = vmatpush1.bf16.msra.mxu1 %v3693_v19  ;;  %v3340_v16 = vpack.c.bf16 %v1816_v17, %v1815_v15  ;;  %v1834_v19 = vld [vmem:[%s5544_s6 + $0x98] sm:$0xff] }
 0x727   :  { %1701 = vmatprep.subr.bf16.mxu0 %v3698_v1  ;;  %1742 = vmatprep.subr.bf16.mxu1 %v3701_v23  ;;  %v1817_v1 = vld [vmem:[%s5544_s6 + $0x10] sm:$0xff]  ;;  %v1818_v23 = vld [vmem:[%s5544_s6 + $0x18] sm:$0xff] }
 0x72a   :  { %1702 = vmatpush1.bf16.msra.mxu0 %v3696_v20  ;;  %1743 = vmatpush1.bf16.msra.mxu1 %v3699_v47  ;;  %v3342_v20 = vpack.c.bf16 %v1834_v19, %v1833_v18  ;;  %v1835_v47 = vld [vmem:[%s5544_s6 + $0xa0] sm:$0xff] }
 0x72b   :  { %1703 = vmatprep.subr.bf16.mxu0 %v3704_v51  ;;  %1744 = vmatprep.subr.bf16.mxu1 %v3707_v8  ;;  %v1836_v51 = vld [vmem:[%s5544_s6 + $0xa8] sm:$0xff]  ;;  %v3344_v8 = vpack.c.bf16 %v1818_v23, %v1817_v1 }
 0x72c   :  { %v2010_v1 = vld [vmem:[%s5545_s8 + $0x8] sm:$0xff] }
 0x72e   :  { %1704 = vmatpush1.bf16.msra.mxu0 %v3702_v25  ;;  %1745 = vmatpush1.bf16.msra.mxu1 %v3705_v59  ;;  %v3861_v25 = vmov 0.0|0.0   ;;  %v3346_v59 = vpack.c.bf16 %v1836_v51, %v1835_v47  ;;  %v2009_v47 = vld [vmem:[%s5545_s8] sm:$0xff]  ;;  %v2012_v51 = vld [vmem:[%s5545_s8 + $0x18] sm:$0xff] }
 0x72f   :  { %1771 = vmatprep.subr.bf16.mxu0 %v3710_v6  ;;  %3339 = vmatprep.subr.bf16.mxu1 %v3338_v13  ;;  %v1819_v6 = vld [vmem:[%s5544_s6 + $0x20] sm:$0xff] }
 0x7e3   :  { %v1333_v29 = vpop.f32.mrb[44].mxu0  ;;  %v1374_v36 = vpop.f32.mrb[44].mxu1 }
 0x7e4   :  { %v1381_v10 = vadd.f32 %v1333_v29, %v5602_v48  ;;  %v1383_v24 = vadd.f32 %v1374_v36, %v5603_v21  ;;  %v1335_v42 = vpop.f32.mrb[45].mxu0  ;;  %v1376_v43 = vpop.f32.mrb[45].mxu1  ;;  %v1820_v29 = vld [vmem:[%s5544_s6 + $0x28] sm:$0xff]  ;;  %v1837_v36 = vld [vmem:[%s5544_s6 + $0xb0] sm:$0xff]  ;;  %v1838_v48 = vld [vmem:[%s5544_s6 + $0xb8] sm:$0xff] }
 0x7e5   :  { %v1382_v45 = vadd.f32 %v1335_v42, %v5604_v44  ;;  %v1384_v49 = vadd.f32 %v1376_v43, %v5605_v46  ;;  %v1337_v50 = vpop.f32.mrb[46].mxu0  ;;  %v1378_v52 = vpop.f32.mrb[46].mxu1  ;;  %v3350_v21 = vpack.c.bf16 %v1838_v48, %v1837_v36  ;;  %v1822_v42 = vld [vmem:[%s5544_s6 + $0x38] sm:$0xff]  ;;  %v1839_v43 = vld [vmem:[%s5544_s6 + $0xc0] sm:$0xff]  ;;  %v1840_v44 = vld [vmem:[%s5544_s6 + $0xc8] sm:$0xff] }
 0x7e6   :  { %3813 = vtanh.f32 %v1381_v10  ;;  %v1338_v53 = vpop.f32.mrb[47].mxu0  ;;  %v1379_v54 = vpop.f32.mrb[47].mxu1  ;;  %v3348_v10 = vpack.c.bf16 %v1820_v29, %v1819_v6  ;;  %v1848_v46 = vld [vmem:[%s5544_s6 + $0x108] sm:$0xff]  ;;  %v3354_v52 = vpack.c.bf16 %v1840_v44, %v1839_v43  ;;  %v2163_v29 = vld [vmem:[%s5546_s9] sm:$0xff]  ;;  %v2166_v44 = vld [vmem:[%s5546_s9 + $0x18] sm:$0xff] }
 0x7e7   :  { %3815 = vtanh.f32 %v1382_v45  ;;  %v1847_v45 = vld [vmem:[%s5544_s6 + $0x100] sm:$0xff]  ;;  %v1824_v54 = vld [vmem:[%s5544_s6 + $0x48] sm:$0xff] }
 0x7e8   :  { %3817 = vtanh.f32 %v1383_v24  ;;  %v1821_v24 = vld [vmem:[%s5544_s6 + $0x30] sm:$0xff]  ;;  %v1823_v53 = vld [vmem:[%s5544_s6 + $0x40] sm:$0xff]  ;;  %v2180_v6 = vld [vmem:[%s5546_s9 + $0x88] sm:$0xff] }
 0x7e9   :  { %3819 = vtanh.f32 %v1384_v49  ;;  %v3371_v49 = vpack.c.bf16 %v1848_v46, %v1847_v45  ;;  %v3352_v50 = vpack.c.bf16 %v1822_v42, %v1821_v24  ;;  %v2164_v48 = vld [vmem:[%s5546_s9 + $0x8] sm:$0xff]  ;;  %v2182_v24 = vld [vmem:[%s5546_s9 + $0x98] sm:$0xff]  ;;  %v2165_v42 = vld [vmem:[%s5546_s9 + $0x10] sm:$0xff] }
 0x7ea   :  { %v3389_v45 = vpack.c.bf16 %v2166_v44, %v2165_v42  ;;  %v2183_v46 = vld [vmem:[%s5546_s9 + $0xa0] sm:$0xff]  ;;  %v2208_v44 = vld [vmem:[%s5546_s9 + $0x168] sm:$0xff] }
 0x7f0   :  { %v3814_v55 = vpop.eup %3813 }
 0x7f1   :  { %v1389_v56 = vmul.f32 0.5, %v3814_v55  ;;  %v3816_v57 = vpop.eup %3815  ;;  %v1841_v55 = vld [vmem:[%s5544_s6 + $0xd0] sm:$0xff] }
 0x7f2   :  { %v1391_v61 = vmul.f32 0.5, %v3816_v57  ;;  %v3818_v63 = vpop.eup %3817  ;;  %v3356_v57 = vpack.c.bf16 %v1824_v54, %v1823_v53  ;;  %v2168_v53 = vld [vmem:[%s5546_s9 + $0x28] sm:$0xff] }
 0x7f3   :  { %v1390_v60 = vadd.f32 0.5, %v1389_v56  ;;  %v3820_v37 = vpop.eup %3819  ;;  %v1842_v56 = vld [vmem:[%s5544_s6 + $0xd8] sm:$0xff] }
 0x7f4   :  { %v1392_v0 = vadd.f32 0.5, %v1391_v61  ;;  %v1393_v30 = vmul.f32 0.5, %v3820_v37  ;;  %v1825_v61 = vld [vmem:[%s5544_s6 + $0x50] sm:$0xff]  ;;  %v1827_v37 = vld [vmem:[%s5544_s6 + $0x60] sm:$0xff] }
 0x7f5   :  { %v1396_v3 = vmul.f32 %v3818_v63, %v1390_v60  ;;  %v3358_v60 = vpack.c.bf16 %v1842_v56, %v1841_v55  ;;  %v1826_v63 = vld [vmem:[%s5544_s6 + $0x58] sm:$0xff]  ;;  %v2185_v55 = vld [vmem:[%s5546_s9 + $0xb0] sm:$0xff] }
 0x7f6   :  { %v1395_v4 = vmul.f32 %v1392_v0, %v4724_v2  ;;  %v1394_v31 = vadd.f32 0.5, %v1393_v30  ;;  %v1843_v0 = vld [vmem:[%s5544_s6 + $0xe0] sm:$0xff]  ;;  %v1828_v30 = vld [vmem:[%s5544_s6 + $0x68] sm:$0xff]  ;;  %v2186_v56 = vld [vmem:[%s5546_s9 + $0xb8] sm:$0xff] }
 0x7f8   :  { %v1397_v5 = vadd.f32 %v1396_v3, %v1395_v4  ;;  %v1844_v3 = vld [vmem:[%s5544_s6 + $0xe8] sm:$0xff]  ;;  %v3360_v4 = vpack.c.bf16 %v1826_v63, %v1825_v61  ;;  %v2170_v61 = vld [vmem:[%s5546_s9 + $0x38] sm:$0xff] }
 0x7fa   :  { %3821 = vtanh.f32 %v1397_v5  ;;  %v3362_v5 = vpack.c.bf16 %v1844_v3, %v1843_v0  ;;  %v2187_v0 = vld [vmem:[%s5546_s9 + $0xc0] sm:$0xff]  ;;  %v2188_v3 = vld [vmem:[%s5546_s9 + $0xc8] sm:$0xff] }
 0x804   :  { %v3822_v32 = vpop.eup %3821 }
 0x805   :  { %v4833_v33 = vmul.f32 %v3822_v32, %v1394_v31  ;;  %v3364_v31 = vpack.c.bf16 %v1828_v30, %v1827_v37  ;;  %v1845_v32 = vld [vmem:[%s5544_s6 + $0xf0] sm:$0xff]  ;;  %v2172_v37 = vld [vmem:[%s5546_s9 + $0x48] sm:$0xff] }
 0x807   :  { %2002 = vrot.lane.b32.xlu1 %v4833_v33, %s3858_s22  ;;  %1996 = vrot.lane.b32.xlu0 %v4833_v33, %s3859_s3  ;;  %v1400_v2 = vpack.c.bf16 %v4833_v33, %v4833_v33 }
 0x809   :  { %1722 = vmatmul.mubr.bf16.vlgmr.msra.gmra.mrb[48].mxu0 %v1400_v2  ;;  %1763 = vmatmul.mubr.bf16.vlgmr.msra.gmra.mrb[48].mxu1 %v1400_v2 }
 0x80a   :  { %1772 = vmatpush1.bf16.msra.mxu0 %v3708_v34  ;;  %1803 = vmatprep.mubr.bf16.mxu0 %v5585_v9  ;;  %v3717_v9 = vld [vmem:[%s5543_s4 + $0xa0] ss:$24 sps:$4 sm:$0xff]  }
 0x80b   :  { %1999 = vrot.lane.b32.xlu0 %v4833_v33, %s3860_s30  ;;  %1773 = vmatprep.subr.bf16.mxu0 %v3713_v35  ;;  %v1846_v34 = vld [vmem:[%s5544_s6 + $0xf8] sm:$0xff]  ;;  %v1829_v35 = vld [vmem:[%s5544_s6 + $0x70] sm:$0xff] }
 0x80c   :  { %3341 = vmatpush3.bf16.msra.mxu1 %v3340_v16 }
 0x80d   :  { %3343 = vmatprep.subr.bf16.mxu1 %v3342_v20  ;;  %v2013_v20 = vld [vmem:[%s5545_s8 + $0x20] sm:$0xff] }
 0x80e   :  { %1774 = vmatpush1.bf16.msra.mxu0 %v3711_v38  ;;  %v1830_v38 = vld [vmem:[%s5544_s6 + $0x78] sm:$0xff]  ;;  %v3376_v23 = vpack.c.bf16 %v2013_v20, %v2010_v1  ;;  %v2197_v1 = vld [vmem:[%s5546_s9 + $0x110] sm:$0xff] }
 0x80f   :  { %1775 = vmatprep.subr.bf16.mxu0 %v3716_v39  ;;  %v1849_v39 = vld [vmem:[%s5544_s6 + $0x110] sm:$0xff]  ;;  %v2198_v20 = vld [vmem:[%s5546_s9 + $0x118] sm:$0xff] }
 0x810   :  { %3345 = vmatpush3.bf16.msra.mxu1 %v3344_v8  ;;  %v3378_v8 = vpack.c.bf16 %v2012_v51, %v2009_v47  ;;  %v2199_v47 = vld [vmem:[%s5546_s9 + $0x120] sm:$0xff]  ;;  %v2200_v51 = vld [vmem:[%s5546_s9 + $0x128] sm:$0xff] }
 0x811   :  { %3347 = vmatprep.subr.bf16.mxu1 %v3346_v59  ;;  %v2179_v59 = vld [vmem:[%s5546_s9 + $0x80] sm:$0xff] }
 0x812   :  { %1776 = vmatpush1.bf16.msra.mxu0 %v3714_v41  ;;  %v3368_v41 = vpack.c.bf16 %v1830_v38, %v1829_v35  ;;  %v3383_v36 = vpack.c.bf16 %v2180_v6, %v2179_v59  ;;  %v2174_v35 = vld [vmem:[%s5546_s9 + $0x58] sm:$0xff]  ;;  %v2201_v59 = vld [vmem:[%s5546_s9 + $0x130] sm:$0xff] }
 0x813   :  { %1777 = vmatprep.subr.bf16.mxu0 %v3719_v58  ;;  %v1850_v58 = vld [vmem:[%s5544_s6 + $0x118] sm:$0xff] }
 0x814   :  { %3349 = vmatpush3.bf16.msra.mxu1 %v3348_v10  ;;  %v3385_v10 = vpack.c.bf16 %v2164_v48, %v2163_v29  ;;  %v2202_v6 = vld [vmem:[%s5546_s9 + $0x138] sm:$0xff]  ;;  %v2204_v48 = vld [vmem:[%s5546_s9 + $0x148] sm:$0xff] }
 0x815   :  { %3351 = vmatprep.subr.bf16.mxu1 %v3350_v21  ;;  %v2181_v21 = vld [vmem:[%s5546_s9 + $0x90] sm:$0xff]  ;;  %v3425_v29 = vpack.c.bf16 %v2202_v6, %v2201_v59  ;;  %v2368_v6 = vld [vmem:[%s5548_s11 + $0x60] sm:$0xff] }
 0x816   :  { %1778 = vmatpush1.bf16.msra.mxu0 %v3717_v9  ;;  %v3374_v9 = vpack.c.bf16 %v1850_v58, %v1849_v39  ;;  %v3387_v43 = vpack.c.bf16 %v2182_v24, %v2181_v21  ;;  %v2191_v39 = vld [vmem:[%s5546_s9 + $0xe0] sm:$0xff]  ;;  %v2205_v21 = vld [vmem:[%s5546_s9 + $0x150] sm:$0xff]  ;;  %v2206_v24 = vld [vmem:[%s5546_s9 + $0x158] sm:$0xff] }
 0x817   :  { %1779 = vmatprep.subr.bf16.mxu0 %v3722_v12  ;;  %v3863_v12 = vmov 0.0   ;;  %v3431_v42 = vpack.c.bf16 %v2206_v24, %v2205_v21  ;;  %v2372_v24 = vld [vmem:[%s5548_s11 + $0x80] sm:$0xff] }
 0x818   :  { %3353 = vmatpush3.bf16.msra.mxu1 %v3352_v50 }
 0x819   :  { %3355 = vmatprep.subr.bf16.mxu1 %v3354_v52  ;;  %v2167_v52 = vld [vmem:[%s5546_s9 + $0x20] sm:$0xff] }
 0x81a   :  { %1780 = vmatpush1.bf16.msra.mxu0 %v3720_v26  ;;  %v3393_v54 = vpack.c.bf16 %v2168_v53, %v2167_v52  ;;  %v2177_v52 = vld [vmem:[%s5546_s9 + $0x70] sm:$0xff]  ;;  %v2178_v53 = vld [vmem:[%s5546_s9 + $0x78] sm:$0xff] }
 0x81b   :  { %1781 = vmatprep.subr.bf16.mxu0 %v3725_v62 }
 0x81c   :  { %3357 = vmatpush3.bf16.msra.mxu1 %v3356_v57  ;;  %v3395_v57 = vpack.c.bf16 %v2186_v56, %v2185_v55  ;;  %v2209_v55 = vld [vmem:[%s5546_s9 + $0x170] sm:$0xff]  ;;  %v2210_v56 = vld [vmem:[%s5546_s9 + $0x178] sm:$0xff] }
 0x81d   :  { %3359 = vmatprep.subr.bf16.mxu1 %v3358_v60  ;;  %v2169_v60 = vld [vmem:[%s5546_s9 + $0x30] sm:$0xff] }
 0x81e   :  { %1782 = vmatpush1.bf16.msra.mxu0 %v3723_v7  ;;  %v3397_v63 = vpack.c.bf16 %v2170_v61, %v2169_v60 }
 0x81f   :  { %1783 = vmatprep.subr.bf16.mxu0 %v3728_v11 }
 0x820   :  { %3361 = vmatpush3.bf16.msra.mxu1 %v3360_v4  ;;  %v3399_v4 = vpack.c.bf16 %v2188_v3, %v2187_v0 }
 0x821   :  { %3363 = vmatprep.subr.bf16.mxu1 %v3362_v5  ;;  %v2171_v5 = vld [vmem:[%s5546_s9 + $0x40] sm:$0xff] }
 0x822   :  { %1784 = vmatpush1.bf16.msra.mxu0 %v3726_v22  ;;  %v3401_v30 = vpack.c.bf16 %v2172_v37, %v2171_v5 }
 0x823   :  { %1785 = vmatprep.subr.bf16.mxu0 %v3731_v27 }
 0x824   :  { %3365 = vmatpush3.bf16.msra.mxu1 %v3364_v31  ;;  %v2189_v31 = vld [vmem:[%s5546_s9 + $0xd0] sm:$0xff] }
 0x826   :  { %1786 = vmatpush1.bf16.msra.mxu0 %v3729_v28 }
 0x827   :  { %3370 = vmatprep.subr.bf16.mxu0 %v3861_v25 }
 0x829   :  { %1804 = vmatmul.mubr.bf16.vlgmr.msra.gmra.mrb[52].mxu0 %v1400_v2  ;;  %v3366_v2 = vpack.c.bf16 %v1846_v34, %v1845_v32  ;;  %v2190_v32 = vld [vmem:[%s5546_s9 + $0xd8] sm:$0xff] }
 0x82a   :  { %3372 = vmatpush3.bf16.msra.mxu0 %v3371_v49  ;;  %3259 = vmatprep.mubr.msk.f32.mxu0 %vm3862_vm1, %v3863_v12  ;;  %v2184_v49 = vld [vmem:[%s5546_s9 + $0xa8] sm:$0xff]  ;;  %v3403_v34 = vpack.c.bf16 %v2190_v32, %v2189_v31 }
 0x82b   :  { %3373 = vmatprep.subr.bf16.mxu0 %v3861_v25  ;;  %3367 = vmatprep.subr.bf16.mxu1 %v3366_v2  ;;  %v3391_v50 = vpack.c.bf16 %v2184_v49, %v2183_v46  ;;  %v2173_v2 = vld [vmem:[%s5546_s9 + $0x50] sm:$0xff]  ;;  %v2194_v49 = vld [vmem:[%s5546_s9 + $0xf8] sm:$0xff] }
 0x82c   :  { %3369 = vmatpush3.bf16.msra.mxu1 %v3368_v41  ;;  %v3405_v38 = vpack.c.bf16 %v2174_v35, %v2173_v2  ;;  %v2192_v41 = vld [vmem:[%s5546_s9 + $0xe8] sm:$0xff]  ;;  %v2193_v46 = vld [vmem:[%s5546_s9 + $0xf0] sm:$0xff] }
 0x82d   :  { %3377 = vmatprep.subr.bf16.mxu1 %v3376_v23  ;;  %v3407_v58 = vpack.c.bf16 %v2192_v41, %v2191_v39  ;;  %v3419_v23 = vpack.c.bf16 %v2198_v20, %v2197_v1  ;;  %v3734_v39 = vld [vmem:[%s5547_s5 + $0x10] sm:$0xff]   ;;  %v3735_v41 = vld [vmem:[%s5547_s5 + $0x18] sm:$0xff]   ;;  %v2364_v20 = vld [vmem:[%s5548_s11 + $0x40] sm:$0xff] }
 0x82e   :  { %3375 = vmatpush3.bf16.msra.mxu0 %v3374_v9  ;;  %v2175_v9 = vld [vmem:[%s5546_s9 + $0x60] sm:$0xff] }
 0x82f   :  { %3384 = vmatprep.subr.bf16.mxu0 %v3383_v36  ;;  %v2203_v36 = vld [vmem:[%s5546_s9 + $0x140] sm:$0xff] }
 0x879   :  { %v1997_v60 = vpop.permute.xlu0 %1996  ;;  %v2003_v37 = vpop.permute.xlu1 %2002 }
 0x87d   :  { %v2000_v61 = vpop.permute.xlu0 %1999 }
 0x87e   :  { %v2007_v0 = vsel %vm2006_vm4, %v1997_v60, %v2000_v61  ;;  %v2008_v31 = vsel %vm1851_vm2, %v2000_v61, %v2003_v37  ;;  %v2382_v61 = vld [vmem:[%s5548_s11 + $0xd0] sm:$0xff] }
 0x8dc   :  { %v1723_v26 = vpop.f32.mrb[48].mxu0  ;;  %v5001_v62 = vpop.f32.mrb[48].mxu1 }
 0x8dd   :  { %v1725_v7 = vpop.f32.mrb[49].mxu0  ;;  %v1766_v11 = vpop.f32.mrb[49].mxu1 }
 0x8de   :  { %v1812_v22 = vmul.f32 %v1766_v11, %v1723_v26  ;;  %v1727_v27 = vpop.f32.mrb[50].mxu0  ;;  %v1768_v28 = vpop.f32.mrb[50].mxu1  ;;  %v2176_v26 = vld [vmem:[%s5546_s9 + $0x68] sm:$0xff] }
 0x8df   :  { %v1728_v40 = vpop.f32.mrb[51].mxu0  ;;  %v1769_v14 = vpop.f32.mrb[51].mxu1  ;;  %v2011_v27 = vld [vmem:[%s5545_s8 + $0x10] sm:$0xff]  ;;  %v2014_v28 = vld [vmem:[%s5545_s8 + $0x28] sm:$0xff] }
 0x8fc   :  { %v1805_v13 = vpop.f32.mrb[52].mxu0 }
 0x8fd   :  { %v1813_v15 = vmul.f32 %v1805_v13, %v1725_v7  ;;  %v1807_v17 = vpop.f32.mrb[53].mxu0  ;;  %v3409_v7 = vpack.c.bf16 %v2176_v26, %v2175_v9  ;;  %v3737_v9 = vld [vmem:[%s5547_s5 + $0x28] sm:$0xff]   ;;  %v3738_v26 = vld [vmem:[%s5547_s5 + $0x30] sm:$0xff]  }
 0x8fe   :  { %v1814_v16 = vmul.f32 %v1807_v17, %v5001_v62  ;;  %v1809_v18 = vpop.f32.mrb[54].mxu0 }
 0x8ff   :  { %v1810_v19 = vpop.f32.mrb[55].mxu0  ;;  %1919 = vmatprep.mubr.f32.mxu1 %v1813_v15  ;;  %v3381_v15 = vpack.c.bf16 %v2014_v28, %v2011_v27  ;;  %v2196_v18 = vld [vmem:[%s5546_s9 + $0x108] sm:$0xff]  ;;  %v2358_v27 = vld [vmem:[%s5548_s11 + $0x10] sm:$0xff] }
 0x900   :  { %1920 = vmatmul.mubr.f32.vlgmr.msra.gmra.mrb[52].mxu1 %v1812_v22  ;;  %3260 = vmatmul.mubr.msk.f32.vlgmr.msra.gmra.mrb[56].mxu0 %vm1851_vm2, %v1814_v16  ;;  %v2195_v16 = vld [vmem:[%s5546_s9 + $0x100] sm:$0xff] }
 0x901   :  { %2083 = vmatprep.mubr.f32.mxu1 %v3863_v12  ;;  %3379 = vmatpush1.bf16.msra.mxu1 %v3378_v8  ;;  %v3416_v19 = vpack.c.bf16 %v2196_v18, %v2195_v16  ;;  %v3422_v8 = vpack.c.bf16 %v2200_v51, %v2199_v47  ;;  %v2362_v18 = vld [vmem:[%s5548_s11 + $0x30] sm:$0xff] }
 0x902   :  { %3380 = vmatprep.subr.bf16.mxu1 %v3861_v25  ;;  %3386 = vmatpush3.bf16.msra.mxu0 %v3385_v10  ;;  %v3428_v10 = vpack.c.bf16 %v2204_v48, %v2203_v36  ;;  %v2366_v51 = vld [vmem:[%s5548_s11 + $0x50] sm:$0xff] }
 0x903   :  { %3388 = vmatprep.subr.bf16.mxu0 %v3387_v43  ;;  %v2207_v43 = vld [vmem:[%s5546_s9 + $0x160] sm:$0xff]  ;;  %v2370_v48 = vld [vmem:[%s5548_s11 + $0x70] sm:$0xff] }
 0x906   :  { %3390 = vmatpush3.bf16.msra.mxu0 %v3389_v45  ;;  %v3434_v45 = vpack.c.bf16 %v2208_v44, %v2207_v43  ;;  %v2374_v44 = vld [vmem:[%s5548_s11 + $0x90] sm:$0xff] }
 0x907   :  { %3392 = vmatprep.subr.bf16.mxu0 %v3391_v50  ;;  %v3411_v50 = vpack.c.bf16 %v2194_v49, %v2193_v46  ;;  %v2376_v49 = vld [vmem:[%s5548_s11 + $0xa0] sm:$0xff] }
 0x90a   :  { %3394 = vmatpush3.bf16.msra.mxu0 %v3393_v54  ;;  %v3413_v54 = vpack.c.bf16 %v2178_v53, %v2177_v52  ;;  %v2378_v53 = vld [vmem:[%s5548_s11 + $0xb0] sm:$0xff] }
 0x90b   :  { %3396 = vmatprep.subr.bf16.mxu0 %v3395_v57  ;;  %v3437_v57 = vpack.c.bf16 %v2210_v56, %v2209_v55  ;;  %v2380_v56 = vld [vmem:[%s5548_s11 + $0xc0] sm:$0xff] }
 0x90e   :  { %3398 = vmatpush3.bf16.msra.mxu0 %v3397_v63 }
 0x90f   :  { %3400 = vmatprep.subr.bf16.mxu0 %v3399_v4  ;;  %v2005_v4 = vsel %vm234_vm0, %v4833_v33, %v1997_v60 }
 0x912   :  { %3402 = vmatpush3.bf16.msra.mxu0 %v3401_v30 }
 0x913   :  { %3404 = vmatprep.subr.bf16.mxu0 %v3403_v34  ;;  %v3732_v34 = vld [vmem:[%s5547_s5] sm:$0xff]  }
 0x916   :  { %3406 = vmatpush3.bf16.msra.mxu0 %v3405_v38  ;;  %v3733_v38 = vld [vmem:[%s5547_s5 + $0x8] sm:$0xff]  }
 0x917   :  { %3408 = vmatprep.subr.bf16.mxu0 %v3407_v58  ;;  %v3736_v58 = vld [vmem:[%s5547_s5 + $0x20] sm:$0xff]  }
 0x91a   :  { %3410 = vmatpush3.bf16.msra.mxu0 %v3409_v7  ;;  %v3739_v7 = vld [vmem:[%s5547_s5 + $0x38] sm:$0xff]  }
 0x91b   :  { %3412 = vmatprep.subr.bf16.mxu0 %v3411_v50  ;;  %v2377_v50 = vld [vmem:[%s5548_s11 + $0xa8] sm:$0xff] }
 0x91c   :  { %v3470_v52 = vpack.c.bf16 %v2377_v50, %v2376_v49  ;;  %v2611_v50 = vld [vmem:[%s5549_s7 + $0xc0] sm:$0xff] }
 0x91e   :  { %3414 = vmatpush3.bf16.msra.mxu0 %v3413_v54  ;;  %v2379_v54 = vld [vmem:[%s5548_s11 + $0xb8] sm:$0xff] }
 0x91f   :  { %3439 = vmatprep.subr.bf16.mxu0 %v3861_v25  ;;  %v3473_v55 = vpack.c.bf16 %v2379_v54, %v2378_v53  ;;  %v2613_v54 = vld [vmem:[%s5549_s7 + $0xd0] sm:$0xff] }
 0x9d3   :  { %v3174_v11 = vpop.f32.mrb[52].mxu1  ;;  %v1991_v22 = vpop.f32.mrb[56].mxu0 }
 0x9d4   :  { %v3175_v40 = vpop.f32.mrb[53].mxu1  ;;  %v3261_v14 = vpop.f32.mrb[57].mxu0 }
 0x9d5   :  { %v3176_v13 = vadd.f32 %v3175_v40, %v3174_v11  ;;  %v2356_v11 = vld [vmem:[%s5548_s11] sm:$0xff]  ;;  %v2359_v40 = vld [vmem:[%s5548_s11 + $0x18] sm:$0xff] }
 0x9d6   :  { %v5242_v14 = vpack.c.bf16 %v2359_v40, %v2358_v27  ;;  %v2593_v40 = vld [vmem:[%s5549_s7 + $0x30] sm:$0xff] }
 0x9d7   :  { %v5109_v17 = vadd.f32 %v3176_v13, %v1991_v22  ;;  %v2357_v22 = vld [vmem:[%s5548_s11 + $0x8] sm:$0xff]  ;;  %v2360_v13 = vld [vmem:[%s5548_s11 + $0x20] sm:$0xff] }
 0x9d8   :  { %v5236_v28 = vpack.c.bf16 %v2357_v22, %v2356_v11 }
 0x9d9   :  { %3121 = vmatmul.mubr.msk.f32.vlgmr.msra.gmra.mrb[54].mxu1 %vm2015_vm3, %v5109_v17 }
 0x9da   :  { %3382 = vmatpush3.bf16.msra.mxu1 %v3381_v15  ;;  %3266 = vmatprep.mubr.msk.f32.mxu1 %vm3862_vm1, %v3863_v12  ;;  %v2361_v15 = vld [vmem:[%s5548_s11 + $0x28] sm:$0xff] }
 0x9db   :  { %3415 = vmatprep.subr.bf16.mxu1 %v3861_v25  ;;  %v5252_v16 = vpack.c.bf16 %v2361_v15, %v2360_v13  ;;  %v2595_v15 = vld [vmem:[%s5549_s7 + $0x40] sm:$0xff] }
 0x9dd   :  { %3267 = vmatmul.mubr.msk.f32.vlgmr.msra.gmra.mrb[56].mxu1 %vm2015_vm3, %v5109_v17 }
 0x9de   :  { %3417 = vmatpush3.bf16.msra.mxu1 %v3416_v19  ;;  %3301 = vmatprep.mubr.msk.f32.mxu1 %vm3862_vm1, %v3863_v12  ;;  %v2363_v19 = vld [vmem:[%s5548_s11 + $0x38] sm:$0xff] }
 0x9df   :  { %3418 = vmatprep.subr.bf16.mxu1 %v3861_v25  ;;  %v5262_v1 = vpack.c.bf16 %v2363_v19, %v2362_v18  ;;  %v2597_v19 = vld [vmem:[%s5549_s7 + $0x50] sm:$0xff] }
 0x9e2   :  { %3420 = vmatpush3.bf16.msra.mxu1 %v3419_v23  ;;  %v2365_v23 = vld [vmem:[%s5548_s11 + $0x48] sm:$0xff] }
 0x9e3   :  { %3421 = vmatprep.subr.bf16.mxu1 %v3861_v25  ;;  %v5272_v47 = vpack.c.bf16 %v2365_v23, %v2364_v20  ;;  %v2599_v23 = vld [vmem:[%s5549_s7 + $0x60] sm:$0xff] }
 0x9e6   :  { %3423 = vmatpush3.bf16.msra.mxu1 %v3422_v8  ;;  %v2367_v8 = vld [vmem:[%s5548_s11 + $0x58] sm:$0xff] }
 0x9e7   :  { %3424 = vmatprep.subr.bf16.mxu1 %v3861_v25  ;;  %v5282_v59 = vpack.c.bf16 %v2367_v8, %v2366_v51  ;;  %v2601_v8 = vld [vmem:[%s5549_s7 + $0x70] sm:$0xff] }
 0x9ea   :  { %3426 = vmatpush3.bf16.msra.mxu1 %v3425_v29  ;;  %v2369_v29 = vld [vmem:[%s5548_s11 + $0x68] sm:$0xff] }
 0x9eb   :  { %3427 = vmatprep.subr.bf16.mxu1 %v3861_v25  ;;  %v5292_v36 = vpack.c.bf16 %v2369_v29, %v2368_v6  ;;  %v2603_v29 = vld [vmem:[%s5549_s7 + $0x80] sm:$0xff] }
 0x9ee   :  { %3429 = vmatpush3.bf16.msra.mxu1 %v3428_v10  ;;  %v2371_v10 = vld [vmem:[%s5548_s11 + $0x78] sm:$0xff] }
 0x9ef   :  { %3430 = vmatprep.subr.bf16.mxu1 %v3861_v25  ;;  %v3461_v21 = vpack.c.bf16 %v2371_v10, %v2370_v48  ;;  %v2605_v10 = vld [vmem:[%s5549_s7 + $0x90] sm:$0xff] }
 0x9f2   :  { %3432 = vmatpush3.bf16.msra.mxu1 %v3431_v42  ;;  %v2373_v42 = vld [vmem:[%s5548_s11 + $0x88] sm:$0xff] }
 0x9f3   :  { %3433 = vmatprep.subr.bf16.mxu1 %v3861_v25  ;;  %v3464_v43 = vpack.c.bf16 %v2373_v42, %v2372_v24  ;;  %v2607_v42 = vld [vmem:[%s5549_s7 + $0xa0] sm:$0xff] }
 0x9f6   :  { %3435 = vmatpush3.bf16.msra.mxu1 %v3434_v45  ;;  %v2375_v45 = vld [vmem:[%s5548_s11 + $0x98] sm:$0xff] }
 0x9f7   :  { %3436 = vmatprep.subr.bf16.mxu1 %v3861_v25  ;;  %v3467_v46 = vpack.c.bf16 %v2375_v45, %v2374_v44  ;;  %v2609_v45 = vld [vmem:[%s5549_s7 + $0xb0] sm:$0xff] }
 0x9fa   :  { %3438 = vmatpush3.bf16.msra.mxu1 %v3437_v57  ;;  %v2381_v57 = vld [vmem:[%s5548_s11 + $0xc8] sm:$0xff] }
 0x9fb   :  { %3304 = vmatprep.subr.bf16.mxu1 %v3863_v12  ;;  %v3476_v60 = vpack.c.bf16 %v2381_v57, %v2380_v56 }
 0xaac   :  { %v2085_v63 = vpop.f32.mrb[54].mxu1 }
 0xaad   :  { %v2087_v3 = vpop.f32.mrb[55].mxu1  ;;  %v2160_v30 = vmul.f32 %v2085_v63, %v2005_v4  ;;  %v2383_v63 = vld [vmem:[%s5548_s11 + $0xd8] sm:$0xff] }
 0xaae   :  { %v2161_v5 = vmul.f32 %v2087_v3, %v2007_v0  ;;  %v3479_v0 = vpack.c.bf16 %v2383_v63, %v2382_v61  ;;  %v2693_v61 = vld [vmem:[%s5550_s10 + $0x18] sm:$0xff] }
 0xab0   :  { %v2156_v32 = vpop.f32.mrb[56].mxu1  ;;  %2275 = vmatprep.mubr.f32.mxu0 %v2161_v5 }
 0xab1   :  { %v2162_v2 = vmul.f32 %v2156_v32, %v2008_v31  ;;  %v3268_v35 = vpop.f32.mrb[57].mxu1  ;;  %2276 = vmatmul.mubr.f32.vlgmr.msra.gmra.mrb[58].mxu0 %v2160_v30 }
 0xab2   :  { %3441 = vmatpush1.bf16.msra.mxu0 %v5236_v28  ;;  %v2588_v35 = vld [vmem:[%s5549_s7 + $0x8] sm:$0xff] }
 0xab3   :  { %3302 = vmatmul.mubr.f32.vlgmr.msra.gmra.mrb[58].mxu1 %v2162_v2  ;;  %3442 = vmatprep.subr.bf16.mxu0 %v3861_v25 }
 0xab4   :  { %3305 = vmatpush3.bf16.msra.mxu1 %v3732_v34  ;;  %3320 = vmatprep.mubr.msk.bf16.mxu1 %vm3862_vm1, %v3863_v12 }
 0xab5   :  { %3306 = vmatprep.subr.bf16.mxu1 %v3863_v12 }
 0xab6   :  { %3444 = vmatpush1.bf16.msra.mxu0 %v5242_v14 }
 0xab7   :  { %3445 = vmatprep.subr.bf16.mxu0 %v3861_v25 }
 0xab8   :  { %3307 = vmatpush3.bf16.msra.mxu1 %v3733_v38  ;;  %v2589_v38 = vld [vmem:[%s5549_s7 + $0x10] sm:$0xff] }
 0xab9   :  { %3308 = vmatprep.subr.bf16.mxu1 %v3863_v12 }
 0xaba   :  { %3447 = vmatpush1.bf16.msra.mxu0 %v5252_v16 }
 0xabb   :  { %3448 = vmatprep.subr.bf16.mxu0 %v3861_v25 }
 0xabc   :  { %3309 = vmatpush3.bf16.msra.mxu1 %v3734_v39 }
 0xabd   :  { %3310 = vmatprep.subr.bf16.mxu1 %v3863_v12 }
 0xabe   :  { %3450 = vmatpush1.bf16.msra.mxu0 %v5262_v1 }
 0xabf   :  { %3451 = vmatprep.subr.bf16.mxu0 %v3861_v25 }
 0xac0   :  { %3311 = vmatpush3.bf16.msra.mxu1 %v3735_v41  ;;  %v2590_v41 = vld [vmem:[%s5549_s7 + $0x18] sm:$0xff] }
 0xac1   :  { %3312 = vmatprep.subr.bf16.mxu1 %v3863_v12 }
 0xac2   :  { %3453 = vmatpush1.bf16.msra.mxu0 %v5272_v47 }
 0xac3   :  { %3454 = vmatprep.subr.bf16.mxu0 %v3861_v25 }
 0xac4   :  { %3313 = vmatpush3.bf16.msra.mxu1 %v3736_v58  ;;  %v3485_v58 = vpack.c.bf16 %v2590_v41, %v2589_v38  ;;  %v2690_v41 = vld [vmem:[%s5550_s10] sm:$0xff] }
 0xac5   :  { %3314 = vmatprep.subr.bf16.mxu1 %v3863_v12 }
 0xac6   :  { %3456 = vmatpush1.bf16.msra.mxu0 %v5282_v59 }
 0xac7   :  { %3457 = vmatprep.subr.bf16.mxu0 %v3861_v25 }
 0xac8   :  { %3315 = vmatpush3.bf16.msra.mxu1 %v3737_v9 }
 0xac9   :  { %3316 = vmatprep.subr.bf16.mxu1 %v3863_v12 }
 0xaca   :  { %3459 = vmatpush1.bf16.msra.mxu0 %v5292_v36 }
 0xacb   :  { %3460 = vmatprep.subr.bf16.mxu0 %v3861_v25 }
 0xacc   :  { %3317 = vmatpush3.bf16.msra.mxu1 %v3738_v26  ;;  %v2591_v26 = vld [vmem:[%s5549_s7 + $0x20] sm:$0xff] }
 0xacd   :  { %3318 = vmatprep.subr.bf16.mxu1 %v3863_v12 }
 0xace   :  { %3462 = vmatpush1.bf16.msra.mxu0 %v3461_v21 }
 0xacf   :  { %3463 = vmatprep.subr.bf16.mxu0 %v3861_v25 }
 0xad0   :  { %3319 = vmatpush3.bf16.msra.mxu1 %v3739_v7  ;;  %v2592_v7 = vld [vmem:[%s5549_s7 + $0x28] sm:$0xff] }
 0xad1   :  { %3481 = vmatprep.subr.bf16.mxu1 %v3861_v25 }
 0xad2   :  { %3465 = vmatpush1.bf16.msra.mxu0 %v3464_v43 }
 0xad3   :  { %3466 = vmatprep.subr.bf16.mxu0 %v3861_v25 }
 0xad6   :  { %3468 = vmatpush1.bf16.msra.mxu0 %v3467_v46 }
 0xad7   :  { %3469 = vmatprep.subr.bf16.mxu0 %v3861_v25 }
 0xada   :  { %3471 = vmatpush1.bf16.msra.mxu0 %v3470_v52 }
 0xadb   :  { %3472 = vmatprep.subr.bf16.mxu0 %v3861_v25 }
 0xade   :  { %3474 = vmatpush1.bf16.msra.mxu0 %v3473_v55 }
 0xadf   :  { %3475 = vmatprep.subr.bf16.mxu0 %v3861_v25 }
 0xae2   :  { %3477 = vmatpush1.bf16.msra.mxu0 %v3476_v60 }
 0xae3   :  { %3478 = vmatprep.subr.bf16.mxu0 %v3861_v25 }
 0xae6   :  { %3480 = vmatpush1.bf16.msra.mxu0 %v3479_v0 }
 0xae7   :  { %3527 = vmatprep.subr.bf16.mxu0 %v3861_v25 }
 0xb84   :  { %v3217_v3 = vpop.f32.mrb[58].mxu0 }
 0xb85   :  { %v3218_v4 = vpop.f32.mrb[59].mxu0 }
 0xb86   :  { %v3219_v5 = vadd.f32 %v3218_v4, %v3217_v3  ;;  %v2347_v37 = vpop.f32.mrb[58].mxu1 }
 0xb87   :  { %v3303_v30 = vpop.f32.mrb[59].mxu1 }
 0xb88   :  { %v2348_v31 = vadd.f32 %v3219_v5, %v2347_v37 }
 0xb8a   :  { %v2456_v32 = vpack.c.bf16 %v2348_v31, %v2348_v31  ;;  %2352 = vrot.lane.b32.xlu1 %v2348_v31, %s3859_s3 }
 0xb8c   :  { %3321 = vmatmul.mubr.bf16.vlgmr.msra.gmra.mrb[60].mxu1 %v2456_v32 }
 0xbfc   :  { %v5347_v34 = vpop.permute.xlu1 %2352 }
 0xbfd   :  { %3123 = vmatprep.mubr.msk.f32.mxu0 %vm234_vm0, %v5347_v34  ;;  %v5354_v2 = vsel %vm234_vm0, %v4833_v33, %v5347_v34  ;;  %v2587_v33 = vld [vmem:[%s5549_s7] sm:$0xff] }
 0xbfe   :  { %2451 = vmatmul.mubr.f32.vlgmr.msra.gmra.mrb[60].mxu0 %v5354_v2  ;;  %v3482_v39 = vpack.c.bf16 %v2588_v35, %v2587_v33 }
 0xbff   :  { %3529 = vmatpush1.bf16.msra.mxu0 %v5236_v28  ;;  %v3488_v28 = vpack.c.bf16 %v2592_v7, %v2591_v26 }
 0xc00   :  { %3530 = vmatprep.subr.bf16.mxu0 %v3861_v25  ;;  %3483 = vmatpush1.bf16.msra.mxu1 %v3482_v39 }
 0xc01   :  { %3484 = vmatprep.subr.bf16.mxu1 %v3861_v25 }
 0xc03   :  { %3532 = vmatpush1.bf16.msra.mxu0 %v5242_v14  ;;  %v2594_v14 = vld [vmem:[%s5549_s7 + $0x38] sm:$0xff] }
 0xc04   :  { %3533 = vmatprep.subr.bf16.mxu0 %v3861_v25  ;;  %3486 = vmatpush1.bf16.msra.mxu1 %v3485_v58  ;;  %v3491_v13 = vpack.c.bf16 %v2594_v14, %v2593_v40  ;;  %v2692_v58 = vld [vmem:[%s5550_s10 + $0x10] sm:$0xff]  ;;  %v3741_v14 = vld [vmem:[%s5552_s12 + $0x8] sm:$0xff]  }
 0xc05   :  { %3487 = vmatprep.subr.bf16.mxu1 %v3861_v25 }
 0xc07   :  { %3535 = vmatpush1.bf16.msra.mxu0 %v5252_v16  ;;  %v2596_v16 = vld [vmem:[%s5549_s7 + $0x48] sm:$0xff] }
 0xc08   :  { %3536 = vmatprep.subr.bf16.mxu0 %v3861_v25  ;;  %3489 = vmatpush1.bf16.msra.mxu1 %v3488_v28  ;;  %v3494_v18 = vpack.c.bf16 %v2596_v16, %v2595_v15 }
 0xc09   :  { %3490 = vmatprep.subr.bf16.mxu1 %v3861_v25 }
 0xc0b   :  { %3538 = vmatpush1.bf16.msra.mxu0 %v5262_v1  ;;  %v2598_v1 = vld [vmem:[%s5549_s7 + $0x58] sm:$0xff] }
 0xc0c   :  { %3539 = vmatprep.subr.bf16.mxu0 %v3861_v25  ;;  %3492 = vmatpush1.bf16.msra.mxu1 %v3491_v13  ;;  %v3497_v20 = vpack.c.bf16 %v2598_v1, %v2597_v19 }
 0xc0d   :  { %3493 = vmatprep.subr.bf16.mxu1 %v3861_v25 }
 0xc0f   :  { %3541 = vmatpush1.bf16.msra.mxu0 %v5272_v47  ;;  %v2600_v47 = vld [vmem:[%s5549_s7 + $0x68] sm:$0xff] }
 0xc10   :  { %3542 = vmatprep.subr.bf16.mxu0 %v3861_v25  ;;  %3495 = vmatpush1.bf16.msra.mxu1 %v3494_v18  ;;  %v3500_v51 = vpack.c.bf16 %v2600_v47, %v2599_v23 }
 0xc11   :  { %3496 = vmatprep.subr.bf16.mxu1 %v3861_v25 }
 0xc13   :  { %3544 = vmatpush1.bf16.msra.mxu0 %v5282_v59  ;;  %v2602_v59 = vld [vmem:[%s5549_s7 + $0x78] sm:$0xff] }
 0xc14   :  { %3545 = vmatprep.subr.bf16.mxu0 %v3861_v25  ;;  %3498 = vmatpush1.bf16.msra.mxu1 %v3497_v20  ;;  %v3503_v6 = vpack.c.bf16 %v2602_v59, %v2601_v8 }
 0xc15   :  { %3499 = vmatprep.subr.bf16.mxu1 %v3861_v25 }
 0xc17   :  { %3547 = vmatpush1.bf16.msra.mxu0 %v5292_v36  ;;  %v2604_v36 = vld [vmem:[%s5549_s7 + $0x88] sm:$0xff] }
 0xc18   :  { %3548 = vmatprep.subr.bf16.mxu0 %v3861_v25  ;;  %3501 = vmatpush1.bf16.msra.mxu1 %v3500_v51  ;;  %v3506_v48 = vpack.c.bf16 %v2604_v36, %v2603_v29 }
 0xc19   :  { %3502 = vmatprep.subr.bf16.mxu1 %v3861_v25 }
 0xc1b   :  { %3550 = vmatpush1.bf16.msra.mxu0 %v3461_v21  ;;  %v2606_v21 = vld [vmem:[%s5549_s7 + $0x98] sm:$0xff] }
 0xc1c   :  { %3551 = vmatprep.subr.bf16.mxu0 %v3861_v25  ;;  %3504 = vmatpush1.bf16.msra.mxu1 %v3503_v6  ;;  %v3509_v24 = vpack.c.bf16 %v2606_v21, %v2605_v10 }
 0xc1d   :  { %3505 = vmatprep.subr.bf16.mxu1 %v3861_v25 }
 0xc1f   :  { %3553 = vmatpush1.bf16.msra.mxu0 %v3464_v43  ;;  %v2608_v43 = vld [vmem:[%s5549_s7 + $0xa8] sm:$0xff] }
 0xc20   :  { %3554 = vmatprep.subr.bf16.mxu0 %v3861_v25  ;;  %3507 = vmatpush1.bf16.msra.mxu1 %v3506_v48  ;;  %v3512_v44 = vpack.c.bf16 %v2608_v43, %v2607_v42 }
 0xc21   :  { %3508 = vmatprep.subr.bf16.mxu1 %v3861_v25 }
 0xc23   :  { %3556 = vmatpush1.bf16.msra.mxu0 %v3467_v46  ;;  %v2610_v46 = vld [vmem:[%s5549_s7 + $0xb8] sm:$0xff] }
 0xc24   :  { %3557 = vmatprep.subr.bf16.mxu0 %v3861_v25  ;;  %3510 = vmatpush1.bf16.msra.mxu1 %v3509_v24  ;;  %v3515_v49 = vpack.c.bf16 %v2610_v46, %v2609_v45 }
 0xc25   :  { %3511 = vmatprep.subr.bf16.mxu1 %v3861_v25 }
 0xc27   :  { %3559 = vmatpush1.bf16.msra.mxu0 %v3470_v52  ;;  %v2612_v52 = vld [vmem:[%s5549_s7 + $0xc8] sm:$0xff] }
 0xc28   :  { %3560 = vmatprep.subr.bf16.mxu0 %v3861_v25  ;;  %3513 = vmatpush1.bf16.msra.mxu1 %v3512_v44  ;;  %v3518_v53 = vpack.c.bf16 %v2612_v52, %v2611_v50 }
 0xc29   :  { %3514 = vmatprep.subr.bf16.mxu1 %v3861_v25 }
 0xc2b   :  { %3562 = vmatpush1.bf16.msra.mxu0 %v3473_v55  ;;  %v2614_v55 = vld [vmem:[%s5549_s7 + $0xd8] sm:$0xff] }
 0xc2c   :  { %3563 = vmatprep.subr.bf16.mxu0 %v3861_v25  ;;  %3516 = vmatpush1.bf16.msra.mxu1 %v3515_v49  ;;  %v3521_v56 = vpack.c.bf16 %v2614_v55, %v2613_v54 }
 0xc2d   :  { %3517 = vmatprep.subr.bf16.mxu1 %v3861_v25 }
 0xc2f   :  { %3565 = vmatpush1.bf16.msra.mxu0 %v3476_v60  ;;  %v2691_v60 = vld [vmem:[%s5550_s10 + $0x8] sm:$0xff] }
 0xc30   :  { %3566 = vmatprep.subr.bf16.mxu0 %v3861_v25  ;;  %3519 = vmatpush1.bf16.msra.mxu1 %v3518_v53  ;;  %v3523_v63 = vpack.c.bf16 %v2693_v61, %v2691_v60 }
 0xc31   :  { %3520 = vmatprep.subr.bf16.mxu1 %v3861_v25 }
 0xc33   :  { %3568 = vmatpush1.bf16.msra.mxu0 %v3479_v0 }
 0xc34   :  { %3522 = vmatpush1.bf16.msra.mxu1 %v3521_v56 }
 0xc35   :  { %3524 = vmatprep.subr.bf16.mxu1 %v3523_v63 }
 0xc5f   :  { %v5389_v9 = vpop.f32.mrb[60].mxu1 }
 0xc60   :  { %v3322_v11 = vpop.f32.mrb[61].mxu1 }
 0xc61   :  { %v2558_v22 = vpop.f32.mrb[62].mxu1 }
 0xc62   :  { %v3323_v27 = vpop.f32.mrb[63].mxu1  ;;  %v3740_v22 = vld [vmem:[%s5552_s12] sm:$0xff]  }
 0xcd1   :  { %v2452_v57 = vpop.f32.mrb[60].mxu0 }
 0xcd2   :  { %2574 = vrot.lane.b32.xlu1 %v2452_v57, %s3860_s30  ;;  %2571 = vrot.lane.b32.xlu0 %v2452_v57, %s3858_s22  ;;  %v2454_v25 = vpop.f32.mrb[61].mxu0 }
 0xcd6   :  { %2562 = vrot.lane.b32.xlu1 %v5001_v62, %s3859_s3  ;;  %2577 = vrot.lane.b32.xlu0 %v2452_v57, %s3859_s3 }
 0xcda   :  { %2566 = vrot.lane.b32.xlu0 %v5389_v9, %s3859_s3  ;;  %v3525_v9 = vpack.c.bf16 %v2692_v58, %v2690_v41 }
 0xd44   :  { %v2572_v0 = vpop.permute.xlu0 %2571  ;;  %v2575_v3 = vpop.permute.xlu1 %2574 }
 0xd45   :  { %v2580_v4 = vsel %vm1851_vm2, %v2452_v57, %v2572_v0 }
 0xd46   :  { %v2581_v5 = vsel %vm2006_vm4, %v2580_v4, %v2575_v3 }
 0xd47   :  { %v2584_v31 = vsub.f32 %v2581_v5, %v5347_v34 }
 0xd48   :  { %v2578_v37 = vpop.permute.xlu0 %2577  ;;  %v2563_v32 = vpop.permute.xlu1 %2562 }
 0xd49   :  { %v2582_v30 = vsel %vm234_vm0, %v2581_v5, %v2578_v37 }
 0xd4a   :  { %v2583_v33 = vsub.f32 %v2582_v30, %v5354_v2 }
 0xd4c   :  { %v2567_v62 = vpop.permute.xlu0 %2566 }
 0xd4d   :  { %v2569_v35 = vsel %vm234_vm0, %v2563_v32, %v2567_v62  ;;  %v2586_v38 = vmul.f32 %v2584_v31, %v2567_v62 }
 0xd4e   :  { %v2585_v39 = vmul.f32 %v2583_v33, %v2569_v35 }
 0xd4f   :  { %3132 = vmatprep.mubr.msk.f32.mxu1 %vm234_vm0, %v2586_v38 }
 0xd50   :  { %2683 = vmatmul.mubr.f32.vlgmr.msra.gmra.mrb[64].mxu1 %v2585_v39 }
 0xd51   :  { %2761 = vmatprep.mubr.f32.mxu1 %v3863_v12  ;;  %3526 = vmatpush1.bf16.msra.mxu1 %v3525_v9 }
 0xd52   :  { %3324 = vmatprep.subr.bf16.mxu1 %v3863_v12 }
 0xe23   :  { %v2684_v26 = vpop.f32.mrb[64].mxu1 }
 0xe24   :  { %v2688_v7 = vadd.f32 %v2684_v26, %v5109_v17  ;;  %v2686_v11 = vpop.f32.mrb[65].mxu1 }
 0xe26   :  { %2689 = vst.msk [vmem:[%s5551_s17] sm:$0xff] %vm2015_vm3, %v2688_v7  ;;  %3133 = vmatmul.mubr.msk.f32.vlgmr.msra.gmra.mrb[66].mxu1 %vm2015_vm3, %v2688_v7 }
 0xe27   :  { %3328 = vmatprep.mubr.msk.bf16.mxu1 %vm3862_vm1, %v3863_v12  ;;  %3325 = vmatpush3.bf16.msra.mxu1 %v3740_v22 }
 0xe28   :  { %3326 = vmatprep.subr.bf16.mxu1 %v3863_v12 }
 0xe2b   :  { %3327 = vmatpush3.bf16.msra.mxu1 %v3741_v14 }
 0xe2c   :  { %3332 = vmatprep.subr.bf16.mxu1 %v3863_v12 }
 0xef9   :  { %v2763_v27 = vpop.f32.mrb[66].mxu1 }
 0xefa   :  { %v2765_v17 = vpop.f32.mrb[67].mxu1  ;;  %v2768_v40 = vmul.f32 %v2763_v27, %v5354_v2  ;;  %v3135_v2 = vld [vmem:[%s5554_s13] ss:$0 sm:$0xff] }
 0xefb   :  { %v2769_v28 = vmul.f32 %v2765_v17, %v5347_v34  ;;  %v3742_v34 = vld [vmem:[%s5553_s14] sm:$0xff]  }
 0xefd   :  { %3134 = vmatprep.mubr.msk.f32.mxu0 %vm234_vm0, %v2769_v28 }
 0xefe   :  { %2866 = vmatmul.mubr.f32.vlgmr.msra.gmra.mrb[62].mxu0 %v2768_v40 }
 0xfd1   :  { %v2867_v13 = vpop.f32.mrb[62].mxu0 }
 0xfd2   :  { %v2871_v15 = vpack.c.bf16 %v2867_v13, %v2867_v13  ;;  %v2869_v16 = vpop.f32.mrb[63].mxu0 }
 0xfd4   :  { %3329 = vmatmul.mubr.msk.bf16.vlgmr.msra.gmra.mrb[68].mxu1 %vm1851_vm2, %v2871_v15 }
 0xfd5   :  { %3334 = vmatprep.mubr.msk.bf16.mxu1 %vm3862_vm1, %v3863_v12  ;;  %3333 = vmatpush3.bf16.msra.mxu1 %v3742_v34  ;;  %v3139_v12 = vld [vmem:[%s5555_s15] ss:$0 sm:$0xff] }
0x10a7   :  { %v2932_v18 = vpop.f32.mrb[68].mxu1 }
0x10a8   :  { %v2933_v19 = vadd.f32 %v3135_v2, %v2932_v18  ;;  %v3330_v1 = vpop.f32.mrb[69].mxu1 }
0x10a9   :  { %v2935_v20 = vpop.f32.mrb[70].mxu1 }
0x10aa   :  { %3823 = vtanh.f32 %v2933_v19  ;;  %v3331_v23 = vpop.f32.mrb[71].mxu1 }
0x10b4   :  { %v3824_v47 = vpop.eup %3823 }
0x10b5   :  { %v2939_v51 = vpack.c.bf16 %v3824_v47, %v3824_v47 }
0x10b7   :  { %3335 = vmatmul.mubr.msk.bf16.vlgmr.msra.gmra.mrb[72].mxu1 %vm2015_vm3, %v2939_v51 }
0x118a   :  { %v2992_v8 = vpop.f32.mrb[72].mxu1 }
0x118b   :  { %v2993_v59 = vadd.f32 %v3139_v12, %v2992_v8  ;;  %v3336_v6 = vpop.f32.mrb[73].mxu1 }
0x118c   :  { %v2995_v29 = vpop.f32.mrb[74].mxu1 }
0x118d   :  { %2999 = vst.msk [vmem:[%s5556_s16] sm:$0xff] %vm2998_vm5, %v2993_v59  ;;  %v3337_v36 = vpop.f32.mrb[75].mxu1 }

</bundles_post_ra>
